<compile_context>
chip_gen: v6e
topology: v6e:2x2x1
jax: 0.10.0
libtpu: 0.0.40
codegen_flags: <defaults>
</compile_context>

<pallas_src>
import functools

import jax
import jax.numpy as jnp
from jax import lax
from jax.experimental import pallas as pl
from jax.experimental.pallas import tpu as pltpu


def _pos_emb_kernel(idx_ref, xtab_ref, ytab_ref, out_ref, *, vx, vy):
    """One row-tile of the fused (gather-x, gather-y, concat) forward."""
    tile_n = idx_ref.shape[0]

    idx = idx_ref[...]                                   # [tile_n, 2] int32
    x_idx = idx[:, 0:1]                                  # [tile_n, 1]
    y_idx = idx[:, 1:2]                                  # [tile_n, 1]

    # One-hot rows in the compute dtype (0/1 exact in bf16/fp32); a single
    # compare per element since the two vocabularies are kept separate.
    iota_x = lax.broadcasted_iota(jnp.int32, (tile_n, vx), 1)
    iota_y = lax.broadcasted_iota(jnp.int32, (tile_n, vy), 1)
    oh_x = (iota_x == x_idx).astype(xtab_ref.dtype)      # [tile_n, vx]
    oh_y = (iota_y == y_idx).astype(ytab_ref.dtype)      # [tile_n, vy]

    # Gather-as-matmul on the MXU with f32 accumulation (exact row selection:
    # exactly one 1 per one-hot row, remaining products are exact zeros).
    x_emb = jnp.dot(oh_x, xtab_ref[...], preferred_element_type=jnp.float32)
    y_emb = jnp.dot(oh_y, ytab_ref[...], preferred_element_type=jnp.float32)

    # Lane-concat in-register, then one full-width store (lane-dense output
    # when dx + dy is a multiple of 128, e.g. 64 + 64 in the demo).
    out_ref[...] = jnp.concatenate([x_emb, y_emb], axis=1).astype(out_ref.dtype)


def positional_embedding(xy_pos, x_table, y_table, *, scale=100, tile_n=512,
                         compute_dtype=jnp.bfloat16, vmem_limit_bytes=None):
    """Pallas forward of PositionalEmbedding.

    compute_dtype=jnp.bfloat16 (default): narrow-dtype MXU gather; output rows
      equal the bf16-quantized table rows (the 0/1 selection itself is exact).
    compute_dtype=jnp.float32: bit-parity with the fp32 PyTorch module, at the
      cost of the MXU's fp32-emulation penalty.
    """
    n, two = xy_pos.shape
    assert two == 2
    vx, dx = x_table.shape
    vy, dy = y_table.shape

    # Index math done once in the wrapper (int32), not per row in the kernel.
    # torch.round rounds half-to-even; jnp.round matches.  Clamp to the valid
    # vocab range (documented divergence: torch raises on OOB).
    x_idx = jnp.clip(jnp.round(xy_pos[:, 0] * scale).astype(jnp.int32), 0, vx - 1)
    y_idx = jnp.clip(jnp.round(xy_pos[:, 1] * scale).astype(jnp.int32), 0, vy - 1)
    idx = jnp.stack([x_idx, y_idx], axis=1)              # [N, 2] int32

    # Pad N to a multiple of tile_n (padded rows use index 0; sliced off below).
    n_pad = pl.cdiv(n, tile_n) * tile_n
    if n_pad != n:
        idx = jnp.pad(idx, ((0, n_pad - n), (0, 0)))

    xt = x_table.astype(compute_dtype)
    yt = y_table.astype(compute_dtype)

    kernel = functools.partial(_pos_emb_kernel, vx=vx, vy=vy)
    out = pl.pallas_call(
        kernel,
        out_shape=jax.ShapeDtypeStruct((n_pad, dx + dy), jnp.float32),
        grid_spec=pltpu.PrefetchScalarGridSpec(
            num_scalar_prefetch=0,
            grid=(n_pad // tile_n,),
            in_specs=[
                # Row tile of precomputed indices (pipelined/double-buffered).
                pl.BlockSpec((tile_n, 2), lambda i: (i, 0)),
                # Whole tables resident in VMEM for the entire kernel: one
                # copy, no double buffering, no re-DMA across grid steps.
                pl.BlockSpec(memory_space=pltpu.MemorySpace.VMEM),
                pl.BlockSpec(memory_space=pltpu.MemorySpace.VMEM),
            ],
            out_specs=pl.BlockSpec((tile_n, dx + dy), lambda i: (i, 0)),
        ),
        compiler_params=pltpu.CompilerParams(
            dimension_semantics=("parallel",),
            vmem_limit_bytes=vmem_limit_bytes),
    )(idx, xt, yt)

    return out[:n] if n_pad != n else out


if __name__ == "__main__":
    raster_size = (4, 4)
    scale = 100
    emb_dim = 64          # dx + dy = 128 -> lane-dense full-vreg output stores
    n = 1000              # not a multiple of tile_n -> exercises padding path
    tile_n = 512          # grid = 2 parallel steps

    key = jax.random.PRNGKey(0)
    k_xt, k_yt, k_pos = jax.random.split(key, 3)

    # nn.Embedding default init: N(0, 1) -- deterministic synthetic weights.
    x_table = jax.random.normal(
        k_xt, (raster_size[0] * scale, emb_dim), dtype=jnp.float32)
    y_table = jax.random.normal(
        k_yt, (raster_size[1] * scale, emb_dim), dtype=jnp.float32)

    # Positions in [0, raster_size) so round(pos*scale) stays in-vocab.
    xy_pos = jax.random.uniform(
        k_pos, (n, 2), dtype=jnp.float32,
        minval=0.0, maxval=raster_size[0] - 0.01)

    # Fast path (default): bf16 one-hot x bf16 table on the MXU, f32 accum.
    out_fast = jax.block_until_ready(
        positional_embedding(xy_pos, x_table, y_table,
                             scale=scale, tile_n=tile_n))

    # Exact path: fp32 tables (bit-parity with the fp32 PyTorch module).
    out_exact = jax.block_until_ready(
        positional_embedding(xy_pos, x_table, y_table, scale=scale,
                             tile_n=tile_n, compute_dtype=jnp.float32))

    # Pure-JAX references (mirror the PyTorch forward).
    x_idx = jnp.round(xy_pos[:, 0] * scale).astype(jnp.int32)
    y_idx = jnp.round(xy_pos[:, 1] * scale).astype(jnp.int32)
    ref = jnp.concatenate([x_table[x_idx], y_table[y_idx]], axis=1)
    ref_bf16 = jnp.concatenate(
        [x_table.astype(jnp.bfloat16).astype(jnp.float32)[x_idx],
         y_table.astype(jnp.bfloat16).astype(jnp.float32)[y_idx]], axis=1)

    assert out_fast.shape == (n, 2 * emb_dim)
    assert out_exact.shape == (n, 2 * emb_dim)
    # bf16 path selects the bf16-quantized rows exactly (0/1 matmul, f32 acc).
    assert jnp.allclose(out_fast, ref_bf16, atol=1e-6), "bf16 kernel mismatch"
    # ... and is within bf16 rounding of the fp32 reference.
    assert jnp.allclose(out_fast, ref, rtol=1e-2, atol=1e-2), "bf16 vs fp32 ref"
    # fp32 path is bit-parity with the fp32 reference.
    assert jnp.allclose(out_exact, ref, atol=1e-6), "fp32 kernel mismatch"
    print("KERNEL_OK")
</pallas_src>

<mosaic_0001>
module attributes {stable_mosaic.version = 11 : i64} {
  func.func @_pos_emb_kernel(%arg0: i32, %arg1: memref<512x2xi32, #tpu.memory_space<vmem>>, %arg2: memref<400x64xbf16, #tpu.memory_space<vmem>>, %arg3: memref<400x64xbf16, #tpu.memory_space<vmem>>, %arg4: memref<512x128xf32, #tpu.memory_space<vmem>>) attributes {dimension_semantics = [#tpu.dimension_semantics<parallel>], iteration_bounds = array<i64: 2>, scalar_prefetch = 0 : i64, scratch_operands = 0 : i64, tpu.core_type = #tpu.core_type<tc>, window_params = [{transform_indices = @transform_0, window_bounds = array<i64: 512, 2>}, {pipeline_mode = #tpu.pipeline_mode<synchronous>, transform_indices = @transform_1, window_bounds = array<i64: 400, 64>}, {pipeline_mode = #tpu.pipeline_mode<synchronous>, transform_indices = @transform_2, window_bounds = array<i64: 400, 64>}, {transform_indices = @transform_3, window_bounds = array<i64: 512, 128>}]} {
    %c0 = arith.constant 0 : index
    %c0_0 = arith.constant 0 : index
    %0 = vector.load %arg1[%c0, %c0_0] : memref<512x2xi32, #tpu.memory_space<vmem>>, vector<512x2xi32>
    %1 = vector.extract_strided_slice %0 {offsets = [0, 0], sizes = [512, 1], strides = [1, 1]} : vector<512x2xi32> to vector<512x1xi32>
    %2 = vector.extract_strided_slice %0 {offsets = [0, 1], sizes = [512, 1], strides = [1, 1]} : vector<512x2xi32> to vector<512x1xi32>
    %3 = tpu.iota {dimensions = array<i32: 1>} : vector<512x400xi32>
    %4 = tpu.iota {dimensions = array<i32: 1>} : vector<512x400xi32>
    %5 = vector.broadcast %1 : vector<512x1xi32> to vector<512x400xi32>
    %6 = arith.cmpi eq, %3, %5 : vector<512x400xi32>
    %7 = arith.extui %6 : vector<512x400xi1> to vector<512x400xi32>
    %8 = arith.sitofp %7 : vector<512x400xi32> to vector<512x400xf32>
    %9 = arith.truncf %8 : vector<512x400xf32> to vector<512x400xbf16>
    %10 = vector.broadcast %2 : vector<512x1xi32> to vector<512x400xi32>
    %11 = arith.cmpi eq, %4, %10 : vector<512x400xi32>
    %12 = arith.extui %11 : vector<512x400xi1> to vector<512x400xi32>
    %13 = arith.sitofp %12 : vector<512x400xi32> to vector<512x400xf32>
    %14 = arith.truncf %13 : vector<512x400xf32> to vector<512x400xbf16>
    %c0_1 = arith.constant 0 : index
    %c0_2 = arith.constant 0 : index
    %15 = vector.load %arg2[%c0_1, %c0_2] : memref<400x64xbf16, #tpu.memory_space<vmem>>, vector<400x64xbf16>
    %cst = arith.constant dense<0.000000e+00> : vector<512x64xf32>
    %16 = tpu.matmul %9, %15, %cst {dimension_numbers = #tpu.dot_dimension_numbers<[1], [0], [0], [1], [0, 0, 1, 1], [], []>} : vector<512x400xbf16>, vector<400x64xbf16>, vector<512x64xf32> -> vector<512x64xf32>
    %c0_3 = arith.constant 0 : index
    %c0_4 = arith.constant 0 : index
    %17 = vector.load %arg3[%c0_3, %c0_4] : memref<400x64xbf16, #tpu.memory_space<vmem>>, vector<400x64xbf16>
    %cst_5 = arith.constant dense<0.000000e+00> : vector<512x64xf32>
    %18 = tpu.matmul %14, %17, %cst_5 {dimension_numbers = #tpu.dot_dimension_numbers<[1], [0], [0], [1], [0, 0, 1, 1], [], []>} : vector<512x400xbf16>, vector<400x64xbf16>, vector<512x64xf32> -> vector<512x64xf32>
    %19 = tpu.concatenate %16, %18 in 1 : vector<512x64xf32>, vector<512x64xf32> -> vector<512x128xf32>
    %c0_6 = arith.constant 0 : index
    %c0_7 = arith.constant 0 : index
    %20 = vector.load %arg4[%c0_6, %c0_7] : memref<512x128xf32, #tpu.memory_space<vmem>>, vector<512x128xf32>
    tpu.vector_store %arg4[%c0_6, %c0_7], %19 {strides = array<i32>} : memref<512x128xf32, #tpu.memory_space<vmem>>, vector<512x128xf32>,
    return
  }
  func.func @transform_0(%arg0: i32) -> (i32, i32) {
    %c0_i32 = arith.constant 0 : i32
    %c0_i32_0 = arith.constant 0 : i32
    return %arg0, %c0_i32 : i32, i32
  }
  func.func @transform_1(%arg0: i32) -> (i32, i32) {
    %c0_i32 = arith.constant 0 : i32
    %c0_i32_0 = arith.constant 0 : i32
    %c0_i32_1 = arith.constant 0 : i32
    return %c0_i32, %c0_i32_0 : i32, i32
  }
  func.func @transform_2(%arg0: i32) -> (i32, i32) {
    %c0_i32 = arith.constant 0 : i32
    %c0_i32_0 = arith.constant 0 : i32
    %c0_i32_1 = arith.constant 0 : i32
    return %c0_i32, %c0_i32_0 : i32, i32
  }
  func.func @transform_3(%arg0: i32) -> (i32, i32) {
    %c0_i32 = arith.constant 0 : i32
    %c0_i32_0 = arith.constant 0 : i32
    return %arg0, %c0_i32 : i32, i32
  }
}

</mosaic_0001>

<bundles_post_ra>
// kernel: tpu_custom_call.1
= control target key start
LH: loop header
LB: loop body
LE: loop exit
PB: predicated region body
PF: predicated region fallthrough
CT: control target
= control target key end

     0   :  { %8 = vsyncpa [#allocation3], 0  ;;  %s8619_s0 = inlined_call_operand.vmem [shape: s32[1024,2], index: 0, kind: input, shape index: {}]   ;;  %s8620_s1 = inlined_call_operand.vmem [shape: bf16[400,64], index: 1, kind: input, shape index: {}]   ;;  %s8621_s2 = inlined_call_operand.vmem [shape: bf16[400,64], index: 2, kind: input, shape index: {}]   ;;  %s8622_s3 = inlined_call_operand.hbm [shape: f32[1024,128], index: 3, kind: output, shape index: {}]  }
   0x1   :  { %10 = vsyncpa [#allocation3 + $0x1], 0  ;;  %s5868_s12 = smov 0   ;;  %s5870_s13 = smov 0  }
   0x2   :  { %s5872_s14 = smov 0   ;;  %s5874_s15 = smov 0  }
   0x3 LB: > { %s5889_s16 = sadd.s32 4294967295, %s5838_s15   ;;  %s4628_s17 = sadd.s32 4294967294, %s5838_s15   ;;  %s5838_s15 = sphi %s5874_s15, %s8733_s15   ;;  %s5834_s14 = sphi %s5872_s14, %s8732_s14   ;;  %s5830_s13 = sphi %s5870_s13, %s8731_s13   ;;  %s5826_s12 = sphi %s5868_s12, %s8730_s12  }
   0x4   : > { %s5893_s18 = sadd.s32 1, %s5838_s15   ;;  %s91_s19 = sadd.s32 1, %s5834_s14 }
   0x5   : > { %s88_s20 = ssub.s32 %s5838_s15, %s5893_s18  ;;  %p101_p0 = scmp.ne.s32.totalorder %s5834_s14, %s5830_s13 }
   0x6   : > { %p89_p1 = scmp.eq.s32.totalorder %s88_s20, 0  ;;  %p102_p2 = scmp.eq.s32.totalorder %s5889_s16, 1 }
   0x7   : > { %p107_p3 = scmp.ne.s32.totalorder %s5830_s13, %s5826_s12  ;;  %p108_p4 = scmp.eq.s32.totalorder %s4628_s17, 1 }
   0x8   : > { %s5904_s21 = scalar_select %p89_p1, %s5834_s14, %s91_s19  }
   0x9   : > { %p5906_p5 = por %p102_p2, %p101_p0  ;;  %p5910_p6 = por %p108_p4, %p107_p3 }
   0xa   : > { %p4631_p7 = scmp.ge.s32.totalorder %s5838_s15, 1  ;;  %p141_p8 = scmp.lt.s32.totalorder %s5838_s15, 3 }
   0xc   : > { %p142_p9 = pnand %p4631_p7, %p141_p8 }
   0xe   : > { %145 = sbr.rel (%p142_p9) target bundleno = 1001 (0x3e9), region = 32 }
  0x13   : > { %s4633_s24 = sshll.u32 %s5889_s16, 6  ;;  %v8623_v0 = vmov 0   ;;  %v5719_v1 = vld [vmem:[%s8620_s1 + $0x38] sm:$0xff]   ;;  %v5720_v2 = vld [vmem:[%s8620_s1 + $0x30] sm:$0xff]   ;;  %v5721_v5 = vld [vmem:[%s8620_s1 + $0x28] sm:$0xff]   ;;  %vm2618_vm3 = vcmask 130048  }
  0x14   : > { %5716 = vset.pattern.permute.xlu1 %v8623_v0  ;;  %5715 = vset.pattern.permute.xlu0 %v8623_v0  ;;  %p166_p10 = scmp.lt.s32.totalorder %s4633_s24, 127  ;;  %v5722_v8 = vld [vmem:[%s8620_s1 + $0x20] sm:$0xff]   ;;  %v5723_v11 = vld [vmem:[%s8620_s1 + $0x18] sm:$0xff]   ;;  %v5724_v14 = vld [vmem:[%s8620_s1 + $0x10] sm:$0xff]   ;;  %s5844_s20 = smov 64  }
  0x15   : > { %2715 = vmatprep.subr.bf16.mxu0 %v8623_v0  ;;  %3004 = vmatprep.subr.bf16.mxu1 %v8623_v0  ;;  %v5725_v17 = vld [vmem:[%s8620_s1 + $0x8] sm:$0xff]   ;;  %v5727_v20 = vld [vmem:[%s8620_s1 + $0xb8] sm:$0xff]   ;;  %v5726_v21 = vld [vmem:[%s8620_s1] sm:$0xff]   ;;  %s5845_s6 = smov [#allocation2]  }
  0x16   : > { %s8735_s24 = smov (!%p166_p10, %s4633_s24), 127  ;;  %2716 = vmatpush1.bf16.msra.mxu0 %v5719_v1  ;;  %3005 = vmatpush1.bf16.msra.mxu1 %v5727_v20  ;;  %v5729_v22 = vld [vmem:[%s8620_s1 + $0xb0] sm:$0xff]   ;;  %v5728_v25 = vld [vmem:[%s8620_s1 + $0x78] sm:$0xff]   ;;  %v5731_v26 = vld [vmem:[%s8620_s1 + $0xa8] sm:$0xff]   ;;  %s5782_s7 = sshll.u32 %s5845_s6, 4  ;;  %s5783_s7 = int_to_ptr.vmem [resolvable:$false] %s5782_s7 }
  0x17   : > { %2717 = vmatprep.subr.bf16.mxu0 %v8623_v0  ;;  %s4634_s29 = sshll.u32 %s8735_s24, 3  ;;  %3006 = vmatprep.subr.bf16.mxu1 %v8623_v0  ;;  %v5730_v29 = vld [vmem:[%s8620_s1 + $0x70] sm:$0xff]   ;;  %v5733_v30 = vld [vmem:[%s8620_s1 + $0xa0] sm:$0xff]   ;;  %v5732_v33 = vld [vmem:[%s8620_s1 + $0x68] sm:$0xff]   ;;  %s162_s24 = sand.u32 1, %s5830_s13  }
  0x18   : > { %s5931_s5 = scalar_lea.vmem %s8619_s0, %s4634_s29  ;;  %v5735_v34 = vld [vmem:[%s8620_s1 + $0x98] sm:$0xff]   ;;  %v5734_v37 = vld [vmem:[%s8620_s1 + $0x60] sm:$0xff]   ;;  %v5737_v38 = vld [vmem:[%s8620_s1 + $0x90] sm:$0xff]   ;;  %s4632_s25 = sshll.u32 %s162_s24, 9 }
  0x19   : > { %v5934_v3 = vld [vmem:[%s5931_s5 + $0x10] sm:$0xff]  ;;  %v5937_v4 = vld [vmem:[%s5931_s5] sm:$0xff]  ;;  %v5945_v6 = vld [vmem:[%s5931_s5 + $0x18] sm:$0xff]  ;;  %s8341_s26 = scalar_lea.vmem [#allocation2], %s4632_s25  ;;  %s5784_s8 = scalar_lea.vmem %s5783_s7, 16384 }
  0x1a   : > { %2718 = vmatpush1.bf16.msra.mxu0 %v5720_v2  ;;  %249 = vperm.xlu1 %5716, %v5934_v3   ;;  %v5948_v7 = vld [vmem:[%s5931_s5 + $0x8] sm:$0xff]  ;;  %v5960_v10 = vld [vmem:[%s5931_s5 + $0x20] sm:$0xff]  ;;  %v5969_v12 = vld [vmem:[%s5931_s5 + $0x38] sm:$0xff]  ;;  %s4566_s27 = sshll.u32 %s8341_s26, 4  ;;  %s8572_s27 = int_to_ptr.vmem [resolvable:$true] %s4566_s27 }
  0x1b   : > { %243 = vperm.xlu0 %5715, %v5937_v4   ;;  %2719 = vmatprep.subr.bf16.mxu0 %v8623_v0  ;;  %v5957_v9 = vld [vmem:[%s5931_s5 + $0x28] sm:$0xff]  ;;  %v5972_v13 = vld [vmem:[%s5931_s5 + $0x30] sm:$0xff]  ;;  %v5984_v16 = vld [vmem:[%s5931_s5 + $0x40] sm:$0xff]  ;;  %s5778_s4 = scalar_lea.vmem %s8572_s27, 8192  ;;  %p5785_p0 = scmp.lt.s32.totalorder %s8572_s27, %s5783_s7 }
  0x1c   : > { %v5981_v15 = vld [vmem:[%s5931_s5 + $0x48] sm:$0xff]  ;;  %v5993_v18 = vld [vmem:[%s5931_s5 + $0x58] sm:$0xff]  ;;  %v5996_v19 = vld [vmem:[%s5931_s5 + $0x50] sm:$0xff]  ;;  %3007 = vmatpush1.bf16.msra.mxu1 %v5729_v22  ;;  %p5779_p11 = scmp.ne.s32.totalorder %s8572_s27, %s5778_s4  ;;  %p5786_p1 = scmp.lt.s32.totalorder %s5784_s8, %s5778_s4 }
  0x1d   : > { %v6011_v23 = vld [vmem:[%s5931_s5 + $0x68] sm:$0xff]  ;;  %v6014_v24 = vld [vmem:[%s5931_s5 + $0x60] sm:$0xff]  ;;  %v6027_v27 = vld [vmem:[%s5931_s5 + $0x78] sm:$0xff]  ;;  %3008 = vmatprep.subr.bf16.mxu1 %v8623_v0 }
  0x1e   : > { %2720 = vmatpush1.bf16.msra.mxu0 %v5721_v5  ;;  %252 = vperm.xlu1 %5716, %v5945_v6   ;;  %v6030_v28 = vld [vmem:[%s5931_s5 + $0x70] sm:$0xff]  ;;  %v6043_v31 = vld [vmem:[%s5931_s5 + $0x88] sm:$0xff]  ;;  %v6046_v32 = vld [vmem:[%s5931_s5 + $0x80] sm:$0xff]  ;;  %p5780_p12 = pnand %p5779_p11, %p5906_p5  ;;  %p5787_p2 = por %p5786_p1, %p5785_p0 }
  0x1f   : > { %246 = vperm.xlu0 %5715, %v5948_v7   ;;  %2721 = vmatprep.subr.bf16.mxu0 %v8623_v0  ;;  %v6059_v35 = vld [vmem:[%s5931_s5 + $0x98] sm:$0xff]  ;;  %v6062_v36 = vld [vmem:[%s5931_s5 + $0x90] sm:$0xff]  ;;  %v6075_v39 = vld [vmem:[%s5931_s5 + $0xa8] sm:$0xff] }
  0x20   : > { %3009 = vmatpush1.bf16.msra.mxu1 %v5731_v26  ;;  %v6078_v40 = vld [vmem:[%s5931_s5 + $0xa0] sm:$0xff]  ;;  %v5736_v41 = vld [vmem:[%s8620_s1 + $0x58] sm:$0xff]   ;;  %v5739_v43 = vld [vmem:[%s8620_s1 + $0x88] sm:$0xff]   ;;  %p5781_p13 = pneg %p5780_p12 }
  0x21   : > { %3010 = vmatprep.subr.bf16.mxu1 %v8623_v0  ;;  %v6086_v42 = vld [vmem:[%s5931_s5 + $0xb8] sm:$0xff]  ;;  %v6094_v44 = vld [vmem:[%s5931_s5 + $0xb0] sm:$0xff]  ;;  %v5741_v46 = vld [vmem:[%s8620_s1 + $0x80] sm:$0xff]  }
  0x22   : > { %2722 = vmatpush1.bf16.msra.mxu0 %v5722_v8  ;;  %258 = vperm.xlu1 %5716, %v5957_v9   ;;  %v5738_v45 = vld [vmem:[%s8620_s1 + $0x50] sm:$0xff]   ;;  %v6105_v47 = vld [vmem:[%s5931_s5 + $0xc8] sm:$0xff]  ;;  %v6108_v48 = vld [vmem:[%s5931_s5 + $0xc0] sm:$0xff]  ;;  %p5788_p3 = pnand %p5787_p2, %p5781_p13 }
  0x23   : > { %255 = vperm.xlu0 %5715, %v5960_v10   ;;  %2723 = vmatprep.subr.bf16.mxu0 %v8623_v0  ;;  %v5740_v49 = vld [vmem:[%s8620_s1 + $0x48] sm:$0xff]   ;;  %v5743_v50 = vld [vmem:[%s8620_s1 + $0xc0] sm:$0xff]   ;;  %v6121_v51 = vld [vmem:[%s5931_s5 + $0xd8] sm:$0xff] }
  0x24   : > { %3011 = vmatpush1.bf16.msra.mxu1 %v5733_v30  ;;  %v6124_v52 = vld [vmem:[%s5931_s5 + $0xd0] sm:$0xff]  ;;  %v5742_v53 = vld [vmem:[%s8620_s1 + $0x40] sm:$0xff]   ;;  %v6134_v54 = vld [vmem:[%s5931_s5 + $0xe8] sm:$0xff] }
  0x25   : > { %3012 = vmatprep.subr.bf16.mxu1 %v8623_v0  ;;  %v6139_v55 = vld [vmem:[%s5931_s5 + $0xe0] sm:$0xff]  ;;  %v6146_v56 = vld [vmem:[%s5931_s5 + $0xf8] sm:$0xff]  ;;  %v6149_v57 = vld [vmem:[%s5931_s5 + $0xf0] sm:$0xff] }
  0x26   : > { %2724 = vmatpush1.bf16.msra.mxu0 %v5723_v11  ;;  %264 = vperm.xlu1 %5716, %v5969_v12   ;;  %v6155_v58 = vld [vmem:[%s5931_s5 + $0x108] sm:$0xff]  ;;  %v6158_v59 = vld [vmem:[%s5931_s5 + $0x100] sm:$0xff]  ;;  %v6163_v60 = vld [vmem:[%s5931_s5 + $0x118] sm:$0xff] }
  0x27   : > { %261 = vperm.xlu0 %5715, %v5972_v13   ;;  %2725 = vmatprep.subr.bf16.mxu0 %v8623_v0  ;;  %v6166_v61 = vld [vmem:[%s5931_s5 + $0x110] sm:$0xff]  ;;  %v6171_v62 = vld [vmem:[%s5931_s5 + $0x128] sm:$0xff]  ;;  %v6174_v63 = vld [vmem:[%s5931_s5 + $0x120] sm:$0xff] }
  0x28   : > { %3013 = vmatpush1.bf16.msra.mxu1 %v5735_v34  ;;  %v6179_v1 = vld [vmem:[%s5931_s5 + $0x138] sm:$0xff]  ;;  %v6182_v2 = vld [vmem:[%s5931_s5 + $0x130] sm:$0xff]  ;;  %v6187_v5 = vld [vmem:[%s5931_s5 + $0x148] sm:$0xff] }
  0x29   : > { %3014 = vmatprep.subr.bf16.mxu1 %v8623_v0  ;;  %v6190_v8 = vld [vmem:[%s5931_s5 + $0x140] sm:$0xff]  ;;  %v6195_v11 = vld [vmem:[%s5931_s5 + $0x158] sm:$0xff]  ;;  %v6214_v22 = vld [vmem:[%s5931_s5 + $0x170] sm:$0xff] }
  0x2a   : > { %2726 = vmatpush1.bf16.msra.mxu0 %v5724_v14  ;;  %270 = vperm.xlu1 %5716, %v5981_v15   ;;  %v6198_v14 = vld [vmem:[%s5931_s5 + $0x150] sm:$0xff]  ;;  %v6206_v20 = vld [vmem:[%s5931_s5 + $0x160] sm:$0xff]  ;;  %8650 = vst [vmem:[#allocation6_spill] sm:$0xff] %v6214_v22 }
  0x2b   : > { %267 = vperm.xlu0 %5715, %v5984_v16   ;;  %2727 = vmatprep.subr.bf16.mxu0 %v8623_v0  ;;  %v6222_v26 = vld [vmem:[%s5931_s5 + $0x180] sm:$0xff]  ;;  %v6230_v30 = vld [vmem:[%s5931_s5 + $0x190] sm:$0xff] }
  0x2c   : > { %3015 = vmatpush1.bf16.msra.mxu1 %v5737_v38  ;;  %8652 = vst [vmem:[#allocation8_spill] sm:$0xff] %v6222_v26  ;;  %8654 = vst [vmem:[#allocation10_spill] sm:$0xff] %v6230_v30  ;;  %v6238_v34 = vld [vmem:[%s5931_s5 + $0x1a0] sm:$0xff]  ;;  %v6246_v38 = vld [vmem:[%s5931_s5 + $0x1b0] sm:$0xff] }
  0x2d   : > { %3016 = vmatprep.subr.bf16.mxu1 %v8623_v0  ;;  %8656 = vst [vmem:[#allocation12_spill] sm:$0xff] %v6238_v34  ;;  %8658 = vst [vmem:[#allocation14_spill] sm:$0xff] %v6246_v38 }
  0x2e   : > { %2728 = vmatpush1.bf16.msra.mxu0 %v5725_v17  ;;  %276 = vperm.xlu1 %5716, %v5993_v18   ;;  %v6203_v17 = vld [vmem:[%s5931_s5 + $0x168] sm:$0xff] }
  0x2f   : > { %273 = vperm.xlu0 %5715, %v5996_v19   ;;  %2729 = vmatprep.subr.bf16.mxu0 %v8623_v0 }
  0x30   : > { %3017 = vmatpush1.bf16.msra.mxu1 %v5739_v43  ;;  %v6254_v43 = vld [vmem:[%s5931_s5 + $0x1c0] sm:$0xff] }
  0x31   : > { %3018 = vmatprep.subr.bf16.mxu1 %v8623_v0  ;;  %8660 = vst [vmem:[#allocation16_spill] sm:$0xff] %v6254_v43 }
  0x32   : > { %2730 = vmatpush1.bf16.msra.mxu0 %v5726_v21  ;;  %282 = vperm.xlu1 %5716, %v6011_v23   ;;  %v6211_v21 = vld [vmem:[%s5931_s5 + $0x178] sm:$0xff] }
  0x33   : > { %279 = vperm.xlu0 %5715, %v6014_v24   ;;  %2731 = vmatprep.subr.bf16.mxu0 %v8623_v0  ;;  %8649 = vst [vmem:[#allocation5_spill] sm:$0xff] %v6211_v21 }
  0x34   : > { %3019 = vmatpush1.bf16.msra.mxu1 %v5741_v46  ;;  %v6262_v46 = vld [vmem:[%s5931_s5 + $0x1d0] sm:$0xff] }
  0x35   : > { %3034 = vmatprep.subr.bf16.mxu1 %v8623_v0  ;;  %8662 = vst [vmem:[#allocation18_spill] sm:$0xff] %v6262_v46 }
  0x36   : > { %2732 = vmatpush2.bf16.msra.mxu0 %v5728_v25  ;;  %288 = vperm.xlu1 %5716, %v6027_v27   ;;  %v6219_v25 = vld [vmem:[%s5931_s5 + $0x188] sm:$0xff] }
  0x37   : > { %285 = vperm.xlu0 %5715, %v6030_v28   ;;  %2733 = vmatprep.subr.bf16.mxu0 %v8623_v0  ;;  %8651 = vst [vmem:[#allocation7_spill] sm:$0xff] %v6219_v25 }
  0x38   : > { %3035 = vmatpush2.bf16.msra.mxu1 %v5743_v50  ;;  %v6267_v50 = vld [vmem:[%s5931_s5 + $0x1e8] sm:$0xff] }
  0x39   : > { %3589 = vmatprep.subr.bf16.mxu1 %v8623_v0  ;;  %8663 = vst [vmem:[#allocation19_spill] sm:$0xff] %v6267_v50 }
  0x3a   : > { %2734 = vmatpush2.bf16.msra.mxu0 %v5730_v29  ;;  %294 = vperm.xlu1 %5716, %v6043_v31   ;;  %v6227_v29 = vld [vmem:[%s5931_s5 + $0x198] sm:$0xff] }
  0x3b   : > { %291 = vperm.xlu0 %5715, %v6046_v32   ;;  %2735 = vmatprep.subr.bf16.mxu0 %v8623_v0  ;;  %8653 = vst [vmem:[#allocation9_spill] sm:$0xff] %v6227_v29 }
  0x3e   : > { %2736 = vmatpush2.bf16.msra.mxu0 %v5732_v33  ;;  %300 = vperm.xlu1 %5716, %v6059_v35   ;;  %v6235_v33 = vld [vmem:[%s5931_s5 + $0x1a8] sm:$0xff] }
  0x3f   : > { %297 = vperm.xlu0 %5715, %v6062_v36   ;;  %2737 = vmatprep.subr.bf16.mxu0 %v8623_v0  ;;  %8655 = vst [vmem:[#allocation11_spill] sm:$0xff] %v6235_v33 }
  0x42   : > { %2738 = vmatpush2.bf16.msra.mxu0 %v5734_v37  ;;  %306 = vperm.xlu1 %5716, %v6075_v39   ;;  %v6243_v37 = vld [vmem:[%s5931_s5 + $0x1b8] sm:$0xff] }
  0x43   : > { %303 = vperm.xlu0 %5715, %v6078_v40   ;;  %2739 = vmatprep.subr.bf16.mxu0 %v8623_v0  ;;  %8657 = vst [vmem:[#allocation13_spill] sm:$0xff] %v6243_v37 }
  0x46   : > { %2740 = vmatpush2.bf16.msra.mxu0 %v5736_v41  ;;  %312 = vperm.xlu1 %5716, %v6086_v42   ;;  %v6251_v41 = vld [vmem:[%s5931_s5 + $0x1c8] sm:$0xff] }
  0x47   : > { %309 = vperm.xlu0 %5715, %v6094_v44   ;;  %2741 = vmatprep.subr.bf16.mxu0 %v8623_v0  ;;  %8659 = vst [vmem:[#allocation15_spill] sm:$0xff] %v6251_v41 }
  0x4a   : > { %2742 = vmatpush2.bf16.msra.mxu0 %v5738_v45  ;;  %318 = vperm.xlu1 %5716, %v6105_v47   ;;  %v6259_v45 = vld [vmem:[%s5931_s5 + $0x1d8] sm:$0xff] }
  0x4b   : > { %315 = vperm.xlu0 %5715, %v6108_v48   ;;  %2743 = vmatprep.subr.bf16.mxu0 %v8623_v0  ;;  %8661 = vst [vmem:[#allocation17_spill] sm:$0xff] %v6259_v45 }
  0x4e   : > { %2744 = vmatpush2.bf16.msra.mxu0 %v5740_v49  ;;  %324 = vperm.xlu1 %5716, %v6121_v51   ;;  %v237_v49 = vlaneseq }
  0x4f   : > { %321 = vperm.xlu0 %5715, %v6124_v52   ;;  %2745 = vmatprep.subr.bf16.mxu0 %v8623_v0 }
  0x52   : > { %2746 = vmatpush2.bf16.msra.mxu0 %v5742_v53  ;;  %330 = vperm.xlu1 %5716, %v6134_v54   ;;  %v6270_v53 = vld [vmem:[%s5931_s5 + $0x1e0] sm:$0xff] }
  0x53   : > { %327 = vperm.xlu0 %5715, %v6139_v55   ;;  %3878 = vmatprep.subr.bf16.mxu0 %v8623_v0  ;;  %8664 = vst [vmem:[#allocation20_spill] sm:$0xff] %v6270_v53  ;;  %v6272_v0 = vand.u32 127, %v237_v49 }
  0x55   : > { %v6297_v49 = vadd.s32 256, %v6272_v0 }
  0x56   : > { %336 = vperm.xlu1 %5716, %v6146_v56  }
  0x57   : > { %333 = vperm.xlu0 %5715, %v6149_v57  }
  0x5a   : > { %342 = vperm.xlu1 %5716, %v6155_v58  }
  0x5b   : > { %339 = vperm.xlu0 %5715, %v6158_v59  }
  0x5e   : > { %348 = vperm.xlu1 %5716, %v6163_v60  }
  0x5f   : > { %345 = vperm.xlu0 %5715, %v6166_v61  }
  0x62   : > { %354 = vperm.xlu1 %5716, %v6171_v62  }
  0x63   : > { %351 = vperm.xlu0 %5715, %v6174_v63  }
  0x66   : > { %360 = vperm.xlu1 %5716, %v6179_v1  }
  0x67   : > { %357 = vperm.xlu0 %5715, %v6182_v2  }
  0x6a   : > { %366 = vperm.xlu1 %5716, %v6187_v5  }
  0x6b   : > { %363 = vperm.xlu0 %5715, %v6190_v8  }
  0x6e   : > { %372 = vperm.xlu1 %5716, %v6195_v11  }
  0x6f   : > { %369 = vperm.xlu0 %5715, %v6198_v14  }
  0x72   : > { %378 = vperm.xlu1 %5716, %v6203_v17  }
  0x73   : > { %375 = vperm.xlu0 %5715, %v6206_v20  }
  0x76   : > { %384 = vperm.xlu1 %5716, %v6211_v21   ;;  %v5744_v21 = vld [vmem:[%s8621_s2 + $0x38] sm:$0xff]  }
  0x77   : > { %381 = vperm.xlu0 %5715, %v6214_v22  }
  0x7a   : > { %390 = vperm.xlu1 %5716, %v6219_v25   ;;  %v8645_v25 = vmov 1.0|1.0  }
  0x7b   : > { %387 = vperm.xlu0 %5715, %v6222_v26  }
  0x7e   : > { %396 = vperm.xlu1 %5716, %v6227_v29  }
  0x7f   : > { %393 = vperm.xlu0 %5715, %v6230_v30  }
  0x82   : > { %402 = vperm.xlu1 %5716, %v6235_v33   ;;  %v8643_v33 = vmov 0.0  }
  0x83   : > { %399 = vperm.xlu0 %5715, %v6238_v34  }
  0x86   : > { %408 = vperm.xlu1 %5716, %v6243_v37   ;;  %v6283_v37 = vld [vmem:[%s5931_s5 + $0x1f0] sm:$0xff] }
  0x87   : > { %405 = vperm.xlu0 %5715, %v6246_v38   ;;  %8666 = vst [vmem:[#allocation22_spill] sm:$0xff] %v6283_v37 }
  0x8a   : > { %414 = vperm.xlu1 %5716, %v6251_v41   ;;  %v6277_v41 = vadd.s32 384, %v6272_v0 }
  0x8b   : > { %411 = vperm.xlu0 %5715, %v6254_v43   ;;  %v6280_v43 = vld [vmem:[%s5931_s5 + $0x1f8] sm:$0xff]  ;;  %s5650_s5 = sshll.u32 %s5889_s16, 13  ;;  %s8579_s16 = scalar_lea.sflag [#allocation3], %s162_s24 }
  0x8c   : > { %8665 = vst [vmem:[#allocation21_spill] sm:$0xff] %v6280_v43  ;;  %s8570_s30 = scalar_lea.hbm %s8622_s3, %s5650_s5 }
  0x8e   : > { %420 = vperm.xlu1 %5716, %v6259_v45   ;;  %v6286_v45 = vadd.s32 128, %v6272_v0 }
  0x8f   : > { %417 = vperm.xlu0 %5715, %v6262_v46  }
  0x92   : > { %426 = vperm.xlu1 %5716, %v6267_v50  }
  0x93   : > { %423 = vperm.xlu0 %5715, %v6270_v53  }
  0x95   : > { %v6288_v46 = vpop.permute.xlu1 %249 }
  0x96   : > { %v244_v38 = vpop.permute.xlu0 %243  ;;  %vm445_vm0 = vcmp.eq.s32.totalorder %v6277_v41, %v6288_v46  ;;  %432 = vperm.xlu1 %5716, %v6280_v43   ;;  %vm443_vm5 = vcmp.eq.s32.totalorder %v6286_v45, %v6288_v46 }
  0x97   : > { %429 = vperm.xlu0 %5715, %v6283_v37   ;;  %vm437_vm1 = vcmp.eq.s32.totalorder %v6277_v41, %v244_v38  ;;  %vm435_vm2 = vcmp.eq.s32.totalorder %v6286_v45, %v244_v38  ;;  %vm434_vm4 = vcmp.eq.s32.totalorder %v6272_v0, %v244_v38  ;;  %v4646_v43 = vsel %vm445_vm0, 1.0, %v8643_v33 }
  0x98   : > { %v4638_v34 = vsel %vm437_vm1, 1.0, %v8643_v33  ;;  %v5842_v37 = vmov 1   ;;  %vm436_vm14 = vcmp.eq.s32.totalorder %v6297_v49, %v244_v38 }
  0x99   : > { %v6299_v50 = vpop.permute.xlu1 %252 }
  0x9a   : > { %v247_v53 = vpop.permute.xlu0 %246  ;;  %vm449_vm6 = vcmp.eq.s32.totalorder %v6277_v41, %v6299_v50  ;;  %5718 = vset.pattern.permute.xlu1 %v5842_v37  ;;  %vm447_vm12 = vcmp.eq.s32.totalorder %v6286_v45, %v6299_v50 }
  0x9b   : > { %vm439_vm7 = vcmp.eq.s32.totalorder %v6286_v45, %v247_v53  ;;  %vm438_vm8 = vcmp.eq.s32.totalorder %v6272_v0, %v247_v53  ;;  %vm441_vm9 = vcmp.eq.s32.totalorder %v6277_v41, %v247_v53  ;;  %vm440_vm11 = vcmp.eq.s32.totalorder %v6297_v49, %v247_v53  ;;  %5717 = vset.pattern.permute.xlu0 %v5842_v37  ;;  %vm5176_vm0 = vmpackc.low %vm447_vm12, %vm443_vm5 }
  0x9c   : > { %vm5172_vm10 = vmpackc.low %vm439_vm7, %vm435_vm2  ;;  %v4642_v29 = vsel %vm441_vm9, 1.0, %v8643_v33  ;;  %v4650_v30 = vsel %vm449_vm6, 1.0, %v8643_v33  ;;  %1334 = vperm.xlu1 %5718, %v5948_v7   ;;  %1331 = vperm.xlu0 %5717, %v5937_v4   ;;  %v5745_v4 = vld [vmem:[%s8621_s2 + $0xb8] sm:$0xff]   ;;  %vm446_vm5 = vcmp.eq.s32.totalorder %v6272_v0, %v6299_v50  ;;  %vm448_vm9 = vcmp.eq.s32.totalorder %v6297_v49, %v6299_v50 }
  0x9d   : > { %5173 = vmatprep.mubr.msk.bf16.mxu0 %vm5172_vm10, %v8645_v25  ;;  %vm5174_vm13 = vmpackc.low %vm438_vm8, %vm434_vm4  ;;  %v1205_v26 = vpack.c.bf16 %v4642_v29, %v4638_v34  ;;  %v1209_v22 = vpack.c.bf16 %v4650_v30, %v4646_v43  ;;  %v6327_v33 = vpop.permute.xlu1 %258  ;;  %vm442_vm4 = vcmp.eq.s32.totalorder %v6272_v0, %v6288_v46  ;;  %vm444_vm8 = vcmp.eq.s32.totalorder %v6297_v49, %v6288_v46  ;;  %v5747_v34 = vld [vmem:[%s8621_s2 + $0x28] sm:$0xff]   ;;  %v5749_v46 = vld [vmem:[%s8621_s2 + $0x20] sm:$0xff]  }
  0x9e   : > { %5175 = vmatmul.mubr.msk.bf16.vlgmr.msra.gmra.mxu0 %vm5174_vm13, %v8645_v25  ;;  %v6330_v7 = vpop.permute.xlu0 %255  ;;  %vm5301_vm15 = vmpackc.low %vm440_vm11, %vm436_vm14  ;;  %vm457_vm1 = vcmp.eq.s32.totalorder %v6277_v41, %v6327_v33  ;;  %vm455_vm7 = vcmp.eq.s32.totalorder %v6286_v45, %v6327_v33 }
  0x9f   : > { %5300 = vmatprep.mubr.msk.bf16.mxu1 %vm2618_vm3, %v1205_v26  ;;  %5177 = vmatprep.mubr.msk.bf16.mxu0 %vm5176_vm0, %v8645_v25  ;;  %vm453_vm2 = vcmp.eq.s32.totalorder %v6277_v41, %v6330_v7  ;;  %v5746_v26 = vld [vmem:[%s8621_s2 + $0x30] sm:$0xff]   ;;  %vm451_vm6 = vcmp.eq.s32.totalorder %v6286_v45, %v6330_v7  ;;  %vm5178_vm10 = vmpackc.low %vm446_vm5, %vm442_vm4  ;;  %vm454_vm0 = vcmp.eq.s32.totalorder %v6272_v0, %v6327_v33 }
  0xa0   : > { %5302 = vmatmul.mubr.msk.bf16.vlgmr.msra.gmra.mxu1 %vm5301_vm15, %v8645_v25  ;;  %1337 = vperm.xlu1 %5718, %v5934_v3   ;;  %v8668_v3 = vmov 0   ;;  %vm5180_vm11 = vmpackc.low %vm455_vm7, %vm451_vm6  ;;  %vm450_vm15 = vcmp.eq.s32.totalorder %v6272_v0, %v6330_v7  ;;  %vm452_vm4 = vcmp.eq.s32.totalorder %v6297_v49, %v6330_v7  ;;  %vm456_vm5 = vcmp.eq.s32.totalorder %v6297_v49, %v6327_v33 }
  0xa1   : > { %3590 = vmatpush1.bf16.msra.mxu1 %v5744_v21  ;;  %5303 = vmatprep.mubr.msk.bf16.mxu1 %vm2618_vm3, %v1209_v22  ;;  %v8667_v21 = vmov 0.0   ;;  %vm5304_vm12 = vmpackc.low %vm448_vm9, %vm444_vm8 }
  0xa2   : > { %1340 = vperm.xlu0 %5717, %v5945_v6   ;;  %3879 = vmatpush1.bf16.msra.mxu0 %v5745_v4  ;;  %v4654_v22 = vsel %vm453_vm2, 1.0, %v8667_v21  ;;  %v4658_v29 = vsel %vm457_vm1, 1.0, %v8667_v21  ;;  %v6372_v6 = vpop.permute.xlu1 %264  ;;  %v6374_v30 = vpop.permute.xlu0 %261  ;;  %vm5182_vm6 = vmpackc.low %vm454_vm0, %vm450_vm15 }
  0xa3   : > { %3591 = vmatprep.subr.bf16.mxu1 %v8668_v3  ;;  %3880 = vmatprep.subr.bf16.mxu0 %v8668_v3  ;;  %v1213_v37 = vpack.c.bf16 %v4658_v29, %v4654_v22  ;;  %vm465_vm13 = vcmp.eq.s32.totalorder %v6277_v41, %v6372_v6  ;;  %vm461_vm14 = vcmp.eq.s32.totalorder %v6277_v41, %v6374_v30  ;;  %vm5307_vm8 = vmpackc.low %vm456_vm5, %vm452_vm4  ;;  %v5752_v22 = vld [vmem:[%s8621_s2 + $0x10] sm:$0xff]  }
  0xa4   : > { %1343 = vperm.xlu1 %5718, %v5960_v10   ;;  %v5748_v10 = vld [vmem:[%s8621_s2 + $0xb0] sm:$0xff]   ;;  %vm459_vm1 = vcmp.eq.s32.totalorder %v6286_v45, %v6374_v30  ;;  %vm463_vm2 = vcmp.eq.s32.totalorder %v6286_v45, %v6372_v6  ;;  %v4666_v38 = vsel %vm465_vm13, 1.0, %v8667_v21  ;;  %vm460_vm15 = vcmp.eq.s32.totalorder %v6297_v49, %v6374_v30 }
  0xa5   : > { %3592 = vmatpush1.bf16.msra.mxu1 %v5746_v26  ;;  %vm5184_vm7 = vmpackc.low %vm463_vm2, %vm459_vm1  ;;  %vm464_vm0 = vcmp.eq.s32.totalorder %v6297_v49, %v6372_v6 }
  0xa6   : > { %5179 = vmatmul.mubr.msk.bf16.gmra.mxu0 %vm5178_vm10, %v8645_v25  ;;  %1346 = vperm.xlu0 %5717, %v5957_v9   ;;  %v4662_v9 = vsel %vm461_vm14, 1.0, %v8667_v21  ;;  %v6419_v43 = vpop.permute.xlu0 %267  ;;  %vm5310_vm4 = vmpackc.low %vm464_vm0, %vm460_vm15 }
  0xa7   : > { %5181 = vmatprep.mubr.msk.bf16.mxu0 %vm5180_vm11, %v8645_v25  ;;  %3593 = vmatprep.subr.bf16.mxu1 %v8668_v3  ;;  %v1217_v50 = vpack.c.bf16 %v4666_v38, %v4662_v9  ;;  %vm469_vm10 = vcmp.eq.s32.totalorder %v6277_v41, %v6419_v43  ;;  %vm458_vm11 = vcmp.eq.s32.totalorder %v6272_v0, %v6374_v30  ;;  %v5762_v38 = vld [vmem:[%s8621_s2 + $0x88] sm:$0xff]  }
  0xa8   : > { %5305 = vmatmul.mubr.msk.bf16.gmra.mxu1 %vm5304_vm12, %v8645_v25  ;;  %1349 = vperm.xlu1 %5718, %v5972_v13   ;;  %v5751_v13 = vld [vmem:[%s8621_s2 + $0xa8] sm:$0xff]   ;;  %vm462_vm12 = vcmp.eq.s32.totalorder %v6272_v0, %v6372_v6  ;;  %vm467_vm13 = vcmp.eq.s32.totalorder %v6286_v45, %v6419_v43 }
  0xa9   : > { %5306 = vmatprep.mubr.msk.bf16.mxu1 %vm2618_vm3, %v1213_v37  ;;  %3594 = vmatpush1.bf16.msra.mxu1 %v5747_v34  ;;  %vm5186_vm1 = vmpackc.low %vm462_vm12, %vm458_vm11  ;;  %vm468_vm11 = vcmp.eq.s32.totalorder %v6297_v49, %v6419_v43 }
  0xaa   : > { %1352 = vperm.xlu0 %5717, %v5969_v12   ;;  %3881 = vmatpush1.bf16.msra.mxu0 %v5748_v10  ;;  %v6417_v12 = vpop.permute.xlu1 %270  ;;  %v6466_v53 = vpop.permute.xlu0 %273 }
  0xab   : > { %3595 = vmatprep.subr.bf16.mxu1 %v8668_v3  ;;  %3882 = vmatprep.subr.bf16.mxu0 %v8668_v3  ;;  %vm473_vm9 = vcmp.eq.s32.totalorder %v6277_v41, %v6417_v12  ;;  %vm471_vm14 = vcmp.eq.s32.totalorder %v6286_v45, %v6417_v12  ;;  %vm472_vm12 = vcmp.eq.s32.totalorder %v6297_v49, %v6417_v12 }
  0xac   : > { %1355 = vperm.xlu1 %5718, %v5984_v16   ;;  %v5754_v16 = vld [vmem:[%s8621_s2 + $0xa0] sm:$0xff]   ;;  %v4674_v33 = vsel %vm473_vm9, 1.0, %v8667_v21  ;;  %vm5188_vm2 = vmpackc.low %vm471_vm14, %vm467_vm13  ;;  %vm475_vm9 = vcmp.eq.s32.totalorder %v6286_v45, %v6466_v53 }
  0xad   : > { %3596 = vmatpush1.bf16.msra.mxu1 %v5749_v46  ;;  %vm5313_vm15 = vmpackc.low %vm472_vm12, %vm468_vm11 }
  0xae   : > { %5183 = vmatmul.mubr.msk.bf16.gmra.mxu0 %vm5182_vm6, %v8645_v25  ;;  %1358 = vperm.xlu0 %5717, %v5981_v15   ;;  %v4670_v15 = vsel %vm469_vm10, 1.0, %v8667_v21  ;;  %vm477_vm6 = vcmp.eq.s32.totalorder %v6277_v41, %v6466_v53  ;;  %v280_v26 = vpop.permute.xlu0 %279 }
  0xaf   : > { %5185 = vmatprep.mubr.msk.bf16.mxu0 %vm5184_vm7, %v8645_v25  ;;  %3883 = vmatpush1.bf16.msra.mxu0 %v5751_v13  ;;  %v1221_v7 = vpack.c.bf16 %v4674_v33, %v4670_v15  ;;  %vm466_vm7 = vcmp.eq.s32.totalorder %v6272_v0, %v6419_v43 }
  0xb0   : > { %5308 = vmatmul.mubr.msk.bf16.gmra.mxu1 %vm5307_vm8, %v8645_v25  ;;  %1361 = vperm.xlu1 %5718, %v5996_v19   ;;  %v6464_v19 = vpop.permute.xlu1 %276  ;;  %vm470_vm8 = vcmp.eq.s32.totalorder %v6272_v0, %v6417_v12 }
  0xb1   : > { %5309 = vmatprep.mubr.msk.bf16.mxu1 %vm2618_vm3, %v1217_v50  ;;  %3597 = vmatprep.subr.bf16.mxu1 %v8668_v3  ;;  %vm481_vm5 = vcmp.eq.s32.totalorder %v6277_v41, %v6464_v19  ;;  %vm479_vm10 = vcmp.eq.s32.totalorder %v6286_v45, %v6464_v19  ;;  %vm5190_vm13 = vmpackc.low %vm470_vm8, %vm466_vm7  ;;  %vm476_vm7 = vcmp.eq.s32.totalorder %v6297_v49, %v6466_v53 }
  0xb2   : > { %1364 = vperm.xlu0 %5717, %v5993_v18   ;;  %3884 = vmatprep.subr.bf16.mxu0 %v8668_v3  ;;  %v5750_v18 = vld [vmem:[%s8621_s2 + $0x18] sm:$0xff]   ;;  %v4682_v4 = vsel %vm481_vm5, 1.0, %v8667_v21  ;;  %vm5192_vm14 = vmpackc.low %vm479_vm10, %vm475_vm9  ;;  %vm483_vm5 = vcmp.eq.s32.totalorder %v6286_v45, %v280_v26  ;;  %vm480_vm8 = vcmp.eq.s32.totalorder %v6297_v49, %v6464_v19  ;;  %v286_v6 = vpop.permute.xlu0 %285 }
  0xb3   : > { %3885 = vmatpush1.bf16.msra.mxu0 %v5754_v16  ;;  %3598 = vmatpush1.bf16.msra.mxu1 %v5750_v18  ;;  %vm5316_vm11 = vmpackc.low %vm480_vm8, %vm476_vm7 }
  0xb4   : > { %1367 = vperm.xlu1 %5718, %v6014_v24   ;;  %3886 = vmatprep.subr.bf16.mxu0 %v8668_v3  ;;  %v5756_v24 = vld [vmem:[%s8621_s2 + $0x98] sm:$0xff]  }
  0xb5   : > { %3599 = vmatprep.subr.bf16.mxu1 %v8668_v3 }
  0xb6   : > { %5187 = vmatmul.mubr.msk.bf16.gmra.mxu0 %vm5186_vm1, %v8645_v25  ;;  %1370 = vperm.xlu0 %5717, %v6011_v23   ;;  %v4678_v23 = vsel %vm477_vm6, 1.0, %v8667_v21  ;;  %vm485_vm1 = vcmp.eq.s32.totalorder %v6277_v41, %v280_v26  ;;  %v6575_v34 = vpop.permute.xlu0 %291 }
  0xb7   : > { %5189 = vmatprep.mubr.msk.bf16.mxu0 %vm5188_vm2, %v8645_v25  ;;  %3887 = vmatpush1.bf16.msra.mxu0 %v5756_v24  ;;  %v1225_v29 = vpack.c.bf16 %v4682_v4, %v4678_v23  ;;  %vm474_vm2 = vcmp.eq.s32.totalorder %v6272_v0, %v6466_v53  ;;  %v8671_v23 = vld [vmem:[#allocation8_spill] sm:$0xff]  ;;  %v5764_v4 = vld [vmem:[%s8621_s2 + $0x50] sm:$0xff]  }
  0xb8   : > { %5311 = vmatmul.mubr.msk.bf16.gmra.mxu1 %vm5310_vm4, %v8645_v25  ;;  %1373 = vperm.xlu1 %5718, %v6030_v28   ;;  %v5759_v28 = vld [vmem:[%s8621_s2 + $0x90] sm:$0xff]   ;;  %vm478_vm4 = vcmp.eq.s32.totalorder %v6272_v0, %v6464_v19 }
  0xb9   : > { %5312 = vmatprep.mubr.msk.bf16.mxu1 %vm2618_vm3, %v1221_v7  ;;  %3888 = vmatprep.subr.bf16.mxu0 %v8668_v3  ;;  %vm5194_vm9 = vmpackc.low %vm478_vm4, %vm474_vm2  ;;  %vm484_vm2 = vcmp.eq.s32.totalorder %v6297_v49, %v280_v26 }
  0xba   : > { %1376 = vperm.xlu0 %5717, %v6027_v27   ;;  %v6509_v27 = vpop.permute.xlu1 %282  ;;  %3600 = vmatpush1.bf16.msra.mxu1 %v5752_v22  ;;  %v6605_v10 = vpop.permute.xlu0 %297  ;;  %v8674_v22 = vld [vmem:[#allocation9_spill] sm:$0xff] }
  0xbb   : > { %3889 = vmatpush1.bf16.msra.mxu0 %v5759_v28  ;;  %vm489_vm0 = vcmp.eq.s32.totalorder %v6277_v41, %v6509_v27  ;;  %vm487_vm6 = vcmp.eq.s32.totalorder %v6286_v45, %v6509_v27  ;;  %3601 = vmatprep.subr.bf16.mxu1 %v8668_v3  ;;  %vm488_vm4 = vcmp.eq.s32.totalorder %v6297_v49, %v6509_v27 }
  0xbc   : > { %1379 = vperm.xlu1 %5718, %v6046_v32   ;;  %v4690_v32 = vsel %vm489_vm0, 1.0, %v8667_v21  ;;  %3890 = vmatprep.subr.bf16.mxu0 %v8668_v3  ;;  %vm5196_vm10 = vmpackc.low %vm487_vm6, %vm483_vm5  ;;  %vm491_vm0 = vcmp.eq.s32.totalorder %v6286_v45, %v286_v6 }
  0xbd   : > { %vm5319_vm7 = vmpackc.low %vm488_vm4, %vm484_vm2 }
  0xbe   : > { %5191 = vmatmul.mubr.msk.bf16.gmra.mxu0 %vm5190_vm13, %v8645_v25  ;;  %1382 = vperm.xlu0 %5717, %v6043_v31   ;;  %v4686_v31 = vsel %vm485_vm1, 1.0, %v8667_v21  ;;  %vm493_vm13 = vcmp.eq.s32.totalorder %v6277_v41, %v286_v6  ;;  %v304_v13 = vpop.permute.xlu0 %303 }
  0xbf   : > { %5193 = vmatprep.mubr.msk.bf16.mxu0 %vm5192_vm14, %v8645_v25  ;;  %v1229_v30 = vpack.c.bf16 %v4690_v32, %v4686_v31  ;;  %vm482_vm14 = vcmp.eq.s32.totalorder %v6272_v0, %v280_v26  ;;  %3891 = vmatpush1.bf16.msra.mxu0 %v5762_v38  ;;  %v8673_v26 = vld [vmem:[#allocation10_spill] sm:$0xff] }
  0xc0   : > { %5314 = vmatmul.mubr.msk.bf16.gmra.mxu1 %vm5313_vm15, %v8645_v25  ;;  %1385 = vperm.xlu1 %5718, %v6062_v36   ;;  %v289_v36 = vpop.permute.xlu1 %288  ;;  %vm486_vm15 = vcmp.eq.s32.totalorder %v6272_v0, %v6509_v27  ;;  %v8672_v27 = vld [vmem:[#allocation7_spill] sm:$0xff]  ;;  %v8681_v38 = vld [vmem:[#allocation18_spill] sm:$0xff] }
  0xc1   : > { %5315 = vmatprep.mubr.msk.bf16.mxu1 %vm2618_vm3, %v1225_v29  ;;  %vm497_vm12 = vcmp.eq.s32.totalorder %v6277_v41, %v289_v36  ;;  %vm495_vm1 = vcmp.eq.s32.totalorder %v6286_v45, %v289_v36  ;;  %vm5198_vm5 = vmpackc.low %vm486_vm15, %vm482_vm14  ;;  %vm492_vm14 = vcmp.eq.s32.totalorder %v6297_v49, %v286_v6  ;;  %vm496_vm15 = vcmp.eq.s32.totalorder %v6297_v49, %v289_v36 }
  0xc2   : > { %1388 = vperm.xlu0 %5717, %v6059_v35   ;;  %v5753_v35 = vld [vmem:[%s8621_s2 + $0x8] sm:$0xff]   ;;  %vm5200_vm6 = vmpackc.low %vm495_vm1, %vm491_vm0  ;;  %3892 = vmatprep.subr.bf16.mxu0 %v8668_v3  ;;  %v310_v43 = vpop.permute.xlu0 %309 }
  0xc3   : > { %3602 = vmatpush1.bf16.msra.mxu1 %v5753_v35  ;;  %vm5322_vm2 = vmpackc.low %vm496_vm15, %vm492_vm14  ;;  %v5766_v35 = vld [vmem:[%s8621_s2 + $0x48] sm:$0xff]  }
  0xc4   : > { %1391 = vperm.xlu1 %5718, %v6078_v40   ;;  %v4698_v40 = vsel %vm497_vm12, 1.0, %v8667_v21  ;;  %3603 = vmatprep.subr.bf16.mxu1 %v8668_v3  ;;  %vm499_vm12 = vcmp.eq.s32.totalorder %v6286_v45, %v6575_v34 }
  0xc6   : > { %5195 = vmatmul.mubr.msk.bf16.gmra.mxu0 %vm5194_vm9, %v8645_v25  ;;  %1394 = vperm.xlu0 %5717, %v6075_v39   ;;  %v4694_v39 = vsel %vm493_vm13, 1.0, %v8667_v21  ;;  %vm501_vm9 = vcmp.eq.s32.totalorder %v6277_v41, %v6575_v34 }
  0xc7   : > { %5197 = vmatprep.mubr.msk.bf16.mxu0 %vm5196_vm10, %v8645_v25  ;;  %v1233_v37 = vpack.c.bf16 %v4698_v40, %v4694_v39  ;;  %vm490_vm10 = vcmp.eq.s32.totalorder %v6272_v0, %v286_v6  ;;  %v8675_v6 = vld [vmem:[#allocation12_spill] sm:$0xff]  ;;  %v8676_v39 = vld [vmem:[#allocation11_spill] sm:$0xff]  ;;  %v8677_v40 = vld [vmem:[#allocation14_spill] sm:$0xff] }
  0xc8   : > { %5317 = vmatmul.mubr.msk.bf16.gmra.mxu1 %vm5316_vm11, %v8645_v25  ;;  %1397 = vperm.xlu1 %5718, %v6094_v44   ;;  %v6573_v44 = vpop.permute.xlu1 %294  ;;  %vm494_vm11 = vcmp.eq.s32.totalorder %v6272_v0, %v289_v36 }
  0xc9   : > { %5318 = vmatprep.mubr.msk.bf16.mxu1 %vm2618_vm3, %v1229_v30  ;;  %vm505_vm8 = vcmp.eq.s32.totalorder %v6277_v41, %v6573_v44  ;;  %vm503_vm13 = vcmp.eq.s32.totalorder %v6286_v45, %v6573_v44  ;;  %vm5202_vm0 = vmpackc.low %vm494_vm11, %vm490_vm10  ;;  %vm500_vm10 = vcmp.eq.s32.totalorder %v6297_v49, %v6575_v34  ;;  %vm504_vm11 = vcmp.eq.s32.totalorder %v6297_v49, %v6573_v44 }
  0xca   : > { %1400 = vperm.xlu0 %5717, %v6086_v42   ;;  %v5755_v42 = vld [vmem:[%s8621_s2] sm:$0xff]   ;;  %vm5204_vm1 = vmpackc.low %vm503_vm13, %vm499_vm12 }
  0xcb   : > { %3604 = vmatpush1.bf16.msra.mxu1 %v5755_v42  ;;  %vm5325_vm14 = vmpackc.low %vm504_vm11, %vm500_vm10 }
  0xcc   : > { %1403 = vperm.xlu1 %5718, %v6108_v48   ;;  %v4706_v48 = vsel %vm505_vm8, 1.0, %v8667_v21  ;;  %3605 = vmatprep.subr.bf16.mxu1 %v8668_v3  ;;  %vm507_vm8 = vcmp.eq.s32.totalorder %v6286_v45, %v6605_v10 }
  0xce   : > { %5199 = vmatmul.mubr.msk.bf16.gmra.mxu0 %vm5198_vm5, %v8645_v25  ;;  %1406 = vperm.xlu0 %5717, %v6105_v47   ;;  %v4702_v47 = vsel %vm501_vm9, 1.0, %v8667_v21  ;;  %vm509_vm5 = vcmp.eq.s32.totalorder %v6277_v41, %v6605_v10 }
  0xcf   : > { %5201 = vmatprep.mubr.msk.bf16.mxu0 %vm5200_vm6, %v8645_v25  ;;  %v1237_v9 = vpack.c.bf16 %v4706_v48, %v4702_v47  ;;  %vm498_vm6 = vcmp.eq.s32.totalorder %v6272_v0, %v6575_v34  ;;  %v8679_v48 = vld [vmem:[#allocation16_spill] sm:$0xff] }
  0xd0   : > { %5320 = vmatmul.mubr.msk.bf16.gmra.mxu1 %vm5319_vm7, %v8645_v25  ;;  %1409 = vperm.xlu1 %5718, %v6124_v52   ;;  %v6603_v52 = vpop.permute.xlu1 %300  ;;  %vm502_vm7 = vcmp.eq.s32.totalorder %v6272_v0, %v6573_v44  ;;  %v8678_v44 = vld [vmem:[#allocation13_spill] sm:$0xff] }
  0xd1   : > { %5321 = vmatprep.mubr.msk.bf16.mxu1 %vm2618_vm3, %v1233_v37  ;;  %vm513_vm4 = vcmp.eq.s32.totalorder %v6277_v41, %v6603_v52  ;;  %vm511_vm9 = vcmp.eq.s32.totalorder %v6286_v45, %v6603_v52  ;;  %vm5206_vm12 = vmpackc.low %vm502_vm7, %vm498_vm6  ;;  %vm508_vm6 = vcmp.eq.s32.totalorder %v6297_v49, %v6605_v10  ;;  %vm512_vm7 = vcmp.eq.s32.totalorder %v6297_v49, %v6603_v52 }
  0xd2   : > { %1412 = vperm.xlu0 %5717, %v6121_v51   ;;  %v5757_v51 = vld [vmem:[%s8621_s2 + $0x78] sm:$0xff]   ;;  %vm5208_vm13 = vmpackc.low %vm511_vm9, %vm507_vm8 }
  0xd3   : > { %3606 = vmatpush2.bf16.msra.mxu1 %v5757_v51  ;;  %vm5328_vm10 = vmpackc.low %vm512_vm7, %vm508_vm6  ;;  %v5767_v51 = vld [vmem:[%s8621_s2 + $0x40] sm:$0xff]  }
  0xd4   : > { %1415 = vperm.xlu1 %5718, %v6139_v55   ;;  %v4714_v55 = vsel %vm513_vm4, 1.0, %v8667_v21  ;;  %3607 = vmatprep.subr.bf16.mxu1 %v8668_v3  ;;  %vm515_vm4 = vcmp.eq.s32.totalorder %v6286_v45, %v304_v13 }
  0xd6   : > { %5203 = vmatmul.mubr.msk.bf16.gmra.mxu0 %vm5202_vm0, %v8645_v25  ;;  %1418 = vperm.xlu0 %5717, %v6134_v54   ;;  %v4710_v54 = vsel %vm509_vm5, 1.0, %v8667_v21  ;;  %vm517_vm0 = vcmp.eq.s32.totalorder %v6277_v41, %v304_v13 }
  0xd7   : > { %5205 = vmatprep.mubr.msk.bf16.mxu0 %vm5204_vm1, %v8645_v25  ;;  %v1241_v12 = vpack.c.bf16 %v4714_v55, %v4710_v54  ;;  %vm506_vm1 = vcmp.eq.s32.totalorder %v6272_v0, %v6605_v10  ;;  %v8680_v10 = vld [vmem:[#allocation15_spill] sm:$0xff]  ;;  %v8682_v54 = vld [vmem:[#allocation17_spill] sm:$0xff] }
  0xd8   : > { %5323 = vmatmul.mubr.msk.bf16.gmra.mxu1 %vm5322_vm2, %v8645_v25  ;;  %1421 = vperm.xlu1 %5718, %v6149_v57   ;;  %v307_v57 = vpop.permute.xlu1 %306  ;;  %vm510_vm2 = vcmp.eq.s32.totalorder %v6272_v0, %v6603_v52 }
  0xd9   : > { %5324 = vmatprep.mubr.msk.bf16.mxu1 %vm2618_vm3, %v1237_v9  ;;  %vm521_vm15 = vcmp.eq.s32.totalorder %v6277_v41, %v307_v57  ;;  %vm519_vm5 = vcmp.eq.s32.totalorder %v6286_v45, %v307_v57  ;;  %vm5210_vm8 = vmpackc.low %vm510_vm2, %vm506_vm1  ;;  %vm516_vm1 = vcmp.eq.s32.totalorder %v6297_v49, %v304_v13  ;;  %vm520_vm2 = vcmp.eq.s32.totalorder %v6297_v49, %v307_v57  ;;  %v5768_v9 = vld [vmem:[%s8621_s2 + $0xc0] sm:$0xff]  }
  0xda   : > { %1424 = vperm.xlu0 %5717, %v6146_v56   ;;  %v5758_v56 = vld [vmem:[%s8621_s2 + $0x70] sm:$0xff]   ;;  %vm5212_vm9 = vmpackc.low %vm519_vm5, %vm515_vm4 }
  0xdb   : > { %3608 = vmatpush2.bf16.msra.mxu1 %v5758_v56  ;;  %vm5331_vm6 = vmpackc.low %vm520_vm2, %vm516_vm1 }
  0xdc   : > { %1427 = vperm.xlu1 %5718, %v6158_v59   ;;  %v4722_v59 = vsel %vm521_vm15, 1.0, %v8667_v21  ;;  %3609 = vmatprep.subr.bf16.mxu1 %v8668_v3  ;;  %vm523_vm15 = vcmp.eq.s32.totalorder %v6286_v45, %v310_v43 }
  0xde   : > { %5207 = vmatmul.mubr.msk.bf16.gmra.mxu0 %vm5206_vm12, %v8645_v25  ;;  %1430 = vperm.xlu0 %5717, %v6155_v58   ;;  %v4718_v58 = vsel %vm517_vm0, 1.0, %v8667_v21  ;;  %vm525_vm12 = vcmp.eq.s32.totalorder %v6277_v41, %v310_v43 }
  0xdf   : > { %5209 = vmatprep.mubr.msk.bf16.mxu0 %vm5208_vm13, %v8645_v25  ;;  %v1245_v46 = vpack.c.bf16 %v4722_v59, %v4718_v58  ;;  %vm514_vm13 = vcmp.eq.s32.totalorder %v6272_v0, %v304_v13  ;;  %v8684_v59 = vld [vmem:[#allocation19_spill] sm:$0xff] }
  0xe0   : > { %5326 = vmatmul.mubr.msk.bf16.gmra.mxu1 %vm5325_vm14, %v8645_v25  ;;  %1433 = vperm.xlu1 %5718, %v6166_v61   ;;  %v313_v61 = vpop.permute.xlu1 %312  ;;  %vm518_vm14 = vcmp.eq.s32.totalorder %v6272_v0, %v307_v57 }
  0xe1   : > { %5327 = vmatprep.mubr.msk.bf16.mxu1 %vm2618_vm3, %v1241_v12  ;;  %vm529_vm11 = vcmp.eq.s32.totalorder %v6277_v41, %v313_v61  ;;  %vm527_vm0 = vcmp.eq.s32.totalorder %v6286_v45, %v313_v61  ;;  %vm5214_vm4 = vmpackc.low %vm518_vm14, %vm514_vm13  ;;  %vm524_vm13 = vcmp.eq.s32.totalorder %v6297_v49, %v310_v43  ;;  %vm528_vm14 = vcmp.eq.s32.totalorder %v6297_v49, %v313_v61  ;;  %v8683_v12 = vld [vmem:[#allocation20_spill] sm:$0xff] }
  0xe2   : > { %1436 = vperm.xlu0 %5717, %v6163_v60   ;;  %v5760_v60 = vld [vmem:[%s8621_s2 + $0x68] sm:$0xff]   ;;  %vm5216_vm5 = vmpackc.low %vm527_vm0, %vm523_vm15 }
  0xe3   : > { %3610 = vmatpush2.bf16.msra.mxu1 %v5760_v60  ;;  %vm5334_vm1 = vmpackc.low %vm528_vm14, %vm524_vm13 }
  0xe4   : > { %1439 = vperm.xlu1 %5718, %v6174_v63   ;;  %v4730_v63 = vsel %vm529_vm11, 1.0, %v8667_v21  ;;  %3611 = vmatprep.subr.bf16.mxu1 %v8668_v3  ;;  %v6692_v50 = vpop.permute.xlu1 %318 }
  0xe5   : > { %vm537_vm7 = vcmp.eq.s32.totalorder %v6277_v41, %v6692_v50 }
  0xe6   : > { %5211 = vmatmul.mubr.msk.bf16.gmra.mxu0 %vm5210_vm8, %v8645_v25  ;;  %1442 = vperm.xlu0 %5717, %v6171_v62   ;;  %v4726_v62 = vsel %vm525_vm12, 1.0, %v8667_v21  ;;  %vm535_vm12 = vcmp.eq.s32.totalorder %v6286_v45, %v6692_v50 }
  0xe7   : > { %5213 = vmatprep.mubr.msk.bf16.mxu0 %vm5212_vm9, %v8645_v25  ;;  %v1249_v16 = vpack.c.bf16 %v4730_v63, %v4726_v62  ;;  %vm522_vm9 = vcmp.eq.s32.totalorder %v6272_v0, %v310_v43  ;;  %v8686_v43 = vld [vmem:[#allocation21_spill] sm:$0xff] }
  0xe8   : > { %5329 = vmatmul.mubr.msk.bf16.gmra.mxu1 %vm5328_vm10, %v8645_v25  ;;  %1445 = vperm.xlu1 %5718, %v6182_v2   ;;  %v6694_v2 = vpop.permute.xlu0 %315  ;;  %vm526_vm10 = vcmp.eq.s32.totalorder %v6272_v0, %v313_v61  ;;  %v6725_v15 = vpop.permute.xlu1 %324  ;;  %v8685_v61 = vld [vmem:[#allocation22_spill] sm:$0xff] }
  0xe9   : > { %5330 = vmatprep.mubr.msk.bf16.mxu1 %vm2618_vm3, %v1245_v46  ;;  %vm533_vm8 = vcmp.eq.s32.totalorder %v6277_v41, %v6694_v2  ;;  %vm531_vm11 = vcmp.eq.s32.totalorder %v6286_v45, %v6694_v2  ;;  %vm5218_vm15 = vmpackc.low %vm526_vm10, %vm522_vm9  ;;  %vm545_vm2 = vcmp.eq.s32.totalorder %v6277_v41, %v6725_v15  ;;  %vm532_vm9 = vcmp.eq.s32.totalorder %v6297_v49, %v6694_v2 }
  0xea   : > { %1448 = vperm.xlu0 %5717, %v6179_v1   ;;  %v5761_v1 = vld [vmem:[%s8621_s2 + $0x60] sm:$0xff]   ;;  %vm5220_vm0 = vmpackc.low %vm535_vm12, %vm531_vm11  ;;  %vm536_vm10 = vcmp.eq.s32.totalorder %v6297_v49, %v6692_v50  ;;  %v4746_v18 = vsel %vm545_vm2, 1.0, %v8667_v21 }
  0xeb   : > { %3612 = vmatpush2.bf16.msra.mxu1 %v5761_v1  ;;  %vm5337_vm13 = vmpackc.low %vm536_vm10, %vm532_vm9 }
  0xec   : > { %1451 = vperm.xlu1 %5718, %v6190_v8   ;;  %v4738_v8 = vsel %vm537_vm7, 1.0, %v8667_v21  ;;  %3613 = vmatprep.subr.bf16.mxu1 %v8668_v3  ;;  %v322_v33 = vpop.permute.xlu0 %321  ;;  %v331_v7 = vpop.permute.xlu1 %330 }
  0xed   : > { %vm539_vm7 = vcmp.eq.s32.totalorder %v6286_v45, %v322_v33  ;;  %vm553_vm14 = vcmp.eq.s32.totalorder %v6277_v41, %v331_v7 }
  0xee   : > { %5215 = vmatmul.mubr.msk.bf16.gmra.mxu0 %vm5214_vm4, %v8645_v25  ;;  %1454 = vperm.xlu0 %5717, %v6187_v5   ;;  %v4734_v5 = vsel %vm533_vm8, 1.0, %v8667_v21  ;;  %vm541_vm4 = vcmp.eq.s32.totalorder %v6277_v41, %v322_v33  ;;  %vm543_vm8 = vcmp.eq.s32.totalorder %v6286_v45, %v6725_v15  ;;  %v4754_v31 = vsel %vm553_vm14, 1.0, %v8667_v21 }
  0xef   : > { %5217 = vmatprep.mubr.msk.bf16.mxu0 %vm5216_vm5, %v8645_v25  ;;  %v1253_v19 = vpack.c.bf16 %v4738_v8, %v4734_v5  ;;  %vm530_vm5 = vcmp.eq.s32.totalorder %v6272_v0, %v6694_v2  ;;  %v4742_v53 = vsel %vm541_vm4, 1.0, %v8667_v21  ;;  %vm5224_vm12 = vmpackc.low %vm543_vm8, %vm539_vm7  ;;  %vm551_vm4 = vcmp.eq.s32.totalorder %v6286_v45, %v331_v7 }
  0xf0   : > { %5332 = vmatmul.mubr.msk.bf16.gmra.mxu1 %vm5331_vm6, %v8645_v25  ;;  %1457 = vperm.xlu1 %5718, %v6198_v14   ;;  %v5765_v14 = vld [vmem:[%s8621_s2 + $0x80] sm:$0xff]   ;;  %vm534_vm6 = vcmp.eq.s32.totalorder %v6272_v0, %v6692_v50  ;;  %v328_v24 = vpop.permute.xlu0 %327  ;;  %v1257_v28 = vpack.c.bf16 %v4746_v18, %v4742_v53  ;;  %v337_v32 = vpop.permute.xlu1 %336 }
  0xf1   : > { %5333 = vmatprep.mubr.msk.bf16.mxu1 %vm2618_vm3, %v1249_v16  ;;  %3893 = vmatpush1.bf16.msra.mxu0 %v5765_v14  ;;  %vm5222_vm11 = vmpackc.low %vm534_vm6, %vm530_vm5  ;;  %vm547_vm2 = vcmp.eq.s32.totalorder %v6286_v45, %v328_v24  ;;  %vm540_vm5 = vcmp.eq.s32.totalorder %v6297_v49, %v322_v33  ;;  %vm544_vm6 = vcmp.eq.s32.totalorder %v6297_v49, %v6725_v15 }
  0xf2   : > { %1460 = vperm.xlu0 %5717, %v6195_v11   ;;  %v5763_v11 = vld [vmem:[%s8621_s2 + $0x58] sm:$0xff]   ;;  %3908 = vmatprep.subr.bf16.mxu0 %v8668_v3  ;;  %vm5228_vm8 = vmpackc.low %vm551_vm4, %vm547_vm2  ;;  %vm561_vm10 = vcmp.eq.s32.totalorder %v6277_v41, %v337_v32 }
  0xf3   : > { %3614 = vmatpush2.bf16.msra.mxu1 %v5763_v11  ;;  %vm5340_vm9 = vmpackc.low %vm544_vm6, %vm540_vm5  ;;  %v4762_v42 = vsel %vm561_vm10, 1.0, %v8667_v21 }
  0xf4   : > { %1463 = vperm.xlu1 %5718, %v6206_v20   ;;  %v8669_v20 = vld [vmem:[#allocation6_spill] sm:$0xff]  ;;  %3615 = vmatprep.subr.bf16.mxu1 %v8668_v3  ;;  %v334_v36 = vpop.permute.xlu0 %333  ;;  %v343_v37 = vpop.permute.xlu1 %342 }
  0xf5   : > { %vm555_vm14 = vcmp.eq.s32.totalorder %v6286_v45, %v334_v36  ;;  %vm569_vm6 = vcmp.eq.s32.totalorder %v6277_v41, %v343_v37  ;;  %3909 = vmatpush2.bf16.msra.mxu0 %v5768_v9 }
  0xf6   : > { %5219 = vmatmul.mubr.msk.bf16.gmra.mxu0 %vm5218_vm15, %v8645_v25  ;;  %1466 = vperm.xlu0 %5717, %v6203_v17   ;;  %v8670_v17 = vld [vmem:[#allocation5_spill] sm:$0xff]  ;;  %vm549_vm15 = vcmp.eq.s32.totalorder %v6277_v41, %v328_v24  ;;  %v4770_v57 = vsel %vm569_vm6, 1.0, %v8667_v21 }
  0xf7   : > { %5221 = vmatprep.mubr.msk.bf16.mxu0 %vm5220_vm0, %v8645_v25  ;;  %vm538_vm0 = vcmp.eq.s32.totalorder %v6272_v0, %v322_v33  ;;  %3616 = vmatpush2.bf16.msra.mxu1 %v5764_v4  ;;  %v4750_v29 = vsel %vm549_vm15, 1.0, %v8667_v21  ;;  %vm559_vm15 = vcmp.eq.s32.totalorder %v6286_v45, %v337_v32 }
  0xf8   : > { %5335 = vmatmul.mubr.msk.bf16.gmra.mxu1 %vm5334_vm1, %v8645_v25  ;;  %1469 = vperm.xlu1 %5718, %v8669_v20   ;;  %vm542_vm1 = vcmp.eq.s32.totalorder %v6272_v0, %v6725_v15  ;;  %v1261_v30 = vpack.c.bf16 %v4754_v31, %v4750_v29  ;;  %v340_v47 = vpop.permute.xlu0 %339  ;;  %vm5232_vm4 = vmpackc.low %vm559_vm15, %vm555_vm14  ;;  %v349_v13 = vpop.permute.xlu1 %348 }
  0xf9   : > { %5336 = vmatprep.mubr.msk.bf16.mxu1 %vm2618_vm3, %v1253_v19  ;;  %3617 = vmatprep.subr.bf16.mxu1 %v8668_v3  ;;  %vm5226_vm7 = vmpackc.low %vm542_vm1, %vm538_vm0  ;;  %vm548_vm0 = vcmp.eq.s32.totalorder %v6297_v49, %v328_v24  ;;  %vm552_vm1 = vcmp.eq.s32.totalorder %v6297_v49, %v331_v7  ;;  %vm563_vm10 = vcmp.eq.s32.totalorder %v6286_v45, %v340_v47 }
  0xfa   : > { %1472 = vperm.xlu0 %5717, %v8670_v17   ;;  %vm5343_vm5 = vmpackc.low %vm552_vm1, %vm548_vm0  ;;  %vm577_vm1 = vcmp.eq.s32.totalorder %v6277_v41, %v349_v13 }
  0xfb   : > { %3618 = vmatpush2.bf16.msra.mxu1 %v5766_v35  ;;  %v4778_v46 = vsel %vm577_vm1, 1.0, %v8667_v21 }
  0xfc   : > { %1475 = vperm.xlu1 %5718, %v8671_v23   ;;  %3619 = vmatprep.subr.bf16.mxu1 %v8668_v3  ;;  %v346_v56 = vpop.permute.xlu0 %345  ;;  %v355_v62 = vpop.permute.xlu1 %354 }
  0xfd   : > { %vm571_vm6 = vcmp.eq.s32.totalorder %v6286_v45, %v346_v56 }
  0xfe   : > { %5223 = vmatmul.mubr.msk.bf16.gmra.mxu0 %vm5222_vm11, %v8645_v25  ;;  %1478 = vperm.xlu0 %5717, %v8672_v27   ;;  %vm557_vm11 = vcmp.eq.s32.totalorder %v6277_v41, %v334_v36 }
  0xff   : > { %5225 = vmatprep.mubr.msk.bf16.mxu0 %vm5224_vm12, %v8645_v25  ;;  %vm546_vm12 = vcmp.eq.s32.totalorder %v6272_v0, %v328_v24  ;;  %v4758_v34 = vsel %vm557_vm11, 1.0, %v8667_v21  ;;  %vm567_vm11 = vcmp.eq.s32.totalorder %v6286_v45, %v343_v37  ;;  %3620 = vmatpush2.bf16.msra.mxu1 %v5767_v51 }
 0x100   : > { %5338 = vmatmul.mubr.msk.bf16.gmra.mxu1 %vm5337_vm13, %v8645_v25  ;;  %1481 = vperm.xlu1 %5718, %v8673_v26   ;;  %vm550_vm13 = vcmp.eq.s32.totalorder %v6272_v0, %v331_v7  ;;  %v1265_v52 = vpack.c.bf16 %v4762_v42, %v4758_v34  ;;  %vm5236_vm15 = vmpackc.low %vm567_vm11, %vm563_vm10  ;;  %v352_v63 = vpop.permute.xlu0 %351  ;;  %v361_v16 = vpop.permute.xlu1 %360 }
 0x101   : > { %5339 = vmatprep.mubr.msk.bf16.mxu1 %vm2618_vm3, %v1257_v28  ;;  %vm5230_vm2 = vmpackc.low %vm550_vm13, %vm546_vm12  ;;  %vm556_vm12 = vcmp.eq.s32.totalorder %v6297_v49, %v334_v36  ;;  %vm560_vm13 = vcmp.eq.s32.totalorder %v6297_v49, %v337_v32  ;;  %5651 = vmatprep.subr.bf16.mxu1 %v8668_v3  ;;  %vm579_vm1 = vcmp.eq.s32.totalorder %v6286_v45, %v352_v63 }
 0x102   : > { %1484 = vperm.xlu0 %5717, %v8674_v22   ;;  %vm5346_vm0 = vmpackc.low %vm560_vm13, %vm556_vm12  ;;  %vm585_vm13 = vcmp.eq.s32.totalorder %v6277_v41, %v355_v62 }
 0x103   : > { %v4786_v1 = vsel %vm585_vm13, 1.0, %v8667_v21 }
 0x104   : > { %1487 = vperm.xlu1 %5718, %v8675_v6   ;;  %v358_v5 = vpop.permute.xlu0 %357  ;;  %v367_v33 = vpop.permute.xlu1 %366 }
 0x105   : > { %vm587_vm13 = vcmp.eq.s32.totalorder %v6286_v45, %v358_v5 }
 0x106   : > { %5227 = vmatmul.mubr.msk.bf16.gmra.mxu0 %vm5226_vm7, %v8645_v25  ;;  %1490 = vperm.xlu0 %5717, %v8676_v39   ;;  %vm565_vm7 = vcmp.eq.s32.totalorder %v6277_v41, %v340_v47 }
 0x107   : > { %5229 = vmatprep.mubr.msk.bf16.mxu0 %vm5228_vm8, %v8645_v25  ;;  %vm554_vm8 = vcmp.eq.s32.totalorder %v6272_v0, %v334_v36  ;;  %v4766_v55 = vsel %vm565_vm7, 1.0, %v8667_v21  ;;  %vm575_vm7 = vcmp.eq.s32.totalorder %v6286_v45, %v349_v13 }
 0x108   : > { %5341 = vmatmul.mubr.msk.bf16.gmra.mxu1 %vm5340_vm9, %v8645_v25  ;;  %1493 = vperm.xlu1 %5718, %v8677_v40   ;;  %vm558_vm9 = vcmp.eq.s32.totalorder %v6272_v0, %v337_v32  ;;  %v1269_v58 = vpack.c.bf16 %v4770_v57, %v4766_v55  ;;  %vm5240_vm11 = vmpackc.low %vm575_vm7, %vm571_vm6  ;;  %v364_v11 = vpop.permute.xlu0 %363  ;;  %v373_v53 = vpop.permute.xlu1 %372 }
 0x109   : > { %5342 = vmatprep.mubr.msk.bf16.mxu1 %vm2618_vm3, %v1261_v30  ;;  %vm5234_vm14 = vmpackc.low %vm558_vm9, %vm554_vm8  ;;  %vm564_vm8 = vcmp.eq.s32.totalorder %v6297_v49, %v340_v47  ;;  %vm568_vm9 = vcmp.eq.s32.totalorder %v6297_v49, %v343_v37 }
 0x10a   : > { %1496 = vperm.xlu0 %5717, %v8678_v44   ;;  %vm5349_vm12 = vmpackc.low %vm568_vm9, %vm564_vm8  ;;  %vm593_vm9 = vcmp.eq.s32.totalorder %v6277_v41, %v361_v16 }
 0x10b   : > { %v4794_v15 = vsel %vm593_vm9, 1.0, %v8667_v21  ;;  %vm595_vm9 = vcmp.eq.s32.totalorder %v6286_v45, %v364_v11 }
 0x10c   : > { %1499 = vperm.xlu1 %5718, %v8679_v48   ;;  %v370_v18 = vpop.permute.xlu0 %369  ;;  %v379_v4 = vpop.permute.xlu1 %378 }
 0x10e   : > { %5231 = vmatmul.mubr.msk.bf16.gmra.mxu0 %vm5230_vm2, %v8645_v25  ;;  %1502 = vperm.xlu0 %5717, %v8680_v10   ;;  %vm573_vm2 = vcmp.eq.s32.totalorder %v6277_v41, %v346_v56 }
 0x10f   : > { %5233 = vmatprep.mubr.msk.bf16.mxu0 %vm5232_vm4, %v8645_v25  ;;  %vm562_vm4 = vcmp.eq.s32.totalorder %v6272_v0, %v340_v47  ;;  %v4774_v60 = vsel %vm573_vm2, 1.0, %v8667_v21  ;;  %vm583_vm2 = vcmp.eq.s32.totalorder %v6286_v45, %v355_v62 }
 0x110   : > { %5344 = vmatmul.mubr.msk.bf16.gmra.mxu1 %vm5343_vm5, %v8645_v25  ;;  %1505 = vperm.xlu1 %5718, %v8681_v38   ;;  %vm566_vm5 = vcmp.eq.s32.totalorder %v6272_v0, %v343_v37  ;;  %v1273_v50 = vpack.c.bf16 %v4778_v46, %v4774_v60  ;;  %vm5244_vm7 = vmpackc.low %vm583_vm2, %vm579_vm1  ;;  %v376_v28 = vpop.permute.xlu0 %375  ;;  %v385_v29 = vpop.permute.xlu1 %384 }
 0x111   : > { %5345 = vmatprep.mubr.msk.bf16.mxu1 %vm2618_vm3, %v1265_v52  ;;  %vm5238_vm10 = vmpackc.low %vm566_vm5, %vm562_vm4  ;;  %vm572_vm4 = vcmp.eq.s32.totalorder %v6297_v49, %v346_v56  ;;  %vm576_vm5 = vcmp.eq.s32.totalorder %v6297_v49, %v349_v13 }
 0x112   : > { %1508 = vperm.xlu0 %5717, %v8682_v54   ;;  %vm5352_vm8 = vmpackc.low %vm576_vm5, %vm572_vm4  ;;  %vm601_vm5 = vcmp.eq.s32.totalorder %v6277_v41, %v367_v33 }
 0x113   : > { %v4802_v17 = vsel %vm601_vm5, 1.0, %v8667_v21  ;;  %vm603_vm5 = vcmp.eq.s32.totalorder %v6286_v45, %v370_v18 }
 0x114   : > { %1511 = vperm.xlu1 %5718, %v8683_v12   ;;  %v382_v31 = vpop.permute.xlu0 %381  ;;  %v391_v35 = vpop.permute.xlu1 %390 }
 0x116   : > { %5235 = vmatmul.mubr.msk.bf16.gmra.mxu0 %vm5234_vm14, %v8645_v25  ;;  %1514 = vperm.xlu0 %5717, %v8684_v59   ;;  %vm581_vm14 = vcmp.eq.s32.totalorder %v6277_v41, %v352_v63 }
 0x117   : > { %5237 = vmatprep.mubr.msk.bf16.mxu0 %vm5236_vm15, %v8645_v25  ;;  %vm570_vm15 = vcmp.eq.s32.totalorder %v6272_v0, %v346_v56  ;;  %v4782_v2 = vsel %vm581_vm14, 1.0, %v8667_v21  ;;  %vm591_vm14 = vcmp.eq.s32.totalorder %v6286_v45, %v361_v16 }
 0x118   : > { %5347 = vmatmul.mubr.msk.bf16.gmra.mxu1 %vm5346_vm0, %v8645_v25  ;;  %1517 = vperm.xlu1 %5718, %v8685_v61   ;;  %vm574_vm0 = vcmp.eq.s32.totalorder %v6272_v0, %v349_v13  ;;  %v1277_v8 = vpack.c.bf16 %v4786_v1, %v4782_v2  ;;  %vm5248_vm2 = vmpackc.low %vm591_vm14, %vm587_vm13  ;;  %v388_v30 = vpop.permute.xlu0 %387  ;;  %v397_v34 = vpop.permute.xlu1 %396 }
 0x119   : > { %5348 = vmatprep.mubr.msk.bf16.mxu1 %vm2618_vm3, %v1269_v58  ;;  %vm5242_vm6 = vmpackc.low %vm574_vm0, %vm570_vm15  ;;  %vm580_vm15 = vcmp.eq.s32.totalorder %v6297_v49, %v352_v63  ;;  %vm584_vm0 = vcmp.eq.s32.totalorder %v6297_v49, %v355_v62 }
 0x11a   : > { %1520 = vperm.xlu0 %5717, %v8686_v43   ;;  %vm5355_vm4 = vmpackc.low %vm584_vm0, %vm580_vm15  ;;  %vm609_vm0 = vcmp.eq.s32.totalorder %v6277_v41, %v373_v53 }
 0x11b   : > { %v4810_v23 = vsel %vm609_vm0, 1.0, %v8667_v21  ;;  %vm611_vm0 = vcmp.eq.s32.totalorder %v6286_v45, %v376_v28 }
 0x11c   : > { %v394_v42 = vpop.permute.xlu0 %393  ;;  %v6957_v52 = vpop.permute.xlu1 %402 }
 0x11e   : > { %5239 = vmatmul.mubr.msk.bf16.gmra.mxu0 %vm5238_vm10, %v8645_v25  ;;  %vm589_vm10 = vcmp.eq.s32.totalorder %v6277_v41, %v358_v5 }
 0x11f   : > { %5241 = vmatprep.mubr.msk.bf16.mxu0 %vm5240_vm11, %v8645_v25  ;;  %vm578_vm11 = vcmp.eq.s32.totalorder %v6272_v0, %v352_v63  ;;  %v4790_v14 = vsel %vm589_vm10, 1.0, %v8667_v21  ;;  %vm599_vm10 = vcmp.eq.s32.totalorder %v6286_v45, %v367_v33 }
 0x120   : > { %5350 = vmatmul.mubr.msk.bf16.gmra.mxu1 %vm5349_vm12, %v8645_v25  ;;  %vm582_vm12 = vcmp.eq.s32.totalorder %v6272_v0, %v355_v62  ;;  %v1281_v19 = vpack.c.bf16 %v4794_v15, %v4790_v14  ;;  %vm5252_vm14 = vmpackc.low %vm599_vm10, %vm595_vm9  ;;  %v6959_v10 = vpop.permute.xlu0 %399  ;;  %v6981_v61 = vpop.permute.xlu1 %408 }
 0x121   : > { %5351 = vmatprep.mubr.msk.bf16.mxu1 %vm2618_vm3, %v1273_v50  ;;  %vm5246_vm1 = vmpackc.low %vm582_vm12, %vm578_vm11  ;;  %vm588_vm11 = vcmp.eq.s32.totalorder %v6297_v49, %v358_v5  ;;  %vm592_vm12 = vcmp.eq.s32.totalorder %v6297_v49, %v361_v16 }
 0x122   : > { %vm5358_vm15 = vmpackc.low %vm592_vm12, %vm588_vm11  ;;  %vm617_vm12 = vcmp.eq.s32.totalorder %v6277_v41, %v379_v4 }
 0x123   : > { %v4818_v22 = vsel %vm617_vm12, 1.0, %v8667_v21  ;;  %vm619_vm12 = vcmp.eq.s32.totalorder %v6286_v45, %v382_v31 }
 0x124   : > { %v6983_v43 = vpop.permute.xlu0 %405 }
 0x126   : > { %5243 = vmatmul.mubr.msk.bf16.gmra.mxu0 %vm5242_vm6, %v8645_v25  ;;  %vm597_vm6 = vcmp.eq.s32.totalorder %v6277_v41, %v364_v11 }
 0x127   : > { %5245 = vmatprep.mubr.msk.bf16.mxu0 %vm5244_vm7, %v8645_v25  ;;  %vm586_vm7 = vcmp.eq.s32.totalorder %v6272_v0, %v358_v5  ;;  %v4798_v20 = vsel %vm597_vm6, 1.0, %v8667_v21  ;;  %vm607_vm6 = vcmp.eq.s32.totalorder %v6286_v45, %v373_v53 }
 0x128   : > { %5353 = vmatmul.mubr.msk.bf16.gmra.mxu1 %vm5352_vm8, %v8645_v25  ;;  %vm590_vm8 = vcmp.eq.s32.totalorder %v6272_v0, %v361_v16  ;;  %v1285_v7 = vpack.c.bf16 %v4802_v17, %v4798_v20  ;;  %vm5256_vm10 = vmpackc.low %vm607_vm6, %vm603_vm5 }
 0x129   : > { %5354 = vmatprep.mubr.msk.bf16.mxu1 %vm2618_vm3, %v1277_v8  ;;  %vm5250_vm13 = vmpackc.low %vm590_vm8, %vm586_vm7  ;;  %vm596_vm7 = vcmp.eq.s32.totalorder %v6297_v49, %v364_v11  ;;  %vm600_vm8 = vcmp.eq.s32.totalorder %v6297_v49, %v367_v33 }
 0x12a   : > { %vm5361_vm11 = vmpackc.low %vm600_vm8, %vm596_vm7  ;;  %vm625_vm8 = vcmp.eq.s32.totalorder %v6277_v41, %v385_v29 }
 0x12b   : > { %v4826_v6 = vsel %vm625_vm8, 1.0, %v8667_v21  ;;  %vm627_vm8 = vcmp.eq.s32.totalorder %v6286_v45, %v388_v30 }
 0x12e   : > { %5247 = vmatmul.mubr.msk.bf16.gmra.mxu0 %vm5246_vm1, %v8645_v25  ;;  %vm605_vm1 = vcmp.eq.s32.totalorder %v6277_v41, %v370_v18 }
 0x12f   : > { %5249 = vmatprep.mubr.msk.bf16.mxu0 %vm5248_vm2, %v8645_v25  ;;  %vm594_vm2 = vcmp.eq.s32.totalorder %v6272_v0, %v364_v11  ;;  %v4806_v24 = vsel %vm605_vm1, 1.0, %v8667_v21  ;;  %vm615_vm1 = vcmp.eq.s32.totalorder %v6286_v45, %v379_v4  ;;  %v7014_v11 = vpop.permute.xlu1 %414 }
 0x130   : > { %5356 = vmatmul.mubr.msk.bf16.gmra.mxu1 %vm5355_vm4, %v8645_v25  ;;  %vm598_vm4 = vcmp.eq.s32.totalorder %v6272_v0, %v367_v33  ;;  %v1289_v27 = vpack.c.bf16 %v4810_v23, %v4806_v24  ;;  %vm5260_vm6 = vmpackc.low %vm615_vm1, %vm611_vm0 }
 0x131   : > { %5357 = vmatprep.mubr.msk.bf16.mxu1 %vm2618_vm3, %v1281_v19  ;;  %vm5254_vm9 = vmpackc.low %vm598_vm4, %vm594_vm2  ;;  %vm604_vm2 = vcmp.eq.s32.totalorder %v6297_v49, %v370_v18  ;;  %vm608_vm4 = vcmp.eq.s32.totalorder %v6297_v49, %v373_v53  ;;  %v7016_v19 = vpop.permute.xlu0 %411 }
 0x132   : > { %vm5364_vm7 = vmpackc.low %vm608_vm4, %vm604_vm2  ;;  %vm633_vm4 = vcmp.eq.s32.totalorder %v6277_v41, %v391_v35 }
 0x133   : > { %v4834_v44 = vsel %vm633_vm4, 1.0, %v8667_v21  ;;  %vm635_vm4 = vcmp.eq.s32.totalorder %v6286_v45, %v394_v42 }
 0x136   : > { %5251 = vmatmul.mubr.msk.bf16.gmra.mxu0 %vm5250_vm13, %v8645_v25  ;;  %vm613_vm13 = vcmp.eq.s32.totalorder %v6277_v41, %v376_v28 }
 0x137   : > { %5253 = vmatprep.mubr.msk.bf16.mxu0 %vm5252_vm14, %v8645_v25  ;;  %vm602_vm14 = vcmp.eq.s32.totalorder %v6272_v0, %v370_v18  ;;  %v4814_v26 = vsel %vm613_vm13, 1.0, %v8667_v21  ;;  %vm623_vm13 = vcmp.eq.s32.totalorder %v6286_v45, %v385_v29 }
 0x138   : > { %5359 = vmatmul.mubr.msk.bf16.gmra.mxu1 %vm5358_vm15, %v8645_v25  ;;  %vm606_vm15 = vcmp.eq.s32.totalorder %v6272_v0, %v373_v53  ;;  %v1293_v32 = vpack.c.bf16 %v4818_v22, %v4814_v26  ;;  %vm5264_vm1 = vmpackc.low %vm623_vm13, %vm619_vm12 }
 0x139   : > { %5360 = vmatprep.mubr.msk.bf16.mxu1 %vm2618_vm3, %v1285_v7  ;;  %vm5258_vm5 = vmpackc.low %vm606_vm15, %vm602_vm14  ;;  %vm612_vm14 = vcmp.eq.s32.totalorder %v6297_v49, %v376_v28  ;;  %vm616_vm15 = vcmp.eq.s32.totalorder %v6297_v49, %v379_v4 }
 0x13a   : > { %vm5367_vm2 = vmpackc.low %vm616_vm15, %vm612_vm14  ;;  %vm641_vm15 = vcmp.eq.s32.totalorder %v6277_v41, %v397_v34 }
 0x13b   : > { %v4842_v48 = vsel %vm641_vm15, 1.0, %v8667_v21  ;;  %vm643_vm15 = vcmp.eq.s32.totalorder %v6286_v45, %v6959_v10 }
 0x13e   : > { %5255 = vmatmul.mubr.msk.bf16.gmra.mxu0 %vm5254_vm9, %v8645_v25  ;;  %vm621_vm9 = vcmp.eq.s32.totalorder %v6277_v41, %v382_v31 }
 0x13f   : > { %5257 = vmatprep.mubr.msk.bf16.mxu0 %vm5256_vm10, %v8645_v25  ;;  %vm610_vm10 = vcmp.eq.s32.totalorder %v6272_v0, %v376_v28  ;;  %v4822_v36 = vsel %vm621_vm9, 1.0, %v8667_v21  ;;  %vm631_vm9 = vcmp.eq.s32.totalorder %v6286_v45, %v391_v35 }
 0x140   : > { %5362 = vmatmul.mubr.msk.bf16.gmra.mxu1 %vm5361_vm11, %v8645_v25  ;;  %vm614_vm11 = vcmp.eq.s32.totalorder %v6272_v0, %v379_v4  ;;  %v1297_v39 = vpack.c.bf16 %v4826_v6, %v4822_v36  ;;  %vm5268_vm13 = vmpackc.low %vm631_vm9, %vm627_vm8 }
 0x141   : > { %5363 = vmatprep.mubr.msk.bf16.mxu1 %vm2618_vm3, %v1289_v27  ;;  %vm5262_vm0 = vmpackc.low %vm614_vm11, %vm610_vm10  ;;  %vm620_vm10 = vcmp.eq.s32.totalorder %v6297_v49, %v382_v31  ;;  %vm624_vm11 = vcmp.eq.s32.totalorder %v6297_v49, %v385_v29 }
 0x142   : > { %vm5370_vm14 = vmpackc.low %vm624_vm11, %vm620_vm10  ;;  %vm649_vm11 = vcmp.eq.s32.totalorder %v6277_v41, %v6957_v52 }
 0x143   : > { %v4850_v59 = vsel %vm649_vm11, 1.0, %v8667_v21  ;;  %vm651_vm11 = vcmp.eq.s32.totalorder %v6286_v45, %v6983_v43 }
 0x146   : > { %5259 = vmatmul.mubr.msk.bf16.gmra.mxu0 %vm5258_vm5, %v8645_v25  ;;  %vm629_vm5 = vcmp.eq.s32.totalorder %v6277_v41, %v388_v30 }
 0x147   : > { %5261 = vmatprep.mubr.msk.bf16.mxu0 %vm5260_vm6, %v8645_v25  ;;  %vm618_vm6 = vcmp.eq.s32.totalorder %v6272_v0, %v382_v31  ;;  %v4830_v40 = vsel %vm629_vm5, 1.0, %v8667_v21  ;;  %vm639_vm5 = vcmp.eq.s32.totalorder %v6286_v45, %v397_v34  ;;  %v7047_v31 = vpop.permute.xlu1 %420 }
 0x148   : > { %5365 = vmatmul.mubr.msk.bf16.gmra.mxu1 %vm5364_vm7, %v8645_v25  ;;  %vm622_vm7 = vcmp.eq.s32.totalorder %v6272_v0, %v385_v29  ;;  %v1301_v37 = vpack.c.bf16 %v4834_v44, %v4830_v40  ;;  %vm5272_vm9 = vmpackc.low %vm639_vm5, %vm635_vm4 }
 0x149   : > { %5366 = vmatprep.mubr.msk.bf16.mxu1 %vm2618_vm3, %v1293_v32  ;;  %vm5266_vm12 = vmpackc.low %vm622_vm7, %vm618_vm6  ;;  %vm628_vm6 = vcmp.eq.s32.totalorder %v6297_v49, %v388_v30  ;;  %vm632_vm7 = vcmp.eq.s32.totalorder %v6297_v49, %v391_v35  ;;  %v7049_v32 = vpop.permute.xlu0 %417 }
 0x14a   : > { %vm5373_vm10 = vmpackc.low %vm632_vm7, %vm628_vm6  ;;  %vm657_vm7 = vcmp.eq.s32.totalorder %v6277_v41, %v6981_v61 }
 0x14b   : > { %v4858_v33 = vsel %vm657_vm7, 1.0, %v8667_v21  ;;  %vm659_vm7 = vcmp.eq.s32.totalorder %v6286_v45, %v7016_v19 }
 0x14e   : > { %5263 = vmatmul.mubr.msk.bf16.gmra.mxu0 %vm5262_vm0, %v8645_v25  ;;  %vm637_vm0 = vcmp.eq.s32.totalorder %v6277_v41, %v394_v42 }
 0x14f   : > { %5265 = vmatprep.mubr.msk.bf16.mxu0 %vm5264_vm1, %v8645_v25  ;;  %vm626_vm1 = vcmp.eq.s32.totalorder %v6272_v0, %v388_v30  ;;  %v4838_v47 = vsel %vm637_vm0, 1.0, %v8667_v21  ;;  %vm647_vm0 = vcmp.eq.s32.totalorder %v6286_v45, %v6957_v52 }
 0x150   : > { %5368 = vmatmul.mubr.msk.bf16.gmra.mxu1 %vm5367_vm2, %v8645_v25  ;;  %vm630_vm2 = vcmp.eq.s32.totalorder %v6272_v0, %v391_v35  ;;  %v1305_v9 = vpack.c.bf16 %v4842_v48, %v4838_v47  ;;  %vm5276_vm5 = vmpackc.low %vm647_vm0, %vm643_vm15 }
 0x151   : > { %5369 = vmatprep.mubr.msk.bf16.mxu1 %vm2618_vm3, %v1297_v39  ;;  %vm5270_vm8 = vmpackc.low %vm630_vm2, %vm626_vm1  ;;  %vm636_vm1 = vcmp.eq.s32.totalorder %v6297_v49, %v394_v42  ;;  %vm640_vm2 = vcmp.eq.s32.totalorder %v6297_v49, %v397_v34 }
 0x152   : > { %vm5376_vm6 = vmpackc.low %vm640_vm2, %vm636_vm1  ;;  %vm665_vm2 = vcmp.eq.s32.totalorder %v6277_v41, %v7014_v11 }
 0x153   : > { %v4866_v29 = vsel %vm665_vm2, 1.0, %v8667_v21  ;;  %vm667_vm2 = vcmp.eq.s32.totalorder %v6286_v45, %v7049_v32 }
 0x156   : > { %5267 = vmatmul.mubr.msk.bf16.gmra.mxu0 %vm5266_vm12, %v8645_v25  ;;  %vm645_vm12 = vcmp.eq.s32.totalorder %v6277_v41, %v6959_v10 }
 0x157   : > { %5269 = vmatprep.mubr.msk.bf16.mxu0 %vm5268_vm13, %v8645_v25  ;;  %vm634_vm13 = vcmp.eq.s32.totalorder %v6272_v0, %v394_v42  ;;  %v4846_v58 = vsel %vm645_vm12, 1.0, %v8667_v21  ;;  %vm655_vm12 = vcmp.eq.s32.totalorder %v6286_v45, %v6981_v61 }
 0x158   : > { %5371 = vmatmul.mubr.msk.bf16.gmra.mxu1 %vm5370_vm14, %v8645_v25  ;;  %vm638_vm14 = vcmp.eq.s32.totalorder %v6272_v0, %v397_v34  ;;  %v1309_v63 = vpack.c.bf16 %v4850_v59, %v4846_v58  ;;  %vm5280_vm0 = vmpackc.low %vm655_vm12, %vm651_vm11 }
 0x159   : > { %5372 = vmatprep.mubr.msk.bf16.mxu1 %vm2618_vm3, %v1301_v37  ;;  %vm5274_vm4 = vmpackc.low %vm638_vm14, %vm634_vm13  ;;  %vm644_vm13 = vcmp.eq.s32.totalorder %v6297_v49, %v6959_v10  ;;  %vm648_vm14 = vcmp.eq.s32.totalorder %v6297_v49, %v6957_v52 }
 0x15a   : > { %vm5379_vm1 = vmpackc.low %vm648_vm14, %vm644_vm13  ;;  %vm673_vm14 = vcmp.eq.s32.totalorder %v6277_v41, %v7047_v31 }
 0x15e   : > { %v2749_v51 = vpop.f32.mrf.mxu0  ;;  %5271 = vmatmul.mubr.msk.bf16.gmra.mxu0 %vm5270_vm8, %v8645_v25  ;;  %vm653_vm8 = vcmp.eq.s32.totalorder %v6277_v41, %v6983_v43 }
 0x15f   : > { %5273 = vmatprep.mubr.msk.bf16.mxu0 %vm5272_vm9, %v8645_v25  ;;  %vm642_vm9 = vcmp.eq.s32.totalorder %v6272_v0, %v6959_v10  ;;  %v4854_v15 = vsel %vm653_vm8, 1.0, %v8667_v21  ;;  %vm663_vm8 = vcmp.eq.s32.totalorder %v6286_v45, %v7014_v11  ;;  %v7080_v10 = vpop.permute.xlu1 %426 }
 0x160   : > { %v2751_v38 = vpop.f32.mrf.mxu0  ;;  %v3038_v54 = vpop.f32.mrf.mxu1  ;;  %5374 = vmatmul.mubr.msk.bf16.gmra.mxu1 %vm5373_vm10, %v8645_v25  ;;  %vm646_vm10 = vcmp.eq.s32.totalorder %v6272_v0, %v6957_v52  ;;  %v1313_v18 = vpack.c.bf16 %v4858_v33, %v4854_v15  ;;  %vm5284_vm12 = vmpackc.low %vm663_vm8, %vm659_vm7  ;;  %v4874_v52 = vsel %vm673_vm14, 1.0, %v8667_v21 }
 0x161   : > { %v6968_v55 = vadd.f32 %v3038_v54, %v2749_v51  ;;  %5375 = vmatprep.mubr.msk.bf16.mxu1 %vm2618_vm3, %v1305_v9  ;;  %vm5278_vm15 = vmpackc.low %vm646_vm10, %vm642_vm9  ;;  %vm652_vm9 = vcmp.eq.s32.totalorder %v6297_v49, %v6983_v43  ;;  %vm656_vm10 = vcmp.eq.s32.totalorder %v6297_v49, %v6981_v61  ;;  %v7082_v51 = vpop.permute.xlu0 %423 }
 0x162   : > { %v2752_v57 = vpop.f32.mrf.mxu0  ;;  %v3040_v13 = vpop.f32.mrf.mxu1  ;;  %vm5382_vm13 = vmpackc.low %vm656_vm10, %vm652_vm9  ;;  %vm681_vm10 = vcmp.eq.s32.totalorder %v6277_v41, %v7080_v10  ;;  %vm675_vm14 = vcmp.eq.s32.totalorder %v6286_v45, %v7082_v51 }
 0x164   : > { %v2754_v56 = vpop.f32.mrf.mxu0  ;;  %v3041_v12 = vpop.f32.mrf.mxu1 }
 0x165   : > { %v6985_v60 = vadd.f32 %v3041_v12, %v2752_v57 }
 0x166   : > { %v2757_v46 = vpop.f32.mrf.mxu0  ;;  %5275 = vmatmul.mubr.msk.bf16.gmra.mxu0 %vm5274_vm4, %v8645_v25  ;;  %v3043_v62 = vpop.f32.mrf.mxu1  ;;  %vm661_vm4 = vcmp.eq.s32.totalorder %v6277_v41, %v7016_v19 }
 0x167   : > { %5277 = vmatprep.mubr.msk.bf16.mxu0 %vm5276_vm5, %v8645_v25  ;;  %vm650_vm5 = vcmp.eq.s32.totalorder %v6272_v0, %v6983_v43  ;;  %v4862_v22 = vsel %vm661_vm4, 1.0, %v8667_v21  ;;  %vm671_vm4 = vcmp.eq.s32.totalorder %v6286_v45, %v7047_v31  ;;  %v4882_v62 = vsel %vm681_vm10, 1.0, %v8667_v21 }
 0x168   : > { %v2759_v50 = vpop.f32.mrf.mxu0  ;;  %v3046_v2 = vpop.f32.mrf.mxu1  ;;  %5377 = vmatmul.mubr.msk.bf16.gmra.mxu1 %vm5376_vm6, %v8645_v25  ;;  %vm654_vm6 = vcmp.eq.s32.totalorder %v6272_v0, %v6981_v61  ;;  %v1317_v30 = vpack.c.bf16 %v4866_v29, %v4862_v22  ;;  %vm5288_vm8 = vmpackc.low %vm671_vm4, %vm667_vm2 }
 0x169   : > { %v6997_v1 = vadd.f32 %v3046_v2, %v2757_v46  ;;  %5378 = vmatprep.mubr.msk.bf16.mxu1 %vm2618_vm3, %v1309_v63  ;;  %vm5282_vm11 = vmpackc.low %vm654_vm6, %vm650_vm5  ;;  %vm660_vm5 = vcmp.eq.s32.totalorder %v6297_v49, %v7016_v19  ;;  %vm664_vm6 = vcmp.eq.s32.totalorder %v6297_v49, %v7014_v11  ;;  %v7113_v63 = vpop.permute.xlu1 %432  ;;  %v7115_v50 = vpop.permute.xlu0 %429 }
 0x16a   : > { %v2760_v16 = vpop.f32.mrf.mxu0  ;;  %v3048_v5 = vpop.f32.mrf.mxu1  ;;  %vm5385_vm9 = vmpackc.low %vm664_vm6, %vm660_vm5  ;;  %vm689_vm6 = vcmp.eq.s32.totalorder %v6277_v41, %v7113_v63  ;;  %vm683_vm10 = vcmp.eq.s32.totalorder %v6286_v45, %v7115_v50 }
 0x16c   : > { %v2762_v8 = vpop.f32.mrf.mxu0  ;;  %v3049_v14 = vpop.f32.mrf.mxu1 }
 0x16d   : > { %v7018_v20 = vadd.f32 %v3049_v14, %v2760_v16 }
 0x16e   : > { %v2765_v17 = vpop.f32.mrf.mxu0  ;;  %5279 = vmatmul.mubr.msk.bf16.gmra.mxu0 %vm5278_vm15, %v8645_v25  ;;  %v3051_v53 = vpop.f32.mrf.mxu1  ;;  %vm669_vm15 = vcmp.eq.s32.totalorder %v6277_v41, %v7049_v32 }
 0x16f   : > { %5281 = vmatprep.mubr.msk.bf16.mxu0 %vm5280_vm0, %v8645_v25  ;;  %vm658_vm0 = vcmp.eq.s32.totalorder %v6272_v0, %v7016_v19  ;;  %v4870_v48 = vsel %vm669_vm15, 1.0, %v8667_v21  ;;  %vm679_vm15 = vcmp.eq.s32.totalorder %v6286_v45, %v7080_v10  ;;  %v7138_v53 = vpop.permute.xlu0 %1331 }
 0x170   : > { %v2767_v7 = vpop.f32.mrf.mxu0  ;;  %v3054_v24 = vpop.f32.mrf.mxu1  ;;  %5380 = vmatmul.mubr.msk.bf16.gmra.mxu1 %vm5379_vm1, %v8645_v25  ;;  %vm662_vm1 = vcmp.eq.s32.totalorder %v6272_v0, %v7014_v11  ;;  %v1321_v57 = vpack.c.bf16 %v4874_v52, %v4870_v48  ;;  %vm5292_vm4 = vmpackc.low %vm679_vm15, %vm675_vm14  ;;  %vm1525_vm15 = vcmp.eq.s32.totalorder %v6277_v41, %v7138_v53 }
 0x171   : > { %v7030_v23 = vadd.f32 %v3054_v24, %v2765_v17  ;;  %5381 = vmatprep.mubr.msk.bf16.mxu1 %vm2618_vm3, %v1313_v18  ;;  %vm5286_vm7 = vmpackc.low %vm662_vm1, %vm658_vm0  ;;  %vm668_vm0 = vcmp.eq.s32.totalorder %v6297_v49, %v7049_v32  ;;  %vm672_vm1 = vcmp.eq.s32.totalorder %v6297_v49, %v7047_v31  ;;  %v7136_v17 = vpop.permute.xlu1 %1334 }
 0x172   : > { %v2768_v4 = vpop.f32.mrf.mxu0  ;;  %v3056_v28 = vpop.f32.mrf.mxu1  ;;  %vm5388_vm5 = vmpackc.low %vm672_vm1, %vm668_vm0  ;;  %vm1529_vm14 = vcmp.eq.s32.totalorder %v6277_v41, %v7136_v17 }
 0x174   : > { %v2770_v27 = vpop.f32.mrf.mxu0  ;;  %v3057_v26 = vpop.f32.mrf.mxu1 }
 0x175   : > { %v7051_v36 = vadd.f32 %v3057_v26, %v2768_v4  ;;  %v4890_v4 = vsel %vm689_vm6, 1.0, %v8667_v21  ;;  %vm1523_vm6 = vcmp.eq.s32.totalorder %v6286_v45, %v7138_v53 }
 0x176   : > { %v2773_v6 = vpop.f32.mrf.mxu0  ;;  %5283 = vmatmul.mubr.msk.bf16.gmra.mxu0 %vm5282_vm11, %v8645_v25  ;;  %v3059_v35 = vpop.f32.mrf.mxu1  ;;  %vm677_vm11 = vcmp.eq.s32.totalorder %v6277_v41, %v7082_v51 }
 0x177   : > { %5285 = vmatprep.mubr.msk.bf16.mxu0 %vm5284_vm12, %v8645_v25  ;;  %vm666_vm12 = vcmp.eq.s32.totalorder %v6272_v0, %v7049_v32  ;;  %v4878_v46 = vsel %vm677_vm11, 1.0, %v8667_v21  ;;  %vm687_vm11 = vcmp.eq.s32.totalorder %v6286_v45, %v7113_v63  ;;  %v4894_v32 = vsel %vm1525_vm15, 1.0, %v8667_v21 }
 0x178   : > { %v2775_v39 = vpop.f32.mrf.mxu0  ;;  %v3062_v40 = vpop.f32.mrf.mxu1  ;;  %5383 = vmatmul.mubr.msk.bf16.gmra.mxu1 %vm5382_vm13, %v8645_v25  ;;  %vm670_vm13 = vcmp.eq.s32.totalorder %v6272_v0, %v7047_v31  ;;  %v1325_v8 = vpack.c.bf16 %v4882_v62, %v4878_v46  ;;  %vm5296_vm1 = vmpackc.low %vm687_vm11, %vm683_vm10  ;;  %vm1528_vm15 = vcmp.eq.s32.totalorder %v6297_v49, %v7136_v17 }
 0x179   : > { %v7063_v44 = vadd.f32 %v3062_v40, %v2773_v6  ;;  %5384 = vmatprep.mubr.msk.bf16.mxu1 %vm2618_vm3, %v1317_v30  ;;  %vm5290_vm2 = vmpackc.low %vm670_vm13, %vm666_vm12  ;;  %vm676_vm12 = vcmp.eq.s32.totalorder %v6297_v49, %v7082_v51  ;;  %vm680_vm13 = vcmp.eq.s32.totalorder %v6297_v49, %v7080_v10  ;;  %v4898_v6 = vsel %vm1529_vm14, 1.0, %v8667_v21  ;;  %v7177_v40 = vpop.permute.xlu1 %1337 }
 0x17a   : > { %v2776_v34 = vpop.f32.mrf.mxu0  ;;  %v3064_v42 = vpop.f32.mrf.mxu1  ;;  %vm1533_vm10 = vcmp.eq.s32.totalorder %v6277_v41, %v7177_v40 }
 0x17b   : > { %v2293_v42 = vpack.c.bf16 %v4898_v6, %v4894_v32 }
 0x17c   : > { %v2778_v37 = vpop.f32.mrf.mxu0  ;;  %v3065_v47 = vpop.f32.mrf.mxu1 }
 0x17d   : > { %v7084_v9 = vadd.f32 %v3065_v47, %v2776_v34  ;;  %v7179_v34 = vpop.permute.xlu0 %1340  ;;  %v7211_v46 = vpop.permute.xlu1 %1343 }
 0x17e   : > { %v2781_v38 = vpop.f32.mrf.mxu0  ;;  %5287 = vmatmul.mubr.msk.bf16.gmra.mxu0 %vm5286_vm7, %v8645_v25  ;;  %v3067_v54 = vpop.f32.mrf.mxu1  ;;  %vm685_vm7 = vcmp.eq.s32.totalorder %v6277_v41, %v7115_v50  ;;  %vm1537_vm11 = vcmp.eq.s32.totalorder %v6277_v41, %v7179_v34 }
 0x17f   : > { %5289 = vmatprep.mubr.msk.bf16.mxu0 %vm5288_vm8, %v8645_v25  ;;  %vm674_vm8 = vcmp.eq.s32.totalorder %v6272_v0, %v7082_v51  ;;  %v4886_v24 = vsel %vm685_vm7, 1.0, %v8667_v21  ;;  %vm1527_vm7 = vcmp.eq.s32.totalorder %v6286_v45, %v7136_v17  ;;  %v4902_v54 = vsel %vm1533_vm10, 1.0, %v8667_v21 }
 0x180   : > { %v2783_v13 = vpop.f32.mrf.mxu0  ;;  %v3070_v56 = vpop.f32.mrf.mxu1  ;;  %5386 = vmatmul.mubr.msk.bf16.gmra.mxu1 %vm5385_vm9, %v8645_v25  ;;  %vm678_vm9 = vcmp.eq.s32.totalorder %v6272_v0, %v7080_v10  ;;  %v1329_v22 = vpack.c.bf16 %v4890_v4, %v4886_v24 }
 0x181   : > { %v7096_v12 = vadd.f32 %v3070_v56, %v2781_v38  ;;  %5387 = vmatprep.mubr.msk.bf16.mxu1 %vm2618_vm3, %v1321_v57  ;;  %vm5294_vm0 = vmpackc.low %vm678_vm9, %vm674_vm8  ;;  %vm684_vm8 = vcmp.eq.s32.totalorder %v6297_v49, %v7115_v50  ;;  %vm688_vm9 = vcmp.eq.s32.totalorder %v6297_v49, %v7113_v63  ;;  %v4906_v57 = vsel %vm1537_vm11, 1.0, %v8667_v21  ;;  %v7213_v62 = vpop.permute.xlu0 %1346  ;;  %v7245_v24 = vpop.permute.xlu1 %1349 }
 0x182   : > { %v2784_v58 = vpop.f32.mrf.mxu0  ;;  %v3072_v59 = vpop.f32.mrf.mxu1  ;;  %vm5394_vm14 = vmpackc.low %vm688_vm9, %vm684_vm8  ;;  %vm1541_vm8 = vcmp.eq.s32.totalorder %v6277_v41, %v7211_v46  ;;  %vm1545_vm9 = vcmp.eq.s32.totalorder %v6277_v41, %v7213_v62  ;;  %vm1532_vm11 = vcmp.eq.s32.totalorder %v6297_v49, %v7177_v40 }
 0x183   : > { %v2297_v59 = vpack.c.bf16 %v4906_v57, %v4902_v54  ;;  %v5772_v57 = vld [vmem:[%s8621_s2 + $0xa0] sm:$0xff]  }
 0x184   : > { %v2786_v61 = vpop.f32.mrf.mxu0  ;;  %v3073_v43 = vpop.f32.mrf.mxu1 }
 0x185   : > { %v7117_v2 = vadd.f32 %v3073_v43, %v2784_v58  ;;  %v7247_v4 = vpop.permute.xlu0 %1352 }
 0x186   : > { %v2789_v16 = vpop.f32.mrf.mxu0  ;;  %5291 = vmatmul.mubr.msk.bf16.gmra.mxu0 %vm5290_vm2, %v8645_v25  ;;  %v3075_v5 = vpop.f32.mrf.mxu1  ;;  %vm5391_vm2 = vmpackc.low %vm680_vm13, %vm676_vm12 }
 0x187   : > { %5293 = vmatprep.mubr.msk.bf16.mxu0 %vm5292_vm4, %v8645_v25  ;;  %vm682_vm4 = vcmp.eq.s32.totalorder %v6272_v0, %v7115_v50  ;;  %vm5421_vm13 = vmpackc.low %vm1527_vm7, %vm1523_vm6  ;;  %vm1531_vm6 = vcmp.eq.s32.totalorder %v6286_v45, %v7177_v40  ;;  %vm1535_vm7 = vcmp.eq.s32.totalorder %v6286_v45, %v7179_v34 }
 0x188   : > { %v2791_v14 = vpop.f32.mrf.mxu0  ;;  %v3078_v15 = vpop.f32.mrf.mxu1  ;;  %5389 = vmatmul.mubr.msk.bf16.gmra.mxu1 %vm5388_vm5, %v8645_v25  ;;  %vm686_vm5 = vcmp.eq.s32.totalorder %v6272_v0, %v7113_v63  ;;  %vm5425_vm10 = vmpackc.low %vm1535_vm7, %vm1531_vm6  ;;  %vm1540_vm7 = vcmp.eq.s32.totalorder %v6297_v49, %v7211_v46 }
 0x189   : > { %v7129_v33 = vadd.f32 %v3078_v15, %v2789_v16  ;;  %5390 = vmatprep.mubr.msk.bf16.mxu1 %vm2618_vm3, %v1325_v8  ;;  %vm5298_vm12 = vmpackc.low %vm686_vm5, %vm682_vm4  ;;  %v5769_v15 = vld [vmem:[%s8621_s2 + $0xb8] sm:$0xff]  }
 0x18a   : > { %v2792_v11 = vpop.f32.mrf.mxu0  ;;  %v3080_v19 = vpop.f32.mrf.mxu1 }
 0x18c   : > { %v2794_v18 = vpop.f32.mrf.mxu0  ;;  %v3081_v7 = vpop.f32.mrf.mxu1 }
 0x18d   : > { %v7157_v28 = vadd.f32 %v3081_v7, %v2792_v11 }
 0x18e   : > { %v2797_v27 = vpop.f32.mrf.mxu0  ;;  %5295 = vmatmul.mubr.msk.bf16.gmra.mxu0 %vm5294_vm0, %v8645_v25  ;;  %v3083_v26 = vpop.f32.mrf.mxu1  ;;  %vm1524_vm0 = vcmp.eq.s32.totalorder %v6297_v49, %v7138_v53 }
 0x18f   : > { %5297 = vmatprep.mubr.msk.bf16.mxu0 %vm5296_vm1, %v8645_v25  ;;  %vm1526_vm1 = vcmp.eq.s32.totalorder %v6272_v0, %v7136_v17  ;;  %vm5550_vm4 = vmpackc.low %vm1528_vm15, %vm1524_vm0  ;;  %v4910_v17 = vsel %vm1541_vm8, 1.0, %v8667_v21  ;;  %vm1539_vm0 = vcmp.eq.s32.totalorder %v6286_v45, %v7211_v46  ;;  %vm1544_vm8 = vcmp.eq.s32.totalorder %v6297_v49, %v7213_v62 }
 0x190   : > { %v2799_v29 = vpop.f32.mrf.mxu0  ;;  %v3086_v31 = vpop.f32.mrf.mxu1  ;;  %5392 = vmatmul.mubr.msk.bf16.gmra.mxu1 %vm5391_vm2, %v8645_v25  ;;  %vm1522_vm2 = vcmp.eq.s32.totalorder %v6272_v0, %v7138_v53  ;;  %v4914_v53 = vsel %vm1545_vm9, 1.0, %v8667_v21  ;;  %vm1538_vm9 = vcmp.eq.s32.totalorder %v6272_v0, %v7211_v46  ;;  %v5773_v46 = vld [vmem:[%s8621_s2 + $0x98] sm:$0xff]  }
 0x191   : > { %v7170_v35 = vadd.f32 %v3086_v31, %v2797_v27  ;;  %5393 = vmatprep.mubr.msk.bf16.mxu1 %vm2618_vm3, %v1329_v22  ;;  %vm5423_vm5 = vmpackc.low %vm1526_vm1, %vm1522_vm2  ;;  %v2301_v26 = vpack.c.bf16 %v4914_v53, %v4910_v17  ;;  %vm1543_vm1 = vcmp.eq.s32.totalorder %v6286_v45, %v7213_v62  ;;  %v5770_v22 = vld [vmem:[%s8621_s2 + $0xb0] sm:$0xff]   ;;  %vm1549_vm2 = vcmp.eq.s32.totalorder %v6277_v41, %v7245_v24 }
 0x192   : > { %v2800_v30 = vpop.f32.mrf.mxu0  ;;  %v3088_v39 = vpop.f32.mrf.mxu1  ;;  %vm5429_vm6 = vmpackc.low %vm1543_vm1, %vm1539_vm0 }
 0x193   : > { %v5771_v39 = vld [vmem:[%s8621_s2 + $0xa8] sm:$0xff]  }
 0x194   : > { %v2802_v37 = vpop.f32.mrf.mxu0  ;;  %v3089_v47 = vpop.f32.mrf.mxu1 }
 0x195   : > { %v7193_v48 = vadd.f32 %v3089_v47, %v2800_v30 }
 0x196   : > { %v2805_v52 = vpop.f32.mrf.mxu0  ;;  %5299 = vmatmul.mubr.msk.bf16.gmra.mxu0 %vm5298_vm12, %v8645_v25  ;;  %v3091_v10 = vpop.f32.mrf.mxu1  ;;  %vm1536_vm12 = vcmp.eq.s32.totalorder %v6297_v49, %v7179_v34 }
 0x197   : > { %5549 = vmatprep.mubr.msk.bf16.mxu0 %vm2618_vm3, %v2293_v42  ;;  %vm5553_vm15 = vmpackc.low %vm1536_vm12, %vm1532_vm11  ;;  %v4918_v42 = vsel %vm1549_vm2, 1.0, %v8667_v21  ;;  %v7298_v10 = vpop.permute.xlu1 %1355  ;;  %vm1547_vm12 = vcmp.eq.s32.totalorder %v6286_v45, %v7245_v24  ;;  %vm1548_vm2 = vcmp.eq.s32.totalorder %v6297_v49, %v7245_v24 }
 0x198   : > { %v2807_v51 = vpop.f32.mrf.mxu0  ;;  %v3094_v38 = vpop.f32.mrf.mxu1  ;;  %5395 = vmatmul.mubr.msk.bf16.gmra.mxu1 %vm5394_vm14, %v8645_v25  ;;  %vm1534_vm14 = vcmp.eq.s32.totalorder %v6272_v0, %v7179_v34  ;;  %vm5556_vm11 = vmpackc.low %vm1544_vm8, %vm1540_vm7  ;;  %vm1555_vm8 = vcmp.eq.s32.totalorder %v6286_v45, %v7298_v10 }
 0x199   : > { %v7204_v13 = vadd.f32 %v3094_v38, %v2805_v52  ;;  %5422 = vmatprep.mubr.msk.bf16.mxu1 %vm5421_vm13, %v8645_v25  ;;  %vm1530_vm13 = vcmp.eq.s32.totalorder %v6272_v0, %v7177_v40  ;;  %v7300_v51 = vpop.permute.xlu0 %1358 }
 0x19a   : > { %v2808_v56 = vpop.f32.mrf.mxu0  ;;  %v3096_v58 = vpop.f32.mrf.mxu1 }
 0x19c   : > { %v2810_v61 = vpop.f32.mrf.mxu0  ;;  %v3097_v43 = vpop.f32.mrf.mxu1 }
 0x19d   : > { %v7215_v63 = vadd.f32 %v3097_v43, %v2808_v56 }
 0x19e   : > { %v2813_v50 = vpop.f32.mrf.mxu0  ;;  %v3099_v16 = vpop.f32.mrf.mxu1  ;;  %5551 = vmatmul.mubr.msk.bf16.vlgmr.msra.gmra.mxu0 %vm5550_vm4, %v8645_v25  ;;  %vm1553_vm4 = vcmp.eq.s32.totalorder %v6277_v41, %v7247_v4 }
 0x19f   : > { %5552 = vmatprep.mubr.msk.bf16.mxu0 %vm2618_vm3, %v2297_v59  ;;  %v4922_v37 = vsel %vm1553_vm4, 1.0, %v8667_v21  ;;  %vm1552_vm4 = vcmp.eq.s32.totalorder %v6297_v49, %v7247_v4 }
 0x1a0   : > { %v2815_v5 = vpop.f32.mrf.mxu0  ;;  %v3102_v8 = vpop.f32.mrf.mxu1  ;;  %5424 = vmatmul.mubr.msk.bf16.vlgmr.msra.gmra.mxu1 %vm5423_vm5, %v8645_v25  ;;  %vm5427_vm5 = vmpackc.low %vm1534_vm14, %vm1530_vm13  ;;  %v2305_v54 = vpack.c.bf16 %v4922_v37, %v4918_v42  ;;  %vm1551_vm13 = vcmp.eq.s32.totalorder %v6286_v45, %v7247_v4  ;;  %vm1557_vm14 = vcmp.eq.s32.totalorder %v6277_v41, %v7298_v10 }
 0x1a1   : > { %v7228_v14 = vadd.f32 %v3102_v8, %v2813_v50  ;;  %5660 = vmatpush1.bf16.msra.mxu1 %v5769_v15  ;;  %5426 = vmatprep.mubr.msk.bf16.mxu1 %vm5425_vm10, %v8645_v25  ;;  %vm1542_vm10 = vcmp.eq.s32.totalorder %v6272_v0, %v7213_v62  ;;  %vm5433_vm1 = vmpackc.low %vm1551_vm13, %vm1547_vm12  ;;  %v4926_v16 = vsel %vm1557_vm14, 1.0, %v8667_v21  ;;  %vm1556_vm14 = vcmp.eq.s32.totalorder %v6297_v49, %v7298_v10 }
 0x1a2   : > { %v2816_v11 = vpop.f32.mrf.mxu0  ;;  %v3104_v19 = vpop.f32.mrf.mxu1  ;;  %5652 = vmatprep.subr.bf16.mxu1 %v8668_v3  ;;  %vm5431_vm0 = vmpackc.low %vm1542_vm10, %vm1538_vm9  ;;  %vm1559_vm9 = vcmp.eq.s32.totalorder %v6286_v45, %v7300_v51 }
 0x1a3   : > { %v7353_v19 = vpop.permute.xlu0 %1364  ;;  %vm5559_vm7 = vmpackc.low %vm1552_vm4, %vm1548_vm2 }
 0x1a4   : > { %v2818_v18 = vpop.f32.mrf.mxu0  ;;  %v3105_v7 = vpop.f32.mrf.mxu1  ;;  %vm5437_vm13 = vmpackc.low %vm1559_vm9, %vm1555_vm8 }
 0x1a5   : > { %v7249_v27 = vadd.f32 %v3105_v7, %v2816_v11  ;;  %5661 = vmatpush1.bf16.msra.mxu1 %v5770_v22  ;;  %v7351_v11 = vpop.permute.xlu1 %1361  ;;  %v5774_v18 = vld [vmem:[%s8621_s2 + $0x90] sm:$0xff]  }
 0x1a6   : > { %v2821_v29 = vpop.f32.mrf.mxu0  ;;  %v3107_v31 = vpop.f32.mrf.mxu1  ;;  %5554 = vmatmul.mubr.msk.bf16.gmra.mxu0 %vm5553_vm15, %v8645_v25  ;;  %5653 = vmatprep.subr.bf16.mxu1 %v8668_v3  ;;  %vm1561_vm15 = vcmp.eq.s32.totalorder %v6277_v41, %v7300_v51  ;;  %vm1565_vm10 = vcmp.eq.s32.totalorder %v6277_v41, %v7351_v11  ;;  %vm1563_vm4 = vcmp.eq.s32.totalorder %v6286_v45, %v7351_v11 }
 0x1a7   : > { %5555 = vmatprep.mubr.msk.bf16.mxu0 %vm2618_vm3, %v2301_v26  ;;  %v4930_v5 = vsel %vm1561_vm15, 1.0, %v8667_v21  ;;  %vm1560_vm15 = vcmp.eq.s32.totalorder %v6297_v49, %v7300_v51  ;;  %v7406_v37 = vpop.permute.xlu0 %1370 }
 0x1a8   : > { %v2823_v32 = vpop.f32.mrf.mxu0  ;;  %v3110_v6 = vpop.f32.mrf.mxu1  ;;  %5428 = vmatmul.mubr.msk.bf16.gmra.mxu1 %vm5427_vm5, %v8645_v25  ;;  %vm1546_vm5 = vcmp.eq.s32.totalorder %v6272_v0, %v7245_v24  ;;  %v2309_v53 = vpack.c.bf16 %v4930_v5, %v4926_v16  ;;  %v5775_v24 = vld [vmem:[%s8621_s2 + $0x88] sm:$0xff]   ;;  %vm5562_vm2 = vmpackc.low %vm1560_vm15, %vm1556_vm14 }
 0x1a9   : > { %v7275_v30 = vadd.f32 %v3110_v6, %v2821_v29  ;;  %5430 = vmatprep.mubr.msk.bf16.mxu1 %vm5429_vm6, %v8645_v25  ;;  %5662 = vmatpush1.bf16.msra.mxu1 %v5771_v39  ;;  %vm1550_vm6 = vcmp.eq.s32.totalorder %v6272_v0, %v7247_v4  ;;  %v4934_v6 = vsel %vm1565_vm10, 1.0, %v8667_v21  ;;  %v7404_v42 = vpop.permute.xlu1 %1367  ;;  %vm1564_vm10 = vcmp.eq.s32.totalorder %v6297_v49, %v7351_v11 }
 0x1aa   : > { %v2824_v40 = vpop.f32.mrf.mxu0  ;;  %v3112_v34 = vpop.f32.mrf.mxu1  ;;  %5654 = vmatprep.subr.bf16.mxu1 %v8668_v3  ;;  %vm5435_vm12 = vmpackc.low %vm1550_vm6, %vm1546_vm5  ;;  %vm1567_vm5 = vcmp.eq.s32.totalorder %v6286_v45, %v7353_v19  ;;  %vm1573_vm6 = vcmp.eq.s32.totalorder %v6277_v41, %v7404_v42  ;;  %vm1571_vm15 = vcmp.eq.s32.totalorder %v6286_v45, %v7404_v42 }
 0x1ab   : > { %vm5441_vm9 = vmpackc.low %vm1567_vm5, %vm1563_vm4 }
 0x1ac   : > { %v2826_v47 = vpop.f32.mrf.mxu0  ;;  %v3113_v52 = vpop.f32.mrf.mxu1 }
 0x1ad   : > { %v7302_v38 = vadd.f32 %v3113_v52, %v2824_v40  ;;  %5663 = vmatpush1.bf16.msra.mxu1 %v5772_v57  ;;  %v7456_v5 = vpop.permute.xlu1 %1373 }
 0x1ae   : > { %v2829_v56 = vpop.f32.mrf.mxu0  ;;  %v3115_v58 = vpop.f32.mrf.mxu1  ;;  %5557 = vmatmul.mubr.msk.bf16.gmra.mxu0 %vm5556_vm11, %v8645_v25  ;;  %5655 = vmatprep.subr.bf16.mxu1 %v8668_v3  ;;  %vm1569_vm11 = vcmp.eq.s32.totalorder %v6277_v41, %v7353_v19 }
 0x1af   : > { %5558 = vmatprep.mubr.msk.bf16.mxu0 %vm2618_vm3, %v2305_v54  ;;  %v4938_v39 = vsel %vm1569_vm11, 1.0, %v8667_v21  ;;  %v5776_v54 = vld [vmem:[%s8621_s2 + $0x80] sm:$0xff]   ;;  %vm1568_vm11 = vcmp.eq.s32.totalorder %v6297_v49, %v7353_v19 }
 0x1b0   : > { %v2831_v59 = vpop.f32.mrf.mxu0  ;;  %v3118_v61 = vpop.f32.mrf.mxu1  ;;  %5432 = vmatmul.mubr.msk.bf16.gmra.mxu1 %vm5431_vm0, %v8645_v25  ;;  %vm1554_vm0 = vcmp.eq.s32.totalorder %v6272_v0, %v7298_v10  ;;  %v2313_v52 = vpack.c.bf16 %v4938_v39, %v4934_v6  ;;  %v5777_v10 = vld [vmem:[%s8621_s2 + $0xc0] sm:$0xff]   ;;  %vm5565_vm14 = vmpackc.low %vm1568_vm11, %vm1564_vm10  ;;  %vm1579_vm11 = vcmp.eq.s32.totalorder %v6286_v45, %v7456_v5 }
 0x1b1   : > { %v7328_v43 = vadd.f32 %v3118_v61, %v2829_v56  ;;  %5434 = vmatprep.mubr.msk.bf16.mxu1 %vm5433_vm1, %v8645_v25  ;;  %5664 = vmatpush1.bf16.msra.mxu1 %v5773_v46  ;;  %vm1558_vm1 = vcmp.eq.s32.totalorder %v6272_v0, %v7300_v51  ;;  %v4942_v46 = vsel %vm1573_vm6, 1.0, %v8667_v21  ;;  %vm1572_vm6 = vcmp.eq.s32.totalorder %v6297_v49, %v7404_v42  ;;  %v7489_v39 = vpop.permute.xlu1 %1379 }
 0x1b2   : > { %v2832_v50 = vpop.f32.mrf.mxu0  ;;  %v3120_v62 = vpop.f32.mrf.mxu1  ;;  %5656 = vmatprep.subr.bf16.mxu1 %v8668_v3  ;;  %vm5439_vm8 = vmpackc.low %vm1558_vm1, %vm1554_vm0  ;;  %vm1575_vm0 = vcmp.eq.s32.totalorder %v6286_v45, %v7406_v37  ;;  %vm1581_vm1 = vcmp.eq.s32.totalorder %v6277_v41, %v7456_v5 }
 0x1b3   : > { %vm5445_vm5 = vmpackc.low %vm1575_vm0, %vm1571_vm15 }
 0x1b4   : > { %v2834_v8 = vpop.f32.mrf.mxu0  ;;  %v3121_v15 = vpop.f32.mrf.mxu1 }
 0x1b5   : > { %v7355_v17 = vadd.f32 %v3121_v15, %v2832_v50  ;;  %5665 = vmatpush1.bf16.msra.mxu1 %v5774_v18  ;;  %v7458_v8 = vpop.permute.xlu0 %1376 }
 0x1b6   : > { %v2837_v7 = vpop.f32.mrf.mxu0  ;;  %v3123_v26 = vpop.f32.mrf.mxu1  ;;  %5560 = vmatmul.mubr.msk.bf16.gmra.mxu0 %vm5559_vm7, %v8645_v25  ;;  %5657 = vmatprep.subr.bf16.mxu1 %v8668_v3  ;;  %vm1577_vm7 = vcmp.eq.s32.totalorder %v6277_v41, %v7406_v37 }
 0x1b7   : > { %5561 = vmatprep.mubr.msk.bf16.mxu0 %vm2618_vm3, %v2309_v53  ;;  %v4946_v50 = vsel %vm1577_vm7, 1.0, %v8667_v21  ;;  %vm1576_vm7 = vcmp.eq.s32.totalorder %v6297_v49, %v7406_v37 }
 0x1b8   : > { %v2839_v22 = vpop.f32.mrf.mxu0  ;;  %v3126_v29 = vpop.f32.mrf.mxu1  ;;  %5436 = vmatmul.mubr.msk.bf16.gmra.mxu1 %vm5435_vm12, %v8645_v25  ;;  %vm1562_vm12 = vcmp.eq.s32.totalorder %v6272_v0, %v7351_v11  ;;  %v2317_v53 = vpack.c.bf16 %v4946_v50, %v4942_v46  ;;  %v4950_v11 = vsel %vm1581_vm1, 1.0, %v8667_v21  ;;  %vm5568_vm10 = vmpackc.low %vm1576_vm7, %vm1572_vm6  ;;  %vm1580_vm1 = vcmp.eq.s32.totalorder %v6297_v49, %v7456_v5 }
 0x1b9   : > { %v7381_v31 = vadd.f32 %v3126_v29, %v2837_v7  ;;  %5438 = vmatprep.mubr.msk.bf16.mxu1 %vm5437_vm13, %v8645_v25  ;;  %5666 = vmatpush1.bf16.msra.mxu1 %v5775_v24  ;;  %vm1566_vm13 = vcmp.eq.s32.totalorder %v6272_v0, %v7353_v19  ;;  %v7522_v50 = vpop.permute.xlu1 %1385  ;;  %vm1587_vm7 = vcmp.eq.s32.totalorder %v6286_v45, %v7489_v39 }
 0x1ba   : > { %v2840_v32 = vpop.f32.mrf.mxu0  ;;  %v3128_v4 = vpop.f32.mrf.mxu1  ;;  %5658 = vmatprep.subr.bf16.mxu1 %v8668_v3  ;;  %vm5443_vm4 = vmpackc.low %vm1566_vm13, %vm1562_vm12  ;;  %vm1583_vm12 = vcmp.eq.s32.totalorder %v6286_v45, %v7458_v8  ;;  %vm1589_vm13 = vcmp.eq.s32.totalorder %v6277_v41, %v7489_v39 }
 0x1bb   : > { %vm5449_vm0 = vmpackc.low %vm1583_vm12, %vm1579_vm11 }
 0x1bc   : > { %v2842_v40 = vpop.f32.mrf.mxu0  ;;  %v3129_v34 = vpop.f32.mrf.mxu1 }
 0x1bd   : > { %v7408_v47 = vadd.f32 %v3129_v34, %v2840_v32  ;;  %5667 = vmatpush1.bf16.msra.mxu1 %v5776_v54  ;;  %v7491_v40 = vpop.permute.xlu0 %1382 }
 0x1be   : > { %v2845_v57 = vpop.f32.mrf.mxu0  ;;  %v3131_v56 = vpop.f32.mrf.mxu1  ;;  %5563 = vmatmul.mubr.msk.bf16.gmra.mxu0 %vm5562_vm2, %v8645_v25  ;;  %5659 = vmatprep.subr.bf16.mxu1 %v8668_v3  ;;  %vm1585_vm2 = vcmp.eq.s32.totalorder %v6277_v41, %v7458_v8 }
 0x1bf   : > { %5564 = vmatprep.mubr.msk.bf16.mxu0 %vm2618_vm3, %v2313_v52  ;;  %v4954_v32 = vsel %vm1585_vm2, 1.0, %v8667_v21  ;;  %vm1584_vm2 = vcmp.eq.s32.totalorder %v6297_v49, %v7458_v8 }
 0x1c0   : > { %v2847_v58 = vpop.f32.mrf.mxu0  ;;  %v3134_v59 = vpop.f32.mrf.mxu1  ;;  %5440 = vmatmul.mubr.msk.bf16.gmra.mxu1 %vm5439_vm8, %v8645_v25  ;;  %vm1570_vm8 = vcmp.eq.s32.totalorder %v6272_v0, %v7404_v42  ;;  %v2321_v52 = vpack.c.bf16 %v4954_v32, %v4950_v11  ;;  %v4958_v42 = vsel %vm1589_vm13, 1.0, %v8667_v21  ;;  %vm5571_vm6 = vmpackc.low %vm1584_vm2, %vm1580_vm1  ;;  %vm1588_vm13 = vcmp.eq.s32.totalorder %v6297_v49, %v7489_v39 }
 0x1c1   : > { %v7434_v3 = vadd.f32 %v3134_v59, %v2845_v57  ;;  %5442 = vmatprep.mubr.msk.bf16.mxu1 %vm5441_vm9, %v8645_v25  ;;  %5668 = vmatpush2.bf16.msra.mxu1 %v5777_v10  ;;  %vm1574_vm9 = vcmp.eq.s32.totalorder %v6272_v0, %v7406_v37  ;;  %vm1595_vm2 = vcmp.eq.s32.totalorder %v6286_v45, %v7522_v50 }
 0x1c2   : > { %v2848_v61 = vpop.f32.mrf.mxu0  ;;  %v3136_v51 = vpop.f32.mrf.mxu1  ;;  %vm5447_vm15 = vmpackc.low %vm1574_vm9, %vm1570_vm8  ;;  %vm1591_vm8 = vcmp.eq.s32.totalorder %v6286_v45, %v7491_v40  ;;  %vm1597_vm9 = vcmp.eq.s32.totalorder %v6277_v41, %v7522_v50 }
 0x1c3   : > { %vm5453_vm12 = vmpackc.low %vm1591_vm8, %vm1587_vm7 }
 0x1c4   : > { %v2850_v62 = vpop.f32.mrf.mxu0  ;;  %v3137_v16 = vpop.f32.mrf.mxu1 }
 0x1c5   : > { %v7460_v15 = vadd.f32 %v3137_v16, %v2848_v61  ;;  %v7524_v62 = vpop.permute.xlu0 %1388 }
 0x1c6   : > { %v2853_v18 = vpop.f32.mrf.mxu0  ;;  %v3139_v7 = vpop.f32.mrf.mxu1  ;;  %5566 = vmatmul.mubr.msk.bf16.gmra.mxu0 %vm5565_vm14, %v8645_v25  ;;  %vm1593_vm14 = vcmp.eq.s32.totalorder %v6277_v41, %v7491_v40 }
 0x1c7   : > { %5567 = vmatprep.mubr.msk.bf16.mxu0 %vm2618_vm3, %v2317_v53  ;;  %v4962_v61 = vsel %vm1593_vm14, 1.0, %v8667_v21  ;;  %vm1592_vm14 = vcmp.eq.s32.totalorder %v6297_v49, %v7491_v40 }
 0x1c8   : > { %v2855_v19 = vpop.f32.mrf.mxu0  ;;  %v3142_v26 = vpop.f32.mrf.mxu1  ;;  %5444 = vmatmul.mubr.msk.bf16.gmra.mxu1 %vm5443_vm4, %v8645_v25  ;;  %vm1578_vm4 = vcmp.eq.s32.totalorder %v6272_v0, %v7456_v5  ;;  %v2325_v53 = vpack.c.bf16 %v4962_v61, %v4958_v42  ;;  %v4966_v5 = vsel %vm1597_vm9, 1.0, %v8667_v21  ;;  %vm5574_vm1 = vmpackc.low %vm1592_vm14, %vm1588_vm13  ;;  %vm1596_vm9 = vcmp.eq.s32.totalorder %v6297_v49, %v7522_v50 }
 0x1c9   : > { %v7476_v22 = vadd.f32 %v3142_v26, %v2853_v18  ;;  %5446 = vmatprep.mubr.msk.bf16.mxu1 %vm5445_vm5, %v8645_v25  ;;  %vm1582_vm5 = vcmp.eq.s32.totalorder %v6272_v0, %v7458_v8 }
 0x1ca   : > { %v2856_v29 = vpop.f32.mrf.mxu0  ;;  %v3144_v24 = vpop.f32.mrf.mxu1  ;;  %vm5451_vm11 = vmpackc.low %vm1582_vm5, %vm1578_vm4  ;;  %vm1599_vm4 = vcmp.eq.s32.totalorder %v6286_v45, %v7524_v62 }
 0x1cb   : > { %vm5457_vm8 = vmpackc.low %vm1599_vm4, %vm1595_vm2 }
 0x1cc   : > { %v2858_v4 = vpop.f32.mrf.mxu0  ;;  %v3145_v6 = vpop.f32.mrf.mxu1 }
 0x1cd   : > { %v7493_v34 = vadd.f32 %v3145_v6, %v2856_v29  ;;  %v7555_v6 = vpop.permute.xlu1 %1391 }
 0x1ce   : > { %v2861_v54 = vpop.f32.mrf.mxu0  ;;  %v3147_v57 = vpop.f32.mrf.mxu1  ;;  %5569 = vmatmul.mubr.msk.bf16.gmra.mxu0 %vm5568_vm10, %v8645_v25  ;;  %vm1601_vm10 = vcmp.eq.s32.totalorder %v6277_v41, %v7524_v62  ;;  %vm1605_vm5 = vcmp.eq.s32.totalorder %v6277_v41, %v7555_v6  ;;  %vm1603_vm14 = vcmp.eq.s32.totalorder %v6286_v45, %v7555_v6 }
 0x1cf   : > { %5570 = vmatprep.mubr.msk.bf16.mxu0 %vm2618_vm3, %v2321_v52  ;;  %v4970_v11 = vsel %vm1601_vm10, 1.0, %v8667_v21  ;;  %v7557_v52 = vpop.permute.xlu0 %1394  ;;  %vm1600_vm10 = vcmp.eq.s32.totalorder %v6297_v49, %v7524_v62 }
 0x1d0   : > { %v2863_v37 = vpop.f32.mrf.mxu0  ;;  %v3150_v56 = vpop.f32.mrf.mxu1  ;;  %5448 = vmatmul.mubr.msk.bf16.gmra.mxu1 %vm5447_vm15, %v8645_v25  ;;  %vm1586_vm15 = vcmp.eq.s32.totalorder %v6272_v0, %v7489_v39  ;;  %v2329_v57 = vpack.c.bf16 %v4970_v11, %v4966_v5  ;;  %v4974_v39 = vsel %vm1605_vm5, 1.0, %v8667_v21  ;;  %vm5577_vm13 = vmpackc.low %vm1600_vm10, %vm1596_vm9  ;;  %vm1604_vm5 = vcmp.eq.s32.totalorder %v6297_v49, %v7555_v6 }
 0x1d1   : > { %v7509_v58 = vadd.f32 %v3150_v56, %v2861_v54  ;;  %5450 = vmatprep.mubr.msk.bf16.mxu1 %vm5449_vm0, %v8645_v25  ;;  %vm1590_vm0 = vcmp.eq.s32.totalorder %v6272_v0, %v7491_v40 }
 0x1d2   : > { %v2864_v59 = vpop.f32.mrf.mxu0  ;;  %v3152_v10 = vpop.f32.mrf.mxu1  ;;  %vm5455_vm7 = vmpackc.low %vm1590_vm0, %vm1586_vm15  ;;  %vm1607_vm15 = vcmp.eq.s32.totalorder %v6286_v45, %v7557_v52 }
 0x1d3   : > { %vm5461_vm4 = vmpackc.low %vm1607_vm15, %vm1603_vm14 }
 0x1d4   : > { %v2866_v51 = vpop.f32.mrf.mxu0  ;;  %v3153_v46 = vpop.f32.mrf.mxu1 }
 0x1d5   : > { %v7526_v16 = vadd.f32 %v3153_v46, %v2864_v59 }
 0x1d6   : > { %v2869_v18 = vpop.f32.mrf.mxu0  ;;  %v3155_v7 = vpop.f32.mrf.mxu1  ;;  %5572 = vmatmul.mubr.msk.bf16.gmra.mxu0 %vm5571_vm6, %v8645_v25  ;;  %vm1609_vm6 = vcmp.eq.s32.totalorder %v6277_v41, %v7557_v52 }
 0x1d7   : > { %5573 = vmatprep.mubr.msk.bf16.mxu0 %vm2618_vm3, %v2325_v53  ;;  %v4978_v51 = vsel %vm1609_vm6, 1.0, %v8667_v21  ;;  %v7590_v7 = vpop.permute.xlu0 %1400  ;;  %vm1608_vm6 = vcmp.eq.s32.totalorder %v6297_v49, %v7557_v52 }
 0x1d8   : > { %v2871_v8 = vpop.f32.mrf.mxu0  ;;  %v3158_v19 = vpop.f32.mrf.mxu1  ;;  %5452 = vmatmul.mubr.msk.bf16.gmra.mxu1 %vm5451_vm11, %v8645_v25  ;;  %vm1594_vm11 = vcmp.eq.s32.totalorder %v6272_v0, %v7522_v50  ;;  %vm5580_vm9 = vmpackc.low %vm1608_vm6, %vm1604_vm5 }
 0x1d9   : > { %v7542_v26 = vadd.f32 %v3158_v19, %v2869_v18  ;;  %5454 = vmatprep.mubr.msk.bf16.mxu1 %vm5453_vm12, %v8645_v25  ;;  %vm1598_vm12 = vcmp.eq.s32.totalorder %v6272_v0, %v7524_v62  ;;  %v7588_v18 = vpop.permute.xlu1 %1397  ;;  %v2333_v19 = vpack.c.bf16 %v4978_v51, %v4974_v39 }
 0x1da   : > { %v2872_v29 = vpop.f32.mrf.mxu0  ;;  %v3160_v24 = vpop.f32.mrf.mxu1  ;;  %vm1613_vm0 = vcmp.eq.s32.totalorder %v6277_v41, %v7588_v18  ;;  %vm5459_vm2 = vmpackc.low %vm1598_vm12, %vm1594_vm11  ;;  %vm1611_vm10 = vcmp.eq.s32.totalorder %v6286_v45, %v7588_v18  ;;  %vm1615_vm11 = vcmp.eq.s32.totalorder %v6286_v45, %v7590_v7 }
 0x1db   : > { %v4982_v50 = vsel %vm1613_vm0, 1.0, %v8667_v21  ;;  %vm5465_vm15 = vmpackc.low %vm1615_vm11, %vm1611_vm10  ;;  %vm1612_vm0 = vcmp.eq.s32.totalorder %v6297_v49, %v7588_v18 }
 0x1dc   : > { %v2874_v32 = vpop.f32.mrf.mxu0  ;;  %v3161_v4 = vpop.f32.mrf.mxu1 }
 0x1dd   : > { %v7559_v54 = vadd.f32 %v3161_v4, %v2872_v29 }
 0x1de   : > { %v2877_v37 = vpop.f32.mrf.mxu0  ;;  %v3163_v56 = vpop.f32.mrf.mxu1  ;;  %5575 = vmatmul.mubr.msk.bf16.gmra.mxu0 %vm5574_vm1, %v8645_v25  ;;  %vm1617_vm1 = vcmp.eq.s32.totalorder %v6277_v41, %v7590_v7 }
 0x1df   : > { %5576 = vmatprep.mubr.msk.bf16.mxu0 %vm2618_vm3, %v2329_v57  ;;  %v4986_v57 = vsel %vm1617_vm1, 1.0, %v8667_v21  ;;  %vm1616_vm1 = vcmp.eq.s32.totalorder %v6297_v49, %v7590_v7 }
 0x1e0   : > { %v2879_v40 = vpop.f32.mrf.mxu0  ;;  %v3166_v59 = vpop.f32.mrf.mxu1  ;;  %5456 = vmatmul.mubr.msk.bf16.gmra.mxu1 %vm5455_vm7, %v8645_v25  ;;  %vm1602_vm7 = vcmp.eq.s32.totalorder %v6272_v0, %v7555_v6  ;;  %vm5583_vm5 = vmpackc.low %vm1616_vm1, %vm1612_vm0 }
 0x1e1   : > { %v7575_v10 = vadd.f32 %v3166_v59, %v2877_v37  ;;  %5458 = vmatprep.mubr.msk.bf16.mxu1 %vm5457_vm8, %v8645_v25  ;;  %vm1606_vm8 = vcmp.eq.s32.totalorder %v6272_v0, %v7557_v52  ;;  %v7621_v40 = vpop.permute.xlu1 %1403  ;;  %v7623_v59 = vpop.permute.xlu0 %1406 }
 0x1e2   : > { %v2880_v42 = vpop.f32.mrf.mxu0  ;;  %v3168_v61 = vpop.f32.mrf.mxu1  ;;  %vm1621_vm12 = vcmp.eq.s32.totalorder %v6277_v41, %v7621_v40  ;;  %vm5463_vm14 = vmpackc.low %vm1606_vm8, %vm1602_vm7  ;;  %vm1619_vm6 = vcmp.eq.s32.totalorder %v6286_v45, %v7621_v40  ;;  %vm1623_vm7 = vcmp.eq.s32.totalorder %v6286_v45, %v7623_v59 }
 0x1e3   : > { %v2337_v61 = vpack.c.bf16 %v4986_v57, %v4982_v50  ;;  %v4990_v6 = vsel %vm1621_vm12, 1.0, %v8667_v21  ;;  %vm5469_vm11 = vmpackc.low %vm1623_vm7, %vm1619_vm6  ;;  %vm1620_vm12 = vcmp.eq.s32.totalorder %v6297_v49, %v7621_v40 }
 0x1e4   : > { %v2882_v46 = vpop.f32.mrf.mxu0  ;;  %v3169_v53 = vpop.f32.mrf.mxu1 }
 0x1e5   : > { %v7592_v8 = vadd.f32 %v3169_v53, %v2880_v42 }
 0x1e6   : > { %v2885_v29 = vpop.f32.mrf.mxu0  ;;  %v3171_v24 = vpop.f32.mrf.mxu1  ;;  %5578 = vmatmul.mubr.msk.bf16.gmra.mxu0 %vm5577_vm13, %v8645_v25  ;;  %vm1625_vm13 = vcmp.eq.s32.totalorder %v6277_v41, %v7623_v59 }
 0x1e7   : > { %5579 = vmatprep.mubr.msk.bf16.mxu0 %vm2618_vm3, %v2333_v19  ;;  %v4994_v24 = vsel %vm1625_vm13, 1.0, %v8667_v21  ;;  %vm1624_vm13 = vcmp.eq.s32.totalorder %v6297_v49, %v7623_v59 }
 0x1e8   : > { %v2887_v62 = vpop.f32.mrf.mxu0  ;;  %v3174_v5 = vpop.f32.mrf.mxu1  ;;  %5460 = vmatmul.mubr.msk.bf16.gmra.mxu1 %vm5459_vm2, %v8645_v25  ;;  %vm1610_vm2 = vcmp.eq.s32.totalorder %v6272_v0, %v7588_v18  ;;  %v2341_v57 = vpack.c.bf16 %v4994_v24, %v4990_v6  ;;  %vm5586_vm0 = vmpackc.low %vm1624_vm13, %vm1620_vm12 }
 0x1e9   : > { %v7608_v11 = vadd.f32 %v3174_v5, %v2885_v29  ;;  %5462 = vmatprep.mubr.msk.bf16.mxu1 %vm5461_vm4, %v8645_v25  ;;  %vm1614_vm4 = vcmp.eq.s32.totalorder %v6272_v0, %v7590_v7 }
 0x1ea   : > { %v2888_v32 = vpop.f32.mrf.mxu0  ;;  %v3176_v4 = vpop.f32.mrf.mxu1  ;;  %vm5467_vm10 = vmpackc.low %vm1614_vm4, %vm1610_vm2 }
 0x1eb   : > { %v7656_v4 = vpop.permute.xlu0 %1412 }
 0x1ec   : > { %v2890_v37 = vpop.f32.mrf.mxu0  ;;  %v3177_v56 = vpop.f32.mrf.mxu1  ;;  %vm1631_vm2 = vcmp.eq.s32.totalorder %v6286_v45, %v7656_v4 }
 0x1ed   : > { %v7625_v42 = vadd.f32 %v3177_v56, %v2888_v32  ;;  %v7654_v32 = vpop.permute.xlu1 %1409 }
 0x1ee   : > { %v2893_v39 = vpop.f32.mrf.mxu0  ;;  %v3179_v51 = vpop.f32.mrf.mxu1  ;;  %5581 = vmatmul.mubr.msk.bf16.gmra.mxu0 %vm5580_vm9, %v8645_v25  ;;  %vm1629_vm8 = vcmp.eq.s32.totalorder %v6277_v41, %v7654_v32  ;;  %vm1633_vm9 = vcmp.eq.s32.totalorder %v6277_v41, %v7656_v4  ;;  %vm1627_vm1 = vcmp.eq.s32.totalorder %v6286_v45, %v7654_v32 }
 0x1ef   : > { %5582 = vmatprep.mubr.msk.bf16.mxu0 %vm2618_vm3, %v2337_v61  ;;  %v4998_v18 = vsel %vm1629_vm8, 1.0, %v8667_v21  ;;  %v7689_v24 = vpop.permute.xlu0 %1418  ;;  %vm5473_vm7 = vmpackc.low %vm1631_vm2, %vm1627_vm1  ;;  %vm1628_vm8 = vcmp.eq.s32.totalorder %v6297_v49, %v7654_v32 }
 0x1f0   : > { %v2895_v52 = vpop.f32.mrf.mxu0  ;;  %v3182_v46 = vpop.f32.mrf.mxu1  ;;  %5464 = vmatmul.mubr.msk.bf16.gmra.mxu1 %vm5463_vm14, %v8645_v25  ;;  %vm1618_vm14 = vcmp.eq.s32.totalorder %v6272_v0, %v7621_v40 }
 0x1f1   : > { %v7641_v53 = vadd.f32 %v3182_v46, %v2893_v39  ;;  %5466 = vmatprep.mubr.msk.bf16.mxu1 %vm5465_vm15, %v8645_v25  ;;  %v5002_v46 = vsel %vm1633_vm9, 1.0, %v8667_v21  ;;  %vm1622_vm15 = vcmp.eq.s32.totalorder %v6272_v0, %v7623_v59  ;;  %v7687_v6 = vpop.permute.xlu1 %1415  ;;  %vm1632_vm9 = vcmp.eq.s32.totalorder %v6297_v49, %v7656_v4 }
 0x1f2   : > { %v2896_v19 = vpop.f32.mrf.mxu0  ;;  %v3184_v29 = vpop.f32.mrf.mxu1  ;;  %vm1637_vm4 = vcmp.eq.s32.totalorder %v6277_v41, %v7687_v6  ;;  %vm5471_vm6 = vmpackc.low %vm1622_vm15, %vm1618_vm14  ;;  %vm1635_vm13 = vcmp.eq.s32.totalorder %v6286_v45, %v7687_v6  ;;  %vm1639_vm14 = vcmp.eq.s32.totalorder %v6286_v45, %v7689_v24 }
 0x1f3   : > { %v5006_v40 = vsel %vm1637_vm4, 1.0, %v8667_v21  ;;  %vm5589_vm12 = vmpackc.low %vm1632_vm9, %vm1628_vm8  ;;  %vm1636_vm4 = vcmp.eq.s32.totalorder %v6297_v49, %v7687_v6 }
 0x1f4   : > { %v2898_v62 = vpop.f32.mrf.mxu0  ;;  %v3185_v5 = vpop.f32.mrf.mxu1  ;;  %vm5477_vm2 = vmpackc.low %vm1639_vm14, %vm1635_vm13 }
 0x1f5   : > { %v7658_v50 = vadd.f32 %v3185_v5, %v2896_v19  ;;  %v2345_v5 = vpack.c.bf16 %v5002_v46, %v4998_v18 }
 0x1f6   : > { %v2901_v37 = vpop.f32.mrf.mxu0  ;;  %v3187_v56 = vpop.f32.mrf.mxu1  ;;  %5584 = vmatmul.mubr.msk.bf16.gmra.mxu0 %vm5583_vm5, %v8645_v25  ;;  %vm1641_vm5 = vcmp.eq.s32.totalorder %v6277_v41, %v7689_v24 }
 0x1f7   : > { %5585 = vmatprep.mubr.msk.bf16.mxu0 %vm2618_vm3, %v2341_v57 }
 0x1f8   : > { %v2903_v7 = vpop.f32.mrf.mxu0  ;;  %v3190_v61 = vpop.f32.mrf.mxu1  ;;  %5468 = vmatmul.mubr.msk.bf16.gmra.mxu1 %vm5467_vm10, %v8645_v25  ;;  %vm1626_vm10 = vcmp.eq.s32.totalorder %v6272_v0, %v7654_v32 }
 0x1f9   : > { %v7674_v39 = vadd.f32 %v3190_v61, %v2901_v37  ;;  %5470 = vmatprep.mubr.msk.bf16.mxu1 %vm5469_vm11, %v8645_v25  ;;  %vm1630_vm11 = vcmp.eq.s32.totalorder %v6272_v0, %v7656_v4 }
 0x1fa   : > { %v2904_v51 = vpop.f32.mrf.mxu0  ;;  %v3192_v52 = vpop.f32.mrf.mxu1  ;;  %vm5475_vm1 = vmpackc.low %vm1630_vm11, %vm1626_vm10 }
 0x1fb   : > { %v5010_v52 = vsel %vm1641_vm5, 1.0, %v8667_v21  ;;  %vm1640_vm5 = vcmp.eq.s32.totalorder %v6297_v49, %v7689_v24 }
 0x1fc   : > { %v2906_v19 = vpop.f32.mrf.mxu0  ;;  %v3193_v29 = vpop.f32.mrf.mxu1  ;;  %vm5592_vm8 = vmpackc.low %vm1640_vm5, %vm1636_vm4 }
 0x1fd   : > { %v7691_v62 = vadd.f32 %v3193_v29, %v2904_v51  ;;  %v7720_v19 = vpop.permute.xlu1 %1421  ;;  %v7722_v29 = vpop.permute.xlu0 %1424 }
 0x1fe   : > { %v2909_v57 = vpop.f32.mrf.mxu0  ;;  %v3195_v37 = vpop.f32.mrf.mxu1  ;;  %5587 = vmatmul.mubr.msk.bf16.gmra.mxu0 %vm5586_vm0, %v8645_v25  ;;  %vm1645_vm15 = vcmp.eq.s32.totalorder %v6277_v41, %v7720_v19  ;;  %vm1649_vm0 = vcmp.eq.s32.totalorder %v6277_v41, %v7722_v29  ;;  %vm1643_vm9 = vcmp.eq.s32.totalorder %v6286_v45, %v7720_v19  ;;  %vm1647_vm10 = vcmp.eq.s32.totalorder %v6286_v45, %v7722_v29 }
 0x1ff   : > { %5588 = vmatprep.mubr.msk.bf16.mxu0 %vm2618_vm3, %v2345_v5  ;;  %vm5481_vm14 = vmpackc.low %vm1647_vm10, %vm1643_vm9 }
 0x200   : > { %v2911_v59 = vpop.f32.mrf.mxu0  ;;  %v3198_v56 = vpop.f32.mrf.mxu1  ;;  %5472 = vmatmul.mubr.msk.bf16.gmra.mxu1 %vm5471_vm6, %v8645_v25  ;;  %vm1634_vm6 = vcmp.eq.s32.totalorder %v6272_v0, %v7687_v6 }
 0x201   : > { %v7707_v7 = vadd.f32 %v3198_v56, %v2909_v57  ;;  %5474 = vmatprep.mubr.msk.bf16.mxu1 %vm5473_vm7, %v8645_v25  ;;  %v2349_v57 = vpack.c.bf16 %v5010_v52, %v5006_v40  ;;  %v5018_v40 = vsel %vm1649_vm0, 1.0, %v8667_v21  ;;  %vm1638_vm7 = vcmp.eq.s32.totalorder %v6272_v0, %v7689_v24 }
 0x202   : > { %v2912_v61 = vpop.f32.mrf.mxu0  ;;  %v3200_v51 = vpop.f32.mrf.mxu1  ;;  %vm5479_vm13 = vmpackc.low %vm1638_vm7, %vm1634_vm6  ;;  %vm1648_vm0 = vcmp.eq.s32.totalorder %v6297_v49, %v7722_v29 }
 0x203   : > { %v5014_v51 = vsel %vm1645_vm15, 1.0, %v8667_v21  ;;  %vm1644_vm15 = vcmp.eq.s32.totalorder %v6297_v49, %v7720_v19 }
 0x204   : > { %v2914_v18 = vpop.f32.mrf.mxu0  ;;  %v3201_v46 = vpop.f32.mrf.mxu1  ;;  %vm5595_vm4 = vmpackc.low %vm1648_vm0, %vm1644_vm15 }
 0x205   : > { %v7724_v5 = vadd.f32 %v3201_v46, %v2912_v61 }
 0x206   : > { %v2917_v37 = vpop.f32.mrf.mxu0  ;;  %v3203_v59 = vpop.f32.mrf.mxu1  ;;  %5590 = vmatmul.mubr.msk.bf16.gmra.mxu0 %vm5589_vm12, %v8645_v25 }
 0x207   : > { %5591 = vmatprep.mubr.msk.bf16.mxu0 %vm2618_vm3, %v2349_v57  ;;  %v7753_v57 = vpop.permute.xlu1 %1427 }
 0x208   : > { %v2919_v4 = vpop.f32.mrf.mxu0  ;;  %v3206_v56 = vpop.f32.mrf.mxu1  ;;  %5476 = vmatmul.mubr.msk.bf16.gmra.mxu1 %vm5475_vm1, %v8645_v25  ;;  %vm1653_vm11 = vcmp.eq.s32.totalorder %v6277_v41, %v7753_v57  ;;  %vm1642_vm1 = vcmp.eq.s32.totalorder %v6272_v0, %v7720_v19  ;;  %vm1651_vm5 = vcmp.eq.s32.totalorder %v6286_v45, %v7753_v57 }
 0x209   : > { %v7740_v61 = vadd.f32 %v3206_v56, %v2917_v37  ;;  %5478 = vmatprep.mubr.msk.bf16.mxu1 %vm5477_vm2, %v8645_v25  ;;  %v7755_v37 = vpop.permute.xlu0 %1430  ;;  %v2353_v4 = vpack.c.bf16 %v5018_v40, %v5014_v51  ;;  %vm1646_vm2 = vcmp.eq.s32.totalorder %v6272_v0, %v7722_v29 }
 0x20a   : > { %v2920_v52 = vpop.f32.mrf.mxu0  ;;  %v3208_v18 = vpop.f32.mrf.mxu1  ;;  %vm1657_vm12 = vcmp.eq.s32.totalorder %v6277_v41, %v7755_v37  ;;  %vm1655_vm6 = vcmp.eq.s32.totalorder %v6286_v45, %v7755_v37  ;;  %vm5483_vm9 = vmpackc.low %vm1646_vm2, %vm1642_vm1 }
 0x20b   : > { %v5026_v6 = vsel %vm1657_vm12, 1.0, %v8667_v21  ;;  %vm5485_vm10 = vmpackc.low %vm1655_vm6, %vm1651_vm5  ;;  %vm1656_vm12 = vcmp.eq.s32.totalorder %v6297_v49, %v7755_v37 }
 0x20c   : > { %v2922_v32 = vpop.f32.mrf.mxu0  ;;  %v3209_v46 = vpop.f32.mrf.mxu1 }
 0x20d   : > { %v7757_v59 = vadd.f32 %v3209_v46, %v2920_v52  ;;  %v5022_v52 = vsel %vm1653_vm11, 1.0, %v8667_v21  ;;  %vm1652_vm11 = vcmp.eq.s32.totalorder %v6297_v49, %v7753_v57 }
 0x20e   : > { %v2925_v56 = vpop.f32.mrf.mxu0  ;;  %v3211_v18 = vpop.f32.mrf.mxu1  ;;  %5593 = vmatmul.mubr.msk.bf16.gmra.mxu0 %vm5592_vm8, %v8645_v25  ;;  %vm5598_vm15 = vmpackc.low %vm1656_vm12, %vm1652_vm11 }
 0x20f   : > { %8687 = vst [vmem:[#allocation6_spill] sm:$0xff] %v7757_v59  ;;  %5594 = vmatprep.mubr.msk.bf16.mxu0 %vm2618_vm3, %v2353_v4  ;;  %v7786_v18 = vpop.permute.xlu1 %1433  ;;  %v8690_v59 = vmov 1.0|1.0  }
 0x210   : > { %v2927_v24 = vpop.f32.mrf.mxu0  ;;  %v3214_v51 = vpop.f32.mrf.mxu1  ;;  %5480 = vmatmul.mubr.msk.bf16.gmra.mxu1 %vm5479_vm13, %v8645_v25  ;;  %vm1661_vm7 = vcmp.eq.s32.totalorder %v6277_v41, %v7786_v18  ;;  %vm1650_vm13 = vcmp.eq.s32.totalorder %v6272_v0, %v7753_v57  ;;  %vm1659_vm0 = vcmp.eq.s32.totalorder %v6286_v45, %v7786_v18 }
 0x211   : > { %v7773_v40 = vadd.f32 %v3214_v51, %v2925_v56  ;;  %5482 = vmatprep.mubr.msk.bf16.mxu1 %vm5481_vm14, %v8645_v25  ;;  %v7788_v24 = vpop.permute.xlu0 %1436  ;;  %v2357_v25 = vpack.c.bf16 %v5026_v6, %v5022_v52  ;;  %vm1654_vm14 = vcmp.eq.s32.totalorder %v6272_v0, %v7755_v37 }
 0x212   : > { %v2928_v32 = vpop.f32.mrf.mxu0  ;;  %v3216_v46 = vpop.f32.mrf.mxu1  ;;  %vm1665_vm8 = vcmp.eq.s32.totalorder %v6277_v41, %v7788_v24  ;;  %vm1663_vm1 = vcmp.eq.s32.totalorder %v6286_v45, %v7788_v24  ;;  %vm5487_vm5 = vmpackc.low %vm1654_vm14, %vm1650_vm13 }
 0x213   : > { %8688 = vst [vmem:[#allocation5_spill] sm:$0xff] %v7773_v40  ;;  %v5034_v19 = vsel %vm1665_vm8, 1.0, %v8667_v21  ;;  %vm5489_vm6 = vmpackc.low %vm1663_vm1, %vm1659_vm0  ;;  %vm1664_vm8 = vcmp.eq.s32.totalorder %v6297_v49, %v7788_v24 }
 0x214   : > { %v2930_v4 = vpop.f32.mrf.mxu0  ;;  %v3217_v56 = vpop.f32.mrf.mxu1 }
 0x215   : > { %v7790_v51 = vadd.f32 %v3217_v56, %v2928_v32 }
 0x216   : > { %v2933_v46 = vpop.f32.mrf.mxu0  ;;  %v3219_v40 = vpop.f32.mrf.mxu1  ;;  %5596 = vmatmul.mubr.msk.bf16.gmra.mxu0 %vm5595_vm4, %v8690_v59 }
 0x217   : > { %8689 = vst [vmem:[#allocation8_spill] sm:$0xff] %v7790_v51  ;;  %5597 = vmatprep.mubr.msk.bf16.mxu0 %vm2618_vm3, %v2357_v25  ;;  %v5030_v25 = vsel %vm1661_vm7, 1.0, %v8667_v21  ;;  %vm1660_vm7 = vcmp.eq.s32.totalorder %v6297_v49, %v7786_v18 }
 0x218   : > { %v2935_v52 = vpop.f32.mrf.mxu0  ;;  %v3222_v6 = vpop.f32.mrf.mxu1  ;;  %5484 = vmatmul.mubr.msk.bf16.gmra.mxu1 %vm5483_vm9, %v8690_v59  ;;  %vm1658_vm9 = vcmp.eq.s32.totalorder %v6272_v0, %v7786_v18  ;;  %vm5601_vm11 = vmpackc.low %vm1664_vm8, %vm1660_vm7 }
 0x219   : > { %v7809_v40 = vadd.f32 %v3222_v6, %v2933_v46  ;;  %5486 = vmatprep.mubr.msk.bf16.mxu1 %vm5485_vm10, %v8690_v59  ;;  %v7822_v46 = vpop.permute.xlu1 %1439  ;;  %v7824_v52 = vpop.permute.xlu0 %1442  ;;  %vm1662_vm10 = vcmp.eq.s32.totalorder %v6272_v0, %v7788_v24 }
 0x21a   : > { %v2936_v29 = vpop.f32.mrf.mxu0  ;;  %v3224_v32 = vpop.f32.mrf.mxu1  ;;  %vm1669_vm2 = vcmp.eq.s32.totalorder %v6277_v41, %v7822_v46  ;;  %vm1673_vm4 = vcmp.eq.s32.totalorder %v6277_v41, %v7824_v52  ;;  %vm1667_vm12 = vcmp.eq.s32.totalorder %v6286_v45, %v7822_v46  ;;  %vm1671_vm13 = vcmp.eq.s32.totalorder %v6286_v45, %v7824_v52  ;;  %vm5491_vm0 = vmpackc.low %vm1662_vm10, %vm1658_vm9 }
 0x21b   : > { %8691 = vst [vmem:[#allocation7_spill] sm:$0xff] %v7809_v40  ;;  %v2361_v40 = vpack.c.bf16 %v5034_v19, %v5030_v25  ;;  %v5038_v57 = vsel %vm1669_vm2, 1.0, %v8667_v21  ;;  %v5042_v37 = vsel %vm1673_vm4, 1.0, %v8667_v21  ;;  %vm5493_vm1 = vmpackc.low %vm1671_vm13, %vm1667_vm12  ;;  %vm1668_vm2 = vcmp.eq.s32.totalorder %v6297_v49, %v7822_v46 }
 0x21c   : > { %v2938_v4 = vpop.f32.mrf.mxu0  ;;  %v3225_v56 = vpop.f32.mrf.mxu1  ;;  %vm1672_vm4 = vcmp.eq.s32.totalorder %v6297_v49, %v7824_v52 }
 0x21d   : > { %v7826_v6 = vadd.f32 %v3225_v56, %v2936_v29  ;;  %vm5604_vm7 = vmpackc.low %vm1672_vm4, %vm1668_vm2 }
 0x21e   : > { %v2941_v32 = vpop.f32.mrf.mxu0  ;;  %v3227_v51 = vpop.f32.mrf.mxu1  ;;  %5599 = vmatmul.mubr.msk.bf16.gmra.mxu0 %vm5598_vm15, %v8690_v59 }
 0x21f   : > { %8692 = vst [vmem:[#allocation10_spill] sm:$0xff] %v7826_v6  ;;  %5600 = vmatprep.mubr.msk.bf16.mxu0 %vm2618_vm3, %v2361_v40 }
 0x220   : > { %v2943_v25 = vpop.f32.mrf.mxu0  ;;  %v3230_v19 = vpop.f32.mrf.mxu1  ;;  %5488 = vmatmul.mubr.msk.bf16.gmra.mxu1 %vm5487_vm5, %v8690_v59  ;;  %vm1666_vm5 = vcmp.eq.s32.totalorder %v6272_v0, %v7822_v46 }
 0x221   : > { %v7845_v51 = vadd.f32 %v3230_v19, %v2941_v32  ;;  %5490 = vmatprep.mubr.msk.bf16.mxu1 %vm5489_vm6, %v8690_v59  ;;  %v7858_v32 = vpop.permute.xlu1 %1445  ;;  %v7860_v25 = vpop.permute.xlu0 %1448  ;;  %vm1670_vm6 = vcmp.eq.s32.totalorder %v6272_v0, %v7824_v52 }
 0x222   : > { %v2944_v40 = vpop.f32.mrf.mxu0  ;;  %v3232_v29 = vpop.f32.mrf.mxu1  ;;  %vm1677_vm14 = vcmp.eq.s32.totalorder %v6277_v41, %v7858_v32  ;;  %vm1681_vm15 = vcmp.eq.s32.totalorder %v6277_v41, %v7860_v25  ;;  %vm1675_vm8 = vcmp.eq.s32.totalorder %v6286_v45, %v7858_v32  ;;  %vm1679_vm9 = vcmp.eq.s32.totalorder %v6286_v45, %v7860_v25  ;;  %vm5495_vm12 = vmpackc.low %vm1670_vm6, %vm1666_vm5 }
 0x223   : > { %8693 = vst [vmem:[#allocation9_spill] sm:$0xff] %v7845_v51  ;;  %v2365_v51 = vpack.c.bf16 %v5042_v37, %v5038_v57  ;;  %v5046_v18 = vsel %vm1677_vm14, 1.0, %v8667_v21  ;;  %v5050_v24 = vsel %vm1681_vm15, 1.0, %v8667_v21  ;;  %vm5497_vm13 = vmpackc.low %vm1679_vm9, %vm1675_vm8  ;;  %vm1676_vm14 = vcmp.eq.s32.totalorder %v6297_v49, %v7858_v32 }
 0x224   : > { %v2946_v4 = vpop.f32.mrf.mxu0  ;;  %v3233_v56 = vpop.f32.mrf.mxu1  ;;  %vm1680_vm15 = vcmp.eq.s32.totalorder %v6297_v49, %v7860_v25 }
 0x225   : > { %v7862_v19 = vadd.f32 %v3233_v56, %v2944_v40  ;;  %vm5607_vm2 = vmpackc.low %vm1680_vm15, %vm1676_vm14 }
 0x226   : > { %v2949_v29 = vpop.f32.mrf.mxu0  ;;  %v3235_v6 = vpop.f32.mrf.mxu1  ;;  %5602 = vmatmul.mubr.msk.bf16.gmra.mxu0 %vm5601_vm11, %v8690_v59 }
 0x227   : > { %8694 = vst [vmem:[#allocation12_spill] sm:$0xff] %v7862_v19  ;;  %5603 = vmatprep.mubr.msk.bf16.mxu0 %vm2618_vm3, %v2365_v51 }
 0x228   : > { %v2951_v57 = vpop.f32.mrf.mxu0  ;;  %v3238_v37 = vpop.f32.mrf.mxu1  ;;  %5492 = vmatmul.mubr.msk.bf16.gmra.mxu1 %vm5491_vm0, %v8690_v59  ;;  %vm1674_vm0 = vcmp.eq.s32.totalorder %v6272_v0, %v7858_v32 }
 0x229   : > { %v7881_v6 = vadd.f32 %v3238_v37, %v2949_v29  ;;  %5494 = vmatprep.mubr.msk.bf16.mxu1 %vm5493_vm1, %v8690_v59  ;;  %v7894_v29 = vpop.permute.xlu1 %1451  ;;  %v7896_v57 = vpop.permute.xlu0 %1454  ;;  %vm1678_vm1 = vcmp.eq.s32.totalorder %v6272_v0, %v7860_v25 }
 0x22a   : > { %v2952_v51 = vpop.f32.mrf.mxu0  ;;  %v3240_v40 = vpop.f32.mrf.mxu1  ;;  %vm1685_vm10 = vcmp.eq.s32.totalorder %v6277_v41, %v7894_v29  ;;  %vm1689_vm11 = vcmp.eq.s32.totalorder %v6277_v41, %v7896_v57  ;;  %vm1683_vm4 = vcmp.eq.s32.totalorder %v6286_v45, %v7894_v29  ;;  %vm1687_vm5 = vcmp.eq.s32.totalorder %v6286_v45, %v7896_v57  ;;  %vm5499_vm8 = vmpackc.low %vm1678_vm1, %vm1674_vm0 }
 0x22b   : > { %8695 = vst [vmem:[#allocation11_spill] sm:$0xff] %v7881_v6  ;;  %v2369_v6 = vpack.c.bf16 %v5050_v24, %v5046_v18  ;;  %v5054_v46 = vsel %vm1685_vm10, 1.0, %v8667_v21  ;;  %v5058_v52 = vsel %vm1689_vm11, 1.0, %v8667_v21  ;;  %vm5501_vm9 = vmpackc.low %vm1687_vm5, %vm1683_vm4  ;;  %vm1684_vm10 = vcmp.eq.s32.totalorder %v6297_v49, %v7894_v29 }
 0x22c   : > { %v2954_v4 = vpop.f32.mrf.mxu0  ;;  %v3241_v56 = vpop.f32.mrf.mxu1  ;;  %vm1688_vm11 = vcmp.eq.s32.totalorder %v6297_v49, %v7896_v57 }
 0x22d   : > { %v7898_v37 = vadd.f32 %v3241_v56, %v2952_v51  ;;  %vm5610_vm14 = vmpackc.low %vm1688_vm11, %vm1684_vm10 }
 0x22e   : > { %v2957_v40 = vpop.f32.mrf.mxu0  ;;  %v3243_v19 = vpop.f32.mrf.mxu1  ;;  %5605 = vmatmul.mubr.msk.bf16.gmra.mxu0 %vm5604_vm7, %v8690_v59 }
 0x22f   : > { %8696 = vst [vmem:[#allocation14_spill] sm:$0xff] %v7898_v37  ;;  %5606 = vmatprep.mubr.msk.bf16.mxu0 %vm2618_vm3, %v2369_v6 }
 0x230   : > { %v2959_v18 = vpop.f32.mrf.mxu0  ;;  %v3246_v24 = vpop.f32.mrf.mxu1  ;;  %5496 = vmatmul.mubr.msk.bf16.gmra.mxu1 %vm5495_vm12, %v8690_v59  ;;  %vm1682_vm12 = vcmp.eq.s32.totalorder %v6272_v0, %v7894_v29 }
 0x231   : > { %v7917_v19 = vadd.f32 %v3246_v24, %v2957_v40  ;;  %5498 = vmatprep.mubr.msk.bf16.mxu1 %vm5497_vm13, %v8690_v59  ;;  %v7930_v40 = vpop.permute.xlu1 %1457  ;;  %v7932_v18 = vpop.permute.xlu0 %1460  ;;  %vm1686_vm13 = vcmp.eq.s32.totalorder %v6272_v0, %v7896_v57 }
 0x232   : > { %v2960_v6 = vpop.f32.mrf.mxu0  ;;  %v3248_v51 = vpop.f32.mrf.mxu1  ;;  %vm1693_vm6 = vcmp.eq.s32.totalorder %v6277_v41, %v7930_v40  ;;  %vm1697_vm7 = vcmp.eq.s32.totalorder %v6277_v41, %v7932_v18  ;;  %vm1691_vm15 = vcmp.eq.s32.totalorder %v6286_v45, %v7930_v40  ;;  %vm1695_vm0 = vcmp.eq.s32.totalorder %v6286_v45, %v7932_v18  ;;  %vm5503_vm4 = vmpackc.low %vm1686_vm13, %vm1682_vm12 }
 0x233   : > { %8697 = vst [vmem:[#allocation13_spill] sm:$0xff] %v7917_v19  ;;  %v2373_v19 = vpack.c.bf16 %v5058_v52, %v5054_v46  ;;  %v5062_v32 = vsel %vm1693_vm6, 1.0, %v8667_v21  ;;  %v5066_v25 = vsel %vm1697_vm7, 1.0, %v8667_v21  ;;  %vm5505_vm5 = vmpackc.low %vm1695_vm0, %vm1691_vm15  ;;  %vm1692_vm6 = vcmp.eq.s32.totalorder %v6297_v49, %v7930_v40 }
 0x234   : > { %v2962_v4 = vpop.f32.mrf.mxu0  ;;  %v3249_v56 = vpop.f32.mrf.mxu1  ;;  %vm1696_vm7 = vcmp.eq.s32.totalorder %v6297_v49, %v7932_v18 }
 0x235   : > { %v7934_v24 = vadd.f32 %v3249_v56, %v2960_v6  ;;  %vm5613_vm10 = vmpackc.low %vm1696_vm7, %vm1692_vm6 }
 0x236   : > { %v2965_v51 = vpop.f32.mrf.mxu0  ;;  %v3251_v37 = vpop.f32.mrf.mxu1  ;;  %5608 = vmatmul.mubr.msk.bf16.gmra.mxu0 %vm5607_vm2, %v8690_v59 }
 0x237   : > { %8698 = vst [vmem:[#allocation16_spill] sm:$0xff] %v7934_v24  ;;  %5609 = vmatprep.mubr.msk.bf16.mxu0 %vm2618_vm3, %v2373_v19 }
 0x238   : > { %v2967_v46 = vpop.f32.mrf.mxu0  ;;  %v3254_v52 = vpop.f32.mrf.mxu1  ;;  %5500 = vmatmul.mubr.msk.bf16.gmra.mxu1 %vm5499_vm8, %v8690_v59  ;;  %vm1690_vm8 = vcmp.eq.s32.totalorder %v6272_v0, %v7930_v40 }
 0x239   : > { %v7953_v37 = vadd.f32 %v3254_v52, %v2965_v51  ;;  %5502 = vmatprep.mubr.msk.bf16.mxu1 %vm5501_vm9, %v8690_v59  ;;  %v7966_v51 = vpop.permute.xlu1 %1463  ;;  %v7968_v46 = vpop.permute.xlu0 %1466  ;;  %vm1694_vm9 = vcmp.eq.s32.totalorder %v6272_v0, %v7932_v18 }
 0x23a   : > { %v2968_v19 = vpop.f32.mrf.mxu0  ;;  %v3256_v6 = vpop.f32.mrf.mxu1  ;;  %vm1701_vm1 = vcmp.eq.s32.totalorder %v6277_v41, %v7966_v51  ;;  %vm1705_vm2 = vcmp.eq.s32.totalorder %v6277_v41, %v7968_v46  ;;  %vm1699_vm11 = vcmp.eq.s32.totalorder %v6286_v45, %v7966_v51  ;;  %vm1703_vm12 = vcmp.eq.s32.totalorder %v6286_v45, %v7968_v46  ;;  %vm5507_vm15 = vmpackc.low %vm1694_vm9, %vm1690_vm8 }
 0x23b   : > { %8699 = vst [vmem:[#allocation15_spill] sm:$0xff] %v7953_v37  ;;  %v2377_v37 = vpack.c.bf16 %v5066_v25, %v5062_v32  ;;  %v5070_v29 = vsel %vm1701_vm1, 1.0, %v8667_v21  ;;  %v5074_v57 = vsel %vm1705_vm2, 1.0, %v8667_v21  ;;  %vm5509_vm0 = vmpackc.low %vm1703_vm12, %vm1699_vm11  ;;  %vm1700_vm1 = vcmp.eq.s32.totalorder %v6297_v49, %v7966_v51 }
 0x23c   : > { %v2970_v4 = vpop.f32.mrf.mxu0  ;;  %v3257_v56 = vpop.f32.mrf.mxu1  ;;  %vm1704_vm2 = vcmp.eq.s32.totalorder %v6297_v49, %v7968_v46 }
 0x23d   : > { %v7970_v52 = vadd.f32 %v3257_v56, %v2968_v19  ;;  %vm5616_vm6 = vmpackc.low %vm1704_vm2, %vm1700_vm1 }
 0x23e   : > { %v2973_v6 = vpop.f32.mrf.mxu0  ;;  %v3259_v24 = vpop.f32.mrf.mxu1  ;;  %5611 = vmatmul.mubr.msk.bf16.gmra.mxu0 %vm5610_vm14, %v8690_v59 }
 0x23f   : > { %8700 = vst [vmem:[#allocation18_spill] sm:$0xff] %v7970_v52  ;;  %5612 = vmatprep.mubr.msk.bf16.mxu0 %vm2618_vm3, %v2377_v37 }
 0x240   : > { %v2975_v32 = vpop.f32.mrf.mxu0  ;;  %v3262_v25 = vpop.f32.mrf.mxu1  ;;  %5504 = vmatmul.mubr.msk.bf16.gmra.mxu1 %vm5503_vm4, %v8690_v59  ;;  %vm1698_vm4 = vcmp.eq.s32.totalorder %v6272_v0, %v7966_v51 }
 0x241   : > { %v7989_v24 = vadd.f32 %v3262_v25, %v2973_v6  ;;  %5506 = vmatprep.mubr.msk.bf16.mxu1 %vm5505_vm5, %v8690_v59  ;;  %v8002_v6 = vpop.permute.xlu1 %1469  ;;  %v8004_v32 = vpop.permute.xlu0 %1472  ;;  %vm1702_vm5 = vcmp.eq.s32.totalorder %v6272_v0, %v7968_v46 }
 0x242   : > { %v2976_v37 = vpop.f32.mrf.mxu0  ;;  %v3264_v19 = vpop.f32.mrf.mxu1  ;;  %vm1709_vm13 = vcmp.eq.s32.totalorder %v6277_v41, %v8002_v6  ;;  %vm1713_vm14 = vcmp.eq.s32.totalorder %v6277_v41, %v8004_v32  ;;  %vm1707_vm7 = vcmp.eq.s32.totalorder %v6286_v45, %v8002_v6  ;;  %vm1711_vm8 = vcmp.eq.s32.totalorder %v6286_v45, %v8004_v32  ;;  %vm5511_vm11 = vmpackc.low %vm1702_vm5, %vm1698_vm4 }
 0x243   : > { %8701 = vst [vmem:[#allocation17_spill] sm:$0xff] %v7989_v24  ;;  %v2381_v24 = vpack.c.bf16 %v5074_v57, %v5070_v29  ;;  %v5078_v40 = vsel %vm1709_vm13, 1.0, %v8667_v21  ;;  %v5082_v18 = vsel %vm1713_vm14, 1.0, %v8667_v21  ;;  %vm5513_vm12 = vmpackc.low %vm1711_vm8, %vm1707_vm7  ;;  %vm1708_vm13 = vcmp.eq.s32.totalorder %v6297_v49, %v8002_v6 }
 0x244   : > { %v2978_v4 = vpop.f32.mrf.mxu0  ;;  %v3265_v56 = vpop.f32.mrf.mxu1  ;;  %vm1712_vm14 = vcmp.eq.s32.totalorder %v6297_v49, %v8004_v32 }
 0x245   : > { %v8006_v25 = vadd.f32 %v3265_v56, %v2976_v37  ;;  %vm5619_vm1 = vmpackc.low %vm1712_vm14, %vm1708_vm13 }
 0x246   : > { %v2981_v19 = vpop.f32.mrf.mxu0  ;;  %v3267_v52 = vpop.f32.mrf.mxu1  ;;  %5614 = vmatmul.mubr.msk.bf16.gmra.mxu0 %vm5613_vm10, %v8690_v59 }
 0x247   : > { %8702 = vst [vmem:[#allocation20_spill] sm:$0xff] %v8006_v25  ;;  %5615 = vmatprep.mubr.msk.bf16.mxu0 %vm2618_vm3, %v2381_v24 }
 0x248   : > { %v2983_v29 = vpop.f32.mrf.mxu0  ;;  %v3270_v57 = vpop.f32.mrf.mxu1  ;;  %5508 = vmatmul.mubr.msk.bf16.gmra.mxu1 %vm5507_vm15, %v8690_v59  ;;  %vm1706_vm15 = vcmp.eq.s32.totalorder %v6272_v0, %v8002_v6 }
 0x249   : > { %v8025_v52 = vadd.f32 %v3270_v57, %v2981_v19  ;;  %5510 = vmatprep.mubr.msk.bf16.mxu1 %vm5509_vm0, %v8690_v59  ;;  %v8038_v19 = vpop.permute.xlu1 %1475  ;;  %v8040_v29 = vpop.permute.xlu0 %1478  ;;  %vm1710_vm0 = vcmp.eq.s32.totalorder %v6272_v0, %v8004_v32 }
 0x24a   : > { %v2984_v24 = vpop.f32.mrf.mxu0  ;;  %v3272_v37 = vpop.f32.mrf.mxu1  ;;  %vm1717_vm9 = vcmp.eq.s32.totalorder %v6277_v41, %v8038_v19  ;;  %vm1721_vm10 = vcmp.eq.s32.totalorder %v6277_v41, %v8040_v29  ;;  %vm1715_vm2 = vcmp.eq.s32.totalorder %v6286_v45, %v8038_v19  ;;  %vm1719_vm4 = vcmp.eq.s32.totalorder %v6286_v45, %v8040_v29  ;;  %vm5515_vm7 = vmpackc.low %vm1710_vm0, %vm1706_vm15 }
 0x24b   : > { %8703 = vst [vmem:[#allocation19_spill] sm:$0xff] %v8025_v52  ;;  %v2385_v52 = vpack.c.bf16 %v5082_v18, %v5078_v40  ;;  %v5086_v51 = vsel %vm1717_vm9, 1.0, %v8667_v21  ;;  %v5090_v46 = vsel %vm1721_vm10, 1.0, %v8667_v21  ;;  %vm5517_vm8 = vmpackc.low %vm1719_vm4, %vm1715_vm2  ;;  %vm1716_vm9 = vcmp.eq.s32.totalorder %v6297_v49, %v8038_v19 }
 0x24c   : > { %v2986_v4 = vpop.f32.mrf.mxu0  ;;  %v3273_v56 = vpop.f32.mrf.mxu1  ;;  %vm1720_vm10 = vcmp.eq.s32.totalorder %v6297_v49, %v8040_v29 }
 0x24d   : > { %v8042_v57 = vadd.f32 %v3273_v56, %v2984_v24  ;;  %vm5622_vm13 = vmpackc.low %vm1720_vm10, %vm1716_vm9 }
 0x24e   : > { %v2989_v37 = vpop.f32.mrf.mxu0  ;;  %v3275_v25 = vpop.f32.mrf.mxu1  ;;  %5617 = vmatmul.mubr.msk.bf16.gmra.mxu0 %vm5616_vm6, %v8690_v59 }
 0x24f   : > { %8704 = vst [vmem:[#allocation22_spill] sm:$0xff] %v8042_v57  ;;  %5618 = vmatprep.mubr.msk.bf16.mxu0 %vm2618_vm3, %v2385_v52 }
 0x250   : > { %v2991_v40 = vpop.f32.mrf.mxu0  ;;  %v3278_v18 = vpop.f32.mrf.mxu1  ;;  %5512 = vmatmul.mubr.msk.bf16.gmra.mxu1 %vm5511_vm11, %v8690_v59  ;;  %vm1714_vm11 = vcmp.eq.s32.totalorder %v6272_v0, %v8038_v19 }
 0x251   : > { %v8061_v25 = vadd.f32 %v3278_v18, %v2989_v37  ;;  %5514 = vmatprep.mubr.msk.bf16.mxu1 %vm5513_vm12, %v8690_v59  ;;  %v8074_v37 = vpop.permute.xlu1 %1481  ;;  %v8076_v40 = vpop.permute.xlu0 %1484  ;;  %vm1718_vm12 = vcmp.eq.s32.totalorder %v6272_v0, %v8040_v29 }
 0x252   : > { %v2992_v52 = vpop.f32.mrf.mxu0  ;;  %v3280_v24 = vpop.f32.mrf.mxu1  ;;  %vm1725_vm5 = vcmp.eq.s32.totalorder %v6277_v41, %v8074_v37  ;;  %vm1729_vm6 = vcmp.eq.s32.totalorder %v6277_v41, %v8076_v40  ;;  %vm1723_vm14 = vcmp.eq.s32.totalorder %v6286_v45, %v8074_v37  ;;  %vm1727_vm15 = vcmp.eq.s32.totalorder %v6286_v45, %v8076_v40  ;;  %vm5519_vm2 = vmpackc.low %vm1718_vm12, %vm1714_vm11 }
 0x253   : > { %8705 = vst [vmem:[#allocation21_spill] sm:$0xff] %v8061_v25  ;;  %v2389_v25 = vpack.c.bf16 %v5090_v46, %v5086_v51  ;;  %v5094_v6 = vsel %vm1725_vm5, 1.0, %v8667_v21  ;;  %v5098_v32 = vsel %vm1729_vm6, 1.0, %v8667_v21  ;;  %vm5521_vm4 = vmpackc.low %vm1727_vm15, %vm1723_vm14  ;;  %vm1724_vm5 = vcmp.eq.s32.totalorder %v6297_v49, %v8074_v37 }
 0x254   : > { %v2994_v4 = vpop.f32.mrf.mxu0  ;;  %v3281_v56 = vpop.f32.mrf.mxu1  ;;  %vm1728_vm6 = vcmp.eq.s32.totalorder %v6297_v49, %v8076_v40 }
 0x255   : > { %v8078_v18 = vadd.f32 %v3281_v56, %v2992_v52  ;;  %vm5625_vm9 = vmpackc.low %vm1728_vm6, %vm1724_vm5 }
 0x256   : > { %v2997_v24 = vpop.f32.mrf.mxu0  ;;  %v3283_v57 = vpop.f32.mrf.mxu1  ;;  %5620 = vmatmul.mubr.msk.bf16.gmra.mxu0 %vm5619_vm1, %v8690_v59 }
 0x257   : > { %8706 = vst [vmem:[#allocation23_spill] sm:$0xff] %v8078_v18  ;;  %5621 = vmatprep.mubr.msk.bf16.mxu0 %vm2618_vm3, %v2389_v25 }
 0x258   : > { %v2999_v51 = vpop.f32.mrf.mxu0  ;;  %v3286_v46 = vpop.f32.mrf.mxu1  ;;  %5516 = vmatmul.mubr.msk.bf16.gmra.mxu1 %vm5515_vm7, %v8690_v59  ;;  %vm1722_vm7 = vcmp.eq.s32.totalorder %v6272_v0, %v8074_v37 }
 0x259   : > { %v8097_v57 = vadd.f32 %v3286_v46, %v2997_v24  ;;  %5518 = vmatprep.mubr.msk.bf16.mxu1 %vm5517_vm8, %v8690_v59  ;;  %v8110_v24 = vpop.permute.xlu1 %1487  ;;  %v8112_v51 = vpop.permute.xlu0 %1490  ;;  %vm1726_vm8 = vcmp.eq.s32.totalorder %v6272_v0, %v8076_v40 }
 0x25a   : > { %v3000_v25 = vpop.f32.mrf.mxu0  ;;  %v3288_v52 = vpop.f32.mrf.mxu1  ;;  %vm1733_vm0 = vcmp.eq.s32.totalorder %v6277_v41, %v8110_v24  ;;  %vm1737_vm1 = vcmp.eq.s32.totalorder %v6277_v41, %v8112_v51  ;;  %vm1731_vm10 = vcmp.eq.s32.totalorder %v6286_v45, %v8110_v24  ;;  %vm1735_vm11 = vcmp.eq.s32.totalorder %v6286_v45, %v8112_v51  ;;  %vm5523_vm14 = vmpackc.low %vm1726_vm8, %vm1722_vm7 }
 0x25b   : > { %8707 = vst [vmem:[#allocation24_spill] sm:$0xff] %v8097_v57  ;;  %v2393_v57 = vpack.c.bf16 %v5098_v32, %v5094_v6  ;;  %v5102_v19 = vsel %vm1733_vm0, 1.0, %v8667_v21  ;;  %vm5525_vm15 = vmpackc.low %vm1735_vm11, %vm1731_vm10  ;;  %vm1732_vm0 = vcmp.eq.s32.totalorder %v6297_v49, %v8110_v24 }
 0x25c   : > { %v3002_v4 = vpop.f32.mrf.mxu0  ;;  %v3289_v56 = vpop.f32.mrf.mxu1 }
 0x25d   : > { %v8114_v46 = vadd.f32 %v3289_v56, %v3000_v25 }
 0x25e   : > { %v3291_v52 = vpop.f32.mrf.mxu1  ;;  %v3912_v18 = vpop.f32.mrf.mxu0  ;;  %5623 = vmatmul.mubr.msk.bf16.gmra.mxu0 %vm5622_vm13, %v8690_v59 }
 0x25f   : > { %8708 = vst [vmem:[#allocation25_spill] sm:$0xff] %v8114_v46  ;;  %5624 = vmatprep.mubr.msk.bf16.mxu0 %vm2618_vm3, %v2393_v57  ;;  %v5106_v57 = vsel %vm1737_vm1, 1.0, %v8667_v21  ;;  %v8145_v52 = vpop.permute.xlu1 %1493  ;;  %vm1736_vm1 = vcmp.eq.s32.totalorder %v6297_v49, %v8112_v51 }
 0x260   : > { %v3623_v6 = vpop.f32.mrf.mxu1  ;;  %5520 = vmatmul.mubr.msk.bf16.gmra.mxu1 %vm5519_vm2, %v8690_v59  ;;  %v3914_v32 = vpop.f32.mrf.mxu0  ;;  %vm1741_vm12 = vcmp.eq.s32.totalorder %v6277_v41, %v8145_v52  ;;  %vm1730_vm2 = vcmp.eq.s32.totalorder %v6272_v0, %v8110_v24  ;;  %vm5628_vm5 = vmpackc.low %vm1736_vm1, %vm1732_vm0  ;;  %vm1739_vm6 = vcmp.eq.s32.totalorder %v6286_v45, %v8145_v52 }
 0x261   : > { %v3913_v25 = vadd.f32 %v3912_v18, %v3623_v6  ;;  %5522 = vmatprep.mubr.msk.bf16.mxu1 %vm5521_vm4, %v8690_v59  ;;  %v8147_v6 = vpop.permute.xlu0 %1496  ;;  %v5110_v37 = vsel %vm1741_vm12, 1.0, %v8667_v21  ;;  %vm1734_vm4 = vcmp.eq.s32.totalorder %v6272_v0, %v8112_v51  ;;  %vm1740_vm12 = vcmp.eq.s32.totalorder %v6297_v49, %v8145_v52 }
 0x262   : > { %v3625_v29 = vpop.f32.mrf.mxu1  ;;  %v3915_v4 = vpop.f32.mrf.mxu0  ;;  %vm1745_vm13 = vcmp.eq.s32.totalorder %v6277_v41, %v8147_v6  ;;  %vm1743_vm7 = vcmp.eq.s32.totalorder %v6286_v45, %v8147_v6  ;;  %vm5527_vm10 = vmpackc.low %vm1734_vm4, %vm1730_vm2 }
 0x263   : > { %4231 = vrot.lane.b32.xlu1 %v3913_v25, %s5844_s20  ;;  %v2397_v29 = vpack.c.bf16 %v5106_v57, %v5102_v19  ;;  %vm5529_vm11 = vmpackc.low %vm1743_vm7, %vm1739_vm6 }
 0x264   : > { %v3626_v18 = vpop.f32.mrf.mxu1  ;;  %v3917_v56 = vpop.f32.mrf.mxu0 }
 0x265   : > { %v3916_v32 = vadd.f32 %v3915_v4, %v3626_v18  ;;  %v5114_v18 = vsel %vm1745_vm13, 1.0, %v8667_v21  ;;  %vm1744_vm13 = vcmp.eq.s32.totalorder %v6297_v49, %v8147_v6 }
 0x266   : > { %v3628_v25 = vpop.f32.mrf.mxu1  ;;  %v3920_v46 = vpop.f32.mrf.mxu0  ;;  %5626 = vmatmul.mubr.msk.bf16.gmra.mxu0 %vm5625_vm9, %v8690_v59  ;;  %vm5631_vm0 = vmpackc.low %vm1744_vm13, %vm1740_vm12 }
 0x267   : > { %4233 = vrot.lane.b32.xlu0 %v3916_v32, %s5844_s20  ;;  %5627 = vmatprep.mubr.msk.bf16.mxu0 %vm2618_vm3, %v2397_v29  ;;  %v8182_v29 = vpop.permute.xlu1 %1499  ;;  %v8184_v25 = vpop.permute.xlu0 %1502 }
 0x268   : > { %v3631_v19 = vpop.f32.mrf.mxu1  ;;  %5524 = vmatmul.mubr.msk.bf16.gmra.mxu1 %vm5523_vm14, %v8690_v59  ;;  %v3922_v57 = vpop.f32.mrf.mxu0  ;;  %vm1749_vm8 = vcmp.eq.s32.totalorder %v6277_v41, %v8182_v29  ;;  %vm1753_vm9 = vcmp.eq.s32.totalorder %v6277_v41, %v8184_v25  ;;  %vm1738_vm14 = vcmp.eq.s32.totalorder %v6272_v0, %v8145_v52  ;;  %vm1747_vm1 = vcmp.eq.s32.totalorder %v6286_v45, %v8182_v29 }
 0x269   : > { %v3921_v4 = vadd.f32 %v3920_v46, %v3631_v19  ;;  %5526 = vmatprep.mubr.msk.bf16.mxu1 %vm5525_vm15, %v8690_v59  ;;  %v2401_v57 = vpack.c.bf16 %v5114_v18, %v5110_v37  ;;  %v5118_v24 = vsel %vm1749_vm8, 1.0, %v8667_v21  ;;  %vm1742_vm15 = vcmp.eq.s32.totalorder %v6272_v0, %v8147_v6 }
 0x26a   : > { %v3633_v40 = vpop.f32.mrf.mxu1  ;;  %v3923_v56 = vpop.f32.mrf.mxu0  ;;  %vm1751_vm2 = vcmp.eq.s32.totalorder %v6286_v45, %v8184_v25  ;;  %vm5531_vm6 = vmpackc.low %vm1742_vm15, %vm1738_vm14  ;;  %vm1748_vm8 = vcmp.eq.s32.totalorder %v6297_v49, %v8182_v29 }
 0x26b   : > { %4235 = vrot.lane.b32.xlu1 %v3921_v4, %s5844_s20  ;;  %vm5533_vm7 = vmpackc.low %vm1751_vm2, %vm1747_vm1 }
 0x26c   : > { %v3634_v46 = vpop.f32.mrf.mxu1  ;;  %v3925_v32 = vpop.f32.mrf.mxu0 }
 0x26d   : > { %v3924_v19 = vadd.f32 %v3923_v56, %v3634_v46  ;;  %v5122_v46 = vsel %vm1753_vm9, 1.0, %v8667_v21  ;;  %vm1752_vm9 = vcmp.eq.s32.totalorder %v6297_v49, %v8184_v25 }
 0x26e   : > { %v3636_v4 = vpop.f32.mrf.mxu1  ;;  %v3928_v40 = vpop.f32.mrf.mxu0  ;;  %5629 = vmatmul.mubr.msk.bf16.gmra.mxu0 %vm5628_vm5, %v8690_v59  ;;  %vm5634_vm12 = vmpackc.low %vm1752_vm9, %vm1748_vm8 }
 0x26f   : > { %4237 = vrot.lane.b32.xlu0 %v3924_v19, %s5844_s20  ;;  %5630 = vmatprep.mubr.msk.bf16.mxu0 %vm2618_vm3, %v2401_v57  ;;  %v8216_v4 = vpop.permute.xlu1 %1505 }
 0x270   : > { %v3639_v37 = vpop.f32.mrf.mxu1  ;;  %5528 = vmatmul.mubr.msk.bf16.gmra.mxu1 %vm5527_vm10, %v8690_v59  ;;  %v3930_v18 = vpop.f32.mrf.mxu0  ;;  %vm1757_vm4 = vcmp.eq.s32.totalorder %v6277_v41, %v8216_v4  ;;  %vm1746_vm10 = vcmp.eq.s32.totalorder %v6272_v0, %v8182_v29  ;;  %vm1755_vm13 = vcmp.eq.s32.totalorder %v6286_v45, %v8216_v4 }
 0x271   : > { %v3929_v56 = vadd.f32 %v3928_v40, %v3639_v37  ;;  %5530 = vmatprep.mubr.msk.bf16.mxu1 %vm5529_vm11, %v8690_v59  ;;  %v8218_v40 = vpop.permute.xlu0 %1508  ;;  %v2405_v18 = vpack.c.bf16 %v5122_v46, %v5118_v24  ;;  %v5126_v52 = vsel %vm1757_vm4, 1.0, %v8667_v21  ;;  %vm1750_vm11 = vcmp.eq.s32.totalorder %v6272_v0, %v8184_v25 }
 0x272   : > { %v3641_v51 = vpop.f32.mrf.mxu1  ;;  %v3931_v32 = vpop.f32.mrf.mxu0  ;;  %vm1761_vm5 = vcmp.eq.s32.totalorder %v6277_v41, %v8218_v40  ;;  %vm1759_vm14 = vcmp.eq.s32.totalorder %v6286_v45, %v8218_v40  ;;  %vm5535_vm1 = vmpackc.low %vm1750_vm11, %vm1746_vm10  ;;  %vm1756_vm4 = vcmp.eq.s32.totalorder %v6297_v49, %v8216_v4 }
 0x273   : > { %4239 = vrot.lane.b32.xlu1 %v3929_v56, %s5844_s20  ;;  %vm5537_vm2 = vmpackc.low %vm1759_vm14, %vm1755_vm13 }
 0x274   : > { %v3642_v19 = vpop.f32.mrf.mxu1  ;;  %v3933_v57 = vpop.f32.mrf.mxu0 }
 0x275   : > { %v3932_v37 = vadd.f32 %v3931_v32, %v3642_v19  ;;  %v5130_v19 = vsel %vm1761_vm5, 1.0, %v8667_v21  ;;  %vm1760_vm5 = vcmp.eq.s32.totalorder %v6297_v49, %v8218_v40 }
 0x276   : > { %v3644_v56 = vpop.f32.mrf.mxu1  ;;  %v3936_v51 = vpop.f32.mrf.mxu0  ;;  %5632 = vmatmul.mubr.msk.bf16.gmra.mxu0 %vm5631_vm0, %v8690_v59  ;;  %vm5637_vm8 = vmpackc.low %vm1760_vm5, %vm1756_vm4 }
 0x277   : > { %4241 = vrot.lane.b32.xlu0 %v3932_v37, %s5844_s20  ;;  %5633 = vmatprep.mubr.msk.bf16.mxu0 %vm2618_vm3, %v2405_v18  ;;  %v8250_v56 = vpop.permute.xlu1 %1511 }
 0x278   : > { %v3647_v24 = vpop.f32.mrf.mxu1  ;;  %5532 = vmatmul.mubr.msk.bf16.gmra.mxu1 %vm5531_vm6, %v8690_v59  ;;  %v3938_v46 = vpop.f32.mrf.mxu0  ;;  %vm1765_vm15 = vcmp.eq.s32.totalorder %v6277_v41, %v8250_v56  ;;  %vm1754_vm6 = vcmp.eq.s32.totalorder %v6272_v0, %v8216_v4  ;;  %vm1763_vm9 = vcmp.eq.s32.totalorder %v6286_v45, %v8250_v56  ;;  %vm1764_vm13 = vcmp.eq.s32.totalorder %v6297_v49, %v8250_v56 }
 0x279   : > { %v3937_v32 = vadd.f32 %v3936_v51, %v3647_v24  ;;  %5534 = vmatprep.mubr.msk.bf16.mxu1 %vm5533_vm7, %v8690_v59  ;;  %v8252_v51 = vpop.permute.xlu0 %1514  ;;  %v2409_v46 = vpack.c.bf16 %v5130_v19, %v5126_v52  ;;  %v5134_v29 = vsel %vm1765_vm15, 1.0, %v8667_v21  ;;  %vm1758_vm7 = vcmp.eq.s32.totalorder %v6272_v0, %v8218_v40 }
 0x27a   : > { %v3649_v6 = vpop.f32.mrf.mxu1  ;;  %v3939_v57 = vpop.f32.mrf.mxu0  ;;  %vm1769_vm0 = vcmp.eq.s32.totalorder %v6277_v41, %v8252_v51  ;;  %vm1767_vm10 = vcmp.eq.s32.totalorder %v6286_v45, %v8252_v51  ;;  %vm5539_vm11 = vmpackc.low %vm1758_vm7, %vm1754_vm6  ;;  %vm1768_vm14 = vcmp.eq.s32.totalorder %v6297_v49, %v8252_v51  ;;  %vm1762_vm15 = vcmp.eq.s32.totalorder %v6272_v0, %v8250_v56 }
 0x27b   : > { %4243 = vrot.lane.b32.xlu1 %v3937_v32, %s5844_s20 }
 0x27c   : > { %v3650_v37 = vpop.f32.mrf.mxu1  ;;  %v3941_v18 = vpop.f32.mrf.mxu0 }
 0x27d   : > { %v3940_v24 = vadd.f32 %v3939_v57, %v3650_v37  ;;  %v5138_v37 = vsel %vm1769_vm0, 1.0, %v8667_v21  ;;  %vm1766_vm0 = vcmp.eq.s32.totalorder %v6272_v0, %v8252_v51 }
 0x27e   : > { %v3652_v32 = vpop.f32.mrf.mxu1  ;;  %v3944_v6 = vpop.f32.mrf.mxu0  ;;  %5635 = vmatmul.mubr.msk.bf16.gmra.mxu0 %vm5634_vm12, %v8690_v59  ;;  %vm5541_vm12 = vmpackc.low %vm1767_vm10, %vm1763_vm9 }
 0x27f   : > { %4245 = vrot.lane.b32.xlu0 %v3940_v24, %s5844_s20  ;;  %5636 = vmatprep.mubr.msk.bf16.mxu0 %vm2618_vm3, %v2409_v46  ;;  %vm5543_vm5 = vmpackc.low %vm1766_vm0, %vm1762_vm15 }
 0x280   : > { %v3655_v52 = vpop.f32.mrf.mxu1  ;;  %5536 = vmatmul.mubr.msk.bf16.gmra.mxu1 %vm5535_vm1, %v8690_v59  ;;  %v3946_v19 = vpop.f32.mrf.mxu0  ;;  %vm5640_vm1 = vmpackc.low %vm1768_vm14, %vm1764_vm13 }
 0x281   : > { %v3945_v57 = vadd.f32 %v3944_v6, %v3655_v52  ;;  %5538 = vmatprep.mubr.msk.bf16.mxu1 %vm5537_vm2, %v8690_v59  ;;  %v2413_v6 = vpack.c.bf16 %v5138_v37, %v5134_v29  ;;  %v1521_v29 = vpop.permute.xlu0 %1520 }
 0x282   : > { %v3657_v25 = vpop.f32.mrf.mxu1  ;;  %v3947_v18 = vpop.f32.mrf.mxu0  ;;  %vm1775_vm4 = vcmp.eq.s32.totalorder %v6286_v45, %v1521_v29  ;;  %vm1774_vm10 = vcmp.eq.s32.totalorder %v6272_v0, %v1521_v29  ;;  %vm1776_vm13 = vcmp.eq.s32.totalorder %v6297_v49, %v1521_v29 }
 0x283   : > { %4247 = vrot.lane.b32.xlu1 %v3945_v57, %s5844_s20  ;;  %v1518_v57 = vpop.permute.xlu1 %1517 }
 0x284   : > { %v3658_v24 = vpop.f32.mrf.mxu1  ;;  %v3949_v46 = vpop.f32.mrf.mxu0  ;;  %vm1771_vm2 = vcmp.eq.s32.totalorder %v6286_v45, %v1518_v57  ;;  %vm1773_vm7 = vcmp.eq.s32.totalorder %v6277_v41, %v1518_v57  ;;  %vm1770_vm9 = vcmp.eq.s32.totalorder %v6272_v0, %v1518_v57 }
 0x285   : > { %v3948_v32 = vadd.f32 %v3947_v18, %v3658_v24  ;;  %vm5545_vm6 = vmpackc.low %vm1775_vm4, %vm1771_vm2 }
 0x286   : > { %v3660_v52 = vpop.f32.mrf.mxu1  ;;  %v3952_v19 = vpop.f32.mrf.mxu0  ;;  %5638 = vmatmul.mubr.msk.bf16.gmra.mxu0 %vm5637_vm8, %v8690_v59  ;;  %vm1777_vm8 = vcmp.eq.s32.totalorder %v6277_v41, %v1521_v29 }
 0x287   : > { %4249 = vrot.lane.b32.xlu0 %v3948_v32, %s5844_s20  ;;  %5639 = vmatprep.mubr.msk.bf16.mxu0 %vm2618_vm3, %v2413_v6 }
 0x288   : > { %v3663_v4 = vpop.f32.mrf.mxu1  ;;  %5540 = vmatmul.mubr.msk.bf16.gmra.mxu1 %vm5539_vm11, %v8690_v59  ;;  %v3954_v40 = vpop.f32.mrf.mxu0  ;;  %vm5547_vm11 = vmpackc.low %vm1774_vm10, %vm1770_vm9 }
 0x289   : > { %v3953_v37 = vadd.f32 %v3952_v19, %v3663_v4  ;;  %5542 = vmatprep.mubr.msk.bf16.mxu1 %vm5541_vm12, %v8690_v59  ;;  %v5142_v40 = vsel %vm1773_vm7, 1.0, %v8667_v21  ;;  %vm1772_vm12 = vcmp.eq.s32.totalorder %v6297_v49, %v1518_v57 }
 0x28a   : > { %v3665_v25 = vpop.f32.mrf.mxu1  ;;  %v3955_v18 = vpop.f32.mrf.mxu0  ;;  %vm5643_vm14 = vmpackc.low %vm1776_vm13, %vm1772_vm12 }
 0x28b   : > { %4251 = vrot.lane.b32.xlu1 %v3953_v37, %s5844_s20  ;;  %v5146_v37 = vsel %vm1777_vm8, 1.0, %v8667_v21 }
 0x28c   : > { %v3666_v24 = vpop.f32.mrf.mxu1  ;;  %v3957_v46 = vpop.f32.mrf.mxu0 }
 0x28d   : > { %v3956_v32 = vadd.f32 %v3955_v18, %v3666_v24 }
 0x28e   : > { %v3668_v6 = vpop.f32.mrf.mxu1  ;;  %v3960_v52 = vpop.f32.mrf.mxu0  ;;  %5641 = vmatmul.mubr.msk.bf16.gmra.mxu0 %vm5640_vm1, %v8690_v59 }
 0x28f   : > { %4253 = vrot.lane.b32.xlu0 %v3956_v32, %s5844_s20  ;;  %v2417_v32 = vpack.c.bf16 %v5146_v37, %v5142_v40 }
 0x290   : > { %v3671_v19 = vpop.f32.mrf.mxu1  ;;  %5544 = vmatmul.mubr.msk.bf16.gmra.mxu1 %vm5543_vm5, %v8690_v59  ;;  %v3962_v56 = vpop.f32.mrf.mxu0 }
 0x291   : > { %v3961_v51 = vadd.f32 %v3960_v52, %v3671_v19  ;;  %5546 = vmatprep.mubr.msk.bf16.mxu1 %vm5545_vm6, %v8690_v59 }
 0x292   : > { %v3673_v45 = vpop.f32.mrf.mxu1  ;;  %v3963_v4 = vpop.f32.mrf.mxu0 }
 0x293   : > { %4255 = vrot.lane.b32.xlu1 %v3961_v51, %s5844_s20 }
 0x294   : > { %v3674_v25 = vpop.f32.mrf.mxu1  ;;  %v3965_v18 = vpop.f32.mrf.mxu0 }
 0x295   : > { %v3964_v24 = vadd.f32 %v3963_v4, %v3674_v25 }
 0x296   : > { %v3676_v46 = vpop.f32.mrf.mxu1  ;;  %v3968_v41 = vpop.f32.mrf.mxu0 }
 0x297   : > { %4257 = vrot.lane.b32.xlu0 %v3964_v24, %s5844_s20 }
 0x298   : > { %v3679_v6 = vpop.f32.mrf.mxu1  ;;  %5548 = vmatmul.mubr.msk.bf16.gmra.mxu1 %vm5547_vm11, %v8690_v59  ;;  %v3970_v52 = vpop.f32.mrf.mxu0 }
 0x299   : > { %v3969_v19 = vadd.f32 %v3968_v41, %v3679_v6  ;;  %5642 = vmatprep.mubr.msk.bf16.mxu1 %vm2618_vm3, %v2417_v32  ;;  %vm4423_vm3 = vcmask 523264  }
 0x29a   : > { %v3681_v56 = vpop.f32.mrf.mxu1  ;;  %v3971_v0 = vpop.f32.mrf.mxu0 }
 0x29b   : > { %4259 = vrot.lane.b32.xlu1 %v3969_v19, %s5844_s20 }
 0x29c   : > { %v3682_v21 = vpop.f32.mrf.mxu1  ;;  %v3973_v51 = vpop.f32.mrf.mxu0 }
 0x29d   : > { %v3972_v45 = vadd.f32 %v3971_v0, %v3682_v21 }
 0x29e   : > { %v3684_v4 = vpop.f32.mrf.mxu1  ;;  %v3976_v40 = vpop.f32.mrf.mxu0 }
 0x29f   : > { %4261 = vrot.lane.b32.xlu0 %v3972_v45, %s5844_s20 }
 0x2a0   : > { %v3687_v37 = vpop.f32.mrf.mxu1  ;;  %v3978_v25 = vpop.f32.mrf.mxu0  ;;  %5644 = vmatmul.mubr.msk.bf16.vlgmr.msra.gmra.mxu1 %vm5643_vm14, %v8690_v59 }
 0x2a1   : > { %v3977_v18 = vadd.f32 %v3976_v40, %v3687_v37 }
 0x2a2   : > { %v3689_v24 = vpop.f32.mrf.mxu1  ;;  %v3979_v46 = vpop.f32.mrf.mxu0 }
 0x2a3   : > { %4263 = vrot.lane.b32.xlu1 %v3977_v18, %s5844_s20 }
 0x2a4   : > { %v3690_v57 = vpop.f32.mrf.mxu1  ;;  %v3981_v41 = vpop.f32.mrf.mxu0 }
 0x2a5   : > { %v3980_v49 = vadd.f32 %v3979_v46, %v3690_v57 }
 0x2a6   : > { %v3692_v29 = vpop.f32.mrf.mxu1  ;;  %v3984_v32 = vpop.f32.mrf.mxu0 }
 0x2a7   : > { %4265 = vrot.lane.b32.xlu0 %v3980_v49, %s5844_s20 }
 0x2a8   : > { %v3695_v6 = vpop.f32.mrf.mxu1  ;;  %v3986_v52 = vpop.f32.mrf.mxu0 }
 0x2a9   : > { %v3985_v19 = vadd.f32 %v3984_v32, %v3695_v6 }
 0x2aa   : > { %v3697_v56 = vpop.f32.mrf.mxu1  ;;  %v3987_v0 = vpop.f32.mrf.mxu0 }
 0x2ab   : > { %4267 = vrot.lane.b32.xlu1 %v3985_v19, %s5844_s20 }
 0x2ac   : > { %v3698_v59 = vpop.f32.mrf.mxu1  ;;  %v3989_v21 = vpop.f32.mrf.mxu0 }
 0x2ad   : > { %v3988_v51 = vadd.f32 %v3987_v0, %v3698_v59 }
 0x2ae   : > { %v3700_v45 = vpop.f32.mrf.mxu1  ;;  %v3992_v4 = vpop.f32.mrf.mxu0 }
 0x2af   : > { %4269 = vrot.lane.b32.xlu0 %v3988_v51, %s5844_s20 }
 0x2b0   : > { %v3703_v40 = vpop.f32.mrf.mxu1  ;;  %v3994_v37 = vpop.f32.mrf.mxu0 }
 0x2b1   : > { %v3993_v25 = vadd.f32 %v3992_v4, %v3703_v40 }
 0x2b2   : > { %v3705_v18 = vpop.f32.mrf.mxu1  ;;  %v3995_v24 = vpop.f32.mrf.mxu0 }
 0x2b3   : > { %4271 = vrot.lane.b32.xlu1 %v3993_v25, %s5844_s20 }
 0x2b4   : > { %v3706_v46 = vpop.f32.mrf.mxu1  ;;  %v3997_v57 = vpop.f32.mrf.mxu0 }
 0x2b5   : > { %v3996_v41 = vadd.f32 %v3995_v24, %v3706_v46 }
 0x2b6   : > { %v3708_v49 = vpop.f32.mrf.mxu1  ;;  %v4000_v29 = vpop.f32.mrf.mxu0 }
 0x2b7   : > { %4273 = vrot.lane.b32.xlu0 %v3996_v41, %s5844_s20 }
 0x2b8   : > { %v3711_v32 = vpop.f32.mrf.mxu1  ;;  %v4002_v6 = vpop.f32.mrf.mxu0 }
 0x2b9   : > { %v4001_v52 = vadd.f32 %v4000_v29, %v3711_v32 }
 0x2ba   : > { %v3713_v19 = vpop.f32.mrf.mxu1  ;;  %v4003_v56 = vpop.f32.mrf.mxu0 }
 0x2bb   : > { %4275 = vrot.lane.b32.xlu1 %v4001_v52, %s5844_s20 }
 0x2bc   : > { %v3714_v0 = vpop.f32.mrf.mxu1  ;;  %v4005_v59 = vpop.f32.mrf.mxu0 }
 0x2bd   : > { %v4004_v21 = vadd.f32 %v4003_v56, %v3714_v0 }
 0x2be   : > { %v3716_v51 = vpop.f32.mrf.mxu1  ;;  %v4008_v45 = vpop.f32.mrf.mxu0 }
 0x2bf   : > { %4277 = vrot.lane.b32.xlu0 %v4004_v21, %s5844_s20 }
 0x2c0   : > { %v3719_v4 = vpop.f32.mrf.mxu1  ;;  %v4010_v40 = vpop.f32.mrf.mxu0 }
 0x2c1   : > { %v4009_v37 = vadd.f32 %v4008_v45, %v3719_v4 }
 0x2c2   : > { %v3721_v25 = vpop.f32.mrf.mxu1  ;;  %v4011_v18 = vpop.f32.mrf.mxu0 }
 0x2c3   : > { %4279 = vrot.lane.b32.xlu1 %v4009_v37, %s5844_s20 }
 0x2c4   : > { %v3722_v24 = vpop.f32.mrf.mxu1  ;;  %v4013_v46 = vpop.f32.mrf.mxu0 }
 0x2c5   : > { %v4012_v57 = vadd.f32 %v4011_v18, %v3722_v24 }
 0x2c6   : > { %v3724_v41 = vpop.f32.mrf.mxu1  ;;  %v4016_v49 = vpop.f32.mrf.mxu0 }
 0x2c7   : > { %4281 = vrot.lane.b32.xlu0 %v4012_v57, %s5844_s20 }
 0x2c8   : > { %v3727_v29 = vpop.f32.mrf.mxu1  ;;  %v4018_v32 = vpop.f32.mrf.mxu0 }
 0x2c9   : > { %v4017_v6 = vadd.f32 %v4016_v49, %v3727_v29 }
 0x2ca   : > { %v3729_v52 = vpop.f32.mrf.mxu1  ;;  %v4019_v19 = vpop.f32.mrf.mxu0 }
 0x2cb   : > { %4283 = vrot.lane.b32.xlu1 %v4017_v6, %s5844_s20 }
 0x2cc   : > { %v3730_v56 = vpop.f32.mrf.mxu1  ;;  %v4021_v0 = vpop.f32.mrf.mxu0 }
 0x2cd   : > { %v4020_v59 = vadd.f32 %v4019_v19, %v3730_v56 }
 0x2ce   : > { %v3732_v21 = vpop.f32.mrf.mxu1  ;;  %v4024_v51 = vpop.f32.mrf.mxu0 }
 0x2cf   : > { %4285 = vrot.lane.b32.xlu0 %v4020_v59, %s5844_s20 }
 0x2d0   : > { %v3735_v45 = vpop.f32.mrf.mxu1  ;;  %v4026_v4 = vpop.f32.mrf.mxu0 }
 0x2d1   : > { %v4025_v40 = vadd.f32 %v4024_v51, %v3735_v45 }
 0x2d2   : > { %v3737_v37 = vpop.f32.mrf.mxu1  ;;  %v4027_v25 = vpop.f32.mrf.mxu0 }
 0x2d3   : > { %4287 = vrot.lane.b32.xlu1 %v4025_v40, %s5844_s20 }
 0x2d4   : > { %v3738_v18 = vpop.f32.mrf.mxu1  ;;  %v4029_v24 = vpop.f32.mrf.mxu0 }
 0x2d5   : > { %v4028_v46 = vadd.f32 %v4027_v25, %v3738_v18  ;;  %v4232_v57 = vpop.permute.xlu1 %4231 }
 0x2d6   : > { %v4424_v41 = vsel %vm4423_vm3, %v6968_v55, %v4232_v57  ;;  %v3740_v49 = vpop.f32.mrf.mxu1  ;;  %v4032_v29 = vpop.f32.mrf.mxu0 }
 0x2d7   : > { %4488 = vst [vmem:[%s8341_s26] sm:$0xff] %v4424_v41  ;;  %4289 = vrot.lane.b32.xlu0 %v4028_v46, %s5844_s20 }
 0x2d8   : > { %v3743_v32 = vpop.f32.mrf.mxu1  ;;  %v4034_v6 = vpop.f32.mrf.mxu0 }
 0x2d9   : > { %v4033_v52 = vadd.f32 %v4032_v29, %v3743_v32  ;;  %v4234_v19 = vpop.permute.xlu0 %4233 }
 0x2da   : > { %v4425_v56 = vsel %vm4423_vm3, %v6985_v60, %v4234_v19  ;;  %v3745_v0 = vpop.f32.mrf.mxu1  ;;  %v4035_v59 = vpop.f32.mrf.mxu0 }
 0x2db   : > { %4489 = vst [vmem:[%s8341_s26 + $0x8] sm:$0xff] %v4425_v56  ;;  %4291 = vrot.lane.b32.xlu1 %v4033_v52, %s5844_s20 }
 0x2dc   : > { %v3746_v55 = vpop.f32.mrf.mxu1  ;;  %v4037_v21 = vpop.f32.mrf.mxu0 }
 0x2dd   : > { %v4036_v51 = vadd.f32 %v4035_v59, %v3746_v55  ;;  %v4236_v45 = vpop.permute.xlu1 %4235 }
 0x2de   : > { %v4426_v4 = vsel %vm4423_vm3, %v6997_v1, %v4236_v45  ;;  %v3748_v40 = vpop.f32.mrf.mxu1  ;;  %v4040_v37 = vpop.f32.mrf.mxu0 }
 0x2df   : > { %4490 = vst [vmem:[%s8341_s26 + $0x10] sm:$0xff] %v4426_v4  ;;  %4293 = vrot.lane.b32.xlu0 %v4036_v51, %s5844_s20 }
 0x2e0   : > { %v3751_v25 = vpop.f32.mrf.mxu1  ;;  %v4042_v60 = vpop.f32.mrf.mxu0 }
 0x2e1   : > { %v4041_v18 = vadd.f32 %v4040_v37, %v3751_v25  ;;  %v4238_v24 = vpop.permute.xlu0 %4237 }
 0x2e2   : > { %v4427_v46 = vsel %vm4423_vm3, %v7018_v20, %v4238_v24  ;;  %v3753_v57 = vpop.f32.mrf.mxu1  ;;  %v4043_v41 = vpop.f32.mrf.mxu0 }
 0x2e3   : > { %4491 = vst [vmem:[%s8341_s26 + $0x18] sm:$0xff] %v4427_v46  ;;  %4295 = vrot.lane.b32.xlu1 %v4041_v18, %s5844_s20 }
 0x2e4   : > { %v3754_v49 = vpop.f32.mrf.mxu1  ;;  %v4045_v1 = vpop.f32.mrf.mxu0 }
 0x2e5   : > { %v4044_v29 = vadd.f32 %v4043_v41, %v3754_v49  ;;  %v4240_v32 = vpop.permute.xlu1 %4239 }
 0x2e6   : > { %v4428_v6 = vsel %vm4423_vm3, %v7030_v23, %v4240_v32  ;;  %v3756_v52 = vpop.f32.mrf.mxu1  ;;  %v4048_v19 = vpop.f32.mrf.mxu0 }
 0x2e7   : > { %4492 = vst [vmem:[%s8341_s26 + $0x20] sm:$0xff] %v4428_v6  ;;  %4297 = vrot.lane.b32.xlu0 %v4044_v29, %s5844_s20 }
 0x2e8   : > { %v3759_v56 = vpop.f32.mrf.mxu1  ;;  %v4050_v20 = vpop.f32.mrf.mxu0 }
 0x2e9   : > { %v4049_v0 = vadd.f32 %v4048_v19, %v3759_v56  ;;  %v4242_v59 = vpop.permute.xlu0 %4241 }
 0x2ea   : > { %v4429_v55 = vsel %vm4423_vm3, %v7051_v36, %v4242_v59  ;;  %v3761_v21 = vpop.f32.mrf.mxu1  ;;  %v4051_v51 = vpop.f32.mrf.mxu0 }
 0x2eb   : > { %4493 = vst [vmem:[%s8341_s26 + $0x28] sm:$0xff] %v4429_v55  ;;  %4299 = vrot.lane.b32.xlu1 %v4049_v0, %s5844_s20 }
 0x2ec   : > { %v3762_v45 = vpop.f32.mrf.mxu1  ;;  %v4053_v23 = vpop.f32.mrf.mxu0 }
 0x2ed   : > { %v4052_v4 = vadd.f32 %v4051_v51, %v3762_v45  ;;  %v4244_v40 = vpop.permute.xlu1 %4243 }
 0x2ee   : > { %v4430_v37 = vsel %vm4423_vm3, %v7063_v44, %v4244_v40  ;;  %v3764_v25 = vpop.f32.mrf.mxu1  ;;  %v4056_v60 = vpop.f32.mrf.mxu0 }
 0x2ef   : > { %4494 = vst [vmem:[%s8341_s26 + $0x30] sm:$0xff] %v4430_v37  ;;  %4301 = vrot.lane.b32.xlu0 %v4052_v4, %s5844_s20 }
 0x2f0   : > { %v3767_v18 = vpop.f32.mrf.mxu1  ;;  %v4058_v36 = vpop.f32.mrf.mxu0 }
 0x2f1   : > { %v4057_v24 = vadd.f32 %v4056_v60, %v3767_v18  ;;  %v4246_v46 = vpop.permute.xlu0 %4245 }
 0x2f2   : > { %v4431_v57 = vsel %vm4423_vm3, %v7084_v9, %v4246_v46  ;;  %v3769_v41 = vpop.f32.mrf.mxu1  ;;  %v4059_v49 = vpop.f32.mrf.mxu0 }
 0x2f3   : > { %4495 = vst [vmem:[%s8341_s26 + $0x38] sm:$0xff] %v4431_v57  ;;  %4303 = vrot.lane.b32.xlu1 %v4057_v24, %s5844_s20 }
 0x2f4   : > { %v3770_v1 = vpop.f32.mrf.mxu1  ;;  %v4061_v44 = vpop.f32.mrf.mxu0 }
 0x2f5   : > { %v4060_v29 = vadd.f32 %v4059_v49, %v3770_v1  ;;  %v4248_v32 = vpop.permute.xlu1 %4247 }
 0x2f6   : > { %v4432_v6 = vsel %vm4423_vm3, %v7096_v12, %v4248_v32  ;;  %v3772_v52 = vpop.f32.mrf.mxu1  ;;  %v4064_v19 = vpop.f32.mrf.mxu0 }
 0x2f7   : > { %4496 = vst [vmem:[%s8341_s26 + $0x40] sm:$0xff] %v4432_v6  ;;  %4305 = vrot.lane.b32.xlu0 %v4060_v29, %s5844_s20 }
 0x2f8   : > { %v3775_v56 = vpop.f32.mrf.mxu1  ;;  %v4066_v9 = vpop.f32.mrf.mxu0 }
 0x2f9   : > { %v4065_v20 = vadd.f32 %v4064_v19, %v3775_v56  ;;  %v4250_v0 = vpop.permute.xlu0 %4249 }
 0x2fa   : > { %v4433_v59 = vsel %vm4423_vm3, %v7117_v2, %v4250_v0  ;;  %v3777_v55 = vpop.f32.mrf.mxu1  ;;  %v4067_v21 = vpop.f32.mrf.mxu0 }
 0x2fb   : > { %4497 = vst [vmem:[%s8341_s26 + $0x48] sm:$0xff] %v4433_v59  ;;  %4307 = vrot.lane.b32.xlu1 %v4065_v20, %s5844_s20 }
 0x2fc   : > { %v3778_v51 = vpop.f32.mrf.mxu1  ;;  %v4069_v12 = vpop.f32.mrf.mxu0 }
 0x2fd   : > { %v4068_v45 = vadd.f32 %v4067_v21, %v3778_v51  ;;  %v4252_v23 = vpop.permute.xlu1 %4251 }
 0x2fe   : > { %v4434_v4 = vsel %vm4423_vm3, %v7129_v33, %v4252_v23  ;;  %v3780_v40 = vpop.f32.mrf.mxu1  ;;  %v4072_v37 = vpop.f32.mrf.mxu0 }
 0x2ff   : > { %4498 = vst [vmem:[%s8341_s26 + $0x50] sm:$0xff] %v4434_v4  ;;  %4309 = vrot.lane.b32.xlu0 %v4068_v45, %s5844_s20 }
 0x300   : > { %v3783_v25 = vpop.f32.mrf.mxu1  ;;  %v4074_v2 = vpop.f32.mrf.mxu0 }
 0x301   : > { %v4073_v60 = vadd.f32 %v4072_v37, %v3783_v25  ;;  %v4254_v18 = vpop.permute.xlu0 %4253 }
 0x302   : > { %v4435_v36 = vsel %vm4423_vm3, %v7157_v28, %v4254_v18  ;;  %v3785_v24 = vpop.f32.mrf.mxu1  ;;  %v4075_v46 = vpop.f32.mrf.mxu0 }
 0x303   : > { %4499 = vst [vmem:[%s8341_s26 + $0x58] sm:$0xff] %v4435_v36  ;;  %4311 = vrot.lane.b32.xlu1 %v4073_v60, %s5844_s20 }
 0x304   : > { %v3786_v57 = vpop.f32.mrf.mxu1  ;;  %v4077_v33 = vpop.f32.mrf.mxu0 }
 0x305   : > { %v4076_v41 = vadd.f32 %v4075_v46, %v3786_v57  ;;  %v4256_v49 = vpop.permute.xlu1 %4255 }
 0x306   : > { %v4436_v1 = vsel %vm4423_vm3, %v7170_v35, %v4256_v49  ;;  %v3788_v44 = vpop.f32.mrf.mxu1  ;;  %v4080_v29 = vpop.f32.mrf.mxu0 }
 0x307   : > { %4500 = vst [vmem:[%s8341_s26 + $0x60] sm:$0xff] %v4436_v1  ;;  %4313 = vrot.lane.b32.xlu0 %v4076_v41, %s5844_s20 }
 0x308   : > { %v3791_v32 = vpop.f32.mrf.mxu1  ;;  %v4082_v28 = vpop.f32.mrf.mxu0 }
 0x309   : > { %v4081_v6 = vadd.f32 %v4080_v29, %v3791_v32  ;;  %v4258_v52 = vpop.permute.xlu0 %4257 }
 0x30a   : > { %v4437_v19 = vsel %vm4423_vm3, %v7193_v48, %v4258_v52  ;;  %v3793_v56 = vpop.f32.mrf.mxu1  ;;  %v4083_v9 = vpop.f32.mrf.mxu0 }
 0x30b   : > { %4501 = vst [vmem:[%s8341_s26 + $0x68] sm:$0xff] %v4437_v19  ;;  %4315 = vrot.lane.b32.xlu1 %v4081_v6, %s5844_s20 }
 0x30c   : > { %v3794_v20 = vpop.f32.mrf.mxu1  ;;  %v4085_v35 = vpop.f32.mrf.mxu0 }
 0x30d   : > { %v4084_v0 = vadd.f32 %v4083_v9, %v3794_v20  ;;  %v4260_v59 = vpop.permute.xlu1 %4259 }
 0x30e   : > { %v4438_v55 = vsel %vm4423_vm3, %v7204_v13, %v4260_v59  ;;  %v3796_v21 = vpop.f32.mrf.mxu1  ;;  %v4088_v51 = vpop.f32.mrf.mxu0 }
 0x30f   : > { %4502 = vst [vmem:[%s8341_s26 + $0x70] sm:$0xff] %v4438_v55  ;;  %4317 = vrot.lane.b32.xlu0 %v4084_v0, %s5844_s20 }
 0x310   : > { %v3799_v12 = vpop.f32.mrf.mxu1  ;;  %v4090_v48 = vpop.f32.mrf.mxu0 }
 0x311   : > { %v4089_v45 = vadd.f32 %v4088_v51, %v3799_v12  ;;  %v4262_v23 = vpop.permute.xlu0 %4261 }
 0x312   : > { %v4439_v4 = vsel %vm4423_vm3, %v7215_v63, %v4262_v23  ;;  %v3801_v40 = vpop.f32.mrf.mxu1  ;;  %v4091_v37 = vpop.f32.mrf.mxu0 }
 0x313   : > { %4503 = vst [vmem:[%s8341_s26 + $0x78] sm:$0xff] %v4439_v4  ;;  %4319 = vrot.lane.b32.xlu1 %v4089_v45, %s5844_s20 }
 0x314   : > { %v3802_v25 = vpop.f32.mrf.mxu1  ;;  %v4093_v13 = vpop.f32.mrf.mxu0 }
 0x315   : > { %v4092_v2 = vadd.f32 %v4091_v37, %v3802_v25  ;;  %v4264_v60 = vpop.permute.xlu1 %4263 }
 0x316   : > { %v4440_v18 = vsel %vm4423_vm3, %v7228_v14, %v4264_v60  ;;  %v3804_v36 = vpop.f32.mrf.mxu1  ;;  %v4096_v24 = vpop.f32.mrf.mxu0 }
 0x317   : > { %4504 = vst [vmem:[%s8341_s26 + $0x80] sm:$0xff] %v4440_v18  ;;  %4321 = vrot.lane.b32.xlu0 %v4092_v2, %s5844_s20 }
 0x318   : > { %v3807_v46 = vpop.f32.mrf.mxu1  ;;  %v4098_v63 = vpop.f32.mrf.mxu0 }
 0x319   : > { %v4097_v57 = vadd.f32 %v4096_v24, %v3807_v46  ;;  %v4266_v33 = vpop.permute.xlu0 %4265 }
 0x31a   : > { %v4441_v41 = vsel %vm4423_vm3, %v7249_v27, %v4266_v33  ;;  %v3809_v49 = vpop.f32.mrf.mxu1  ;;  %v4099_v1 = vpop.f32.mrf.mxu0 }
 0x31b   : > { %4505 = vst [vmem:[%s8341_s26 + $0x88] sm:$0xff] %v4441_v41  ;;  %4323 = vrot.lane.b32.xlu1 %v4097_v57, %s5844_s20 }
 0x31c   : > { %v3810_v44 = vpop.f32.mrf.mxu1  ;;  %v4101_v14 = vpop.f32.mrf.mxu0 }
 0x31d   : > { %v4100_v29 = vadd.f32 %v4099_v1, %v3810_v44  ;;  %v4268_v32 = vpop.permute.xlu1 %4267 }
 0x31e   : > { %v4442_v28 = vsel %vm4423_vm3, %v7275_v30, %v4268_v32  ;;  %v3812_v6 = vpop.f32.mrf.mxu1  ;;  %v4104_v52 = vpop.f32.mrf.mxu0 }
 0x31f   : > { %4506 = vst [vmem:[%s8341_s26 + $0x90] sm:$0xff] %v4442_v28  ;;  %4325 = vrot.lane.b32.xlu0 %v4100_v29, %s5844_s20 }
 0x320   : > { %v3815_v19 = vpop.f32.mrf.mxu1  ;;  %v4106_v27 = vpop.f32.mrf.mxu0 }
 0x321   : > { %v4105_v56 = vadd.f32 %v4104_v52, %v3815_v19  ;;  %v4270_v9 = vpop.permute.xlu0 %4269 }
 0x322   : > { %v4443_v20 = vsel %vm4423_vm3, %v7302_v38, %v4270_v9  ;;  %v3817_v35 = vpop.f32.mrf.mxu1  ;;  %v4107_v0 = vpop.f32.mrf.mxu0 }
 0x323   : > { %4507 = vst [vmem:[%s8341_s26 + $0x98] sm:$0xff] %v4443_v20  ;;  %4327 = vrot.lane.b32.xlu1 %v4105_v56, %s5844_s20 }
 0x324   : > { %v3818_v59 = vpop.f32.mrf.mxu1  ;;  %v4109_v30 = vpop.f32.mrf.mxu0 }
 0x325   : > { %v4108_v55 = vadd.f32 %v4107_v0, %v3818_v59  ;;  %v4272_v21 = vpop.permute.xlu1 %4271 }
 0x326   : > { %v4444_v51 = vsel %vm4423_vm3, %v7328_v43, %v4272_v21  ;;  %v3820_v12 = vpop.f32.mrf.mxu1  ;;  %v4112_v48 = vpop.f32.mrf.mxu0 }
 0x327   : > { %4508 = vst [vmem:[%s8341_s26 + $0xa0] sm:$0xff] %v4444_v51  ;;  %4329 = vrot.lane.b32.xlu0 %v4108_v55, %s5844_s20 }
 0x328   : > { %v3823_v45 = vpop.f32.mrf.mxu1  ;;  %v4114_v38 = vpop.f32.mrf.mxu0 }
 0x329   : > { %v4113_v23 = vadd.f32 %v4112_v48, %v3823_v45  ;;  %v4274_v4 = vpop.permute.xlu0 %4273 }
 0x32a   : > { %v4445_v40 = vsel %vm4423_vm3, %v7355_v17, %v4274_v4  ;;  %v3825_v37 = vpop.f32.mrf.mxu1  ;;  %v4115_v25 = vpop.f32.mrf.mxu0 }
 0x32b   : > { %4509 = vst [vmem:[%s8341_s26 + $0xa8] sm:$0xff] %v4445_v40  ;;  %4331 = vrot.lane.b32.xlu1 %v4113_v23, %s5844_s20 }
 0x32c   : > { %v3826_v13 = vpop.f32.mrf.mxu1  ;;  %v4117_v43 = vpop.f32.mrf.mxu0 }
 0x32d   : > { %v4116_v2 = vadd.f32 %v4115_v25, %v3826_v13  ;;  %v4276_v60 = vpop.permute.xlu1 %4275 }
 0x32e   : > { %v4446_v18 = vsel %vm4423_vm3, %v7381_v31, %v4276_v60  ;;  %v3828_v36 = vpop.f32.mrf.mxu1  ;;  %v4120_v24 = vpop.f32.mrf.mxu0 }
 0x32f   : > { %4510 = vst [vmem:[%s8341_s26 + $0xb0] sm:$0xff] %v4446_v18  ;;  %4333 = vrot.lane.b32.xlu0 %v4116_v2, %s5844_s20 }
 0x330   : > { %v3831_v46 = vpop.f32.mrf.mxu1  ;;  %v4122_v17 = vpop.f32.mrf.mxu0 }
 0x331   : > { %v4121_v63 = vadd.f32 %v4120_v24, %v3831_v46  ;;  %v4278_v57 = vpop.permute.xlu0 %4277 }
 0x332   : > { %v4447_v33 = vsel %vm4423_vm3, %v7408_v47, %v4278_v57  ;;  %v3833_v41 = vpop.f32.mrf.mxu1  ;;  %v4123_v49 = vpop.f32.mrf.mxu0 }
 0x333   : > { %4511 = vst [vmem:[%s8341_s26 + $0xb8] sm:$0xff] %v4447_v33  ;;  %4335 = vrot.lane.b32.xlu1 %v4121_v63, %s5844_s20 }
 0x334   : > { %v3834_v1 = vpop.f32.mrf.mxu1  ;;  %v4125_v31 = vpop.f32.mrf.mxu0 }
 0x335   : > { %v4124_v44 = vadd.f32 %v4123_v49, %v3834_v1  ;;  %v4280_v14 = vpop.permute.xlu1 %4279 }
 0x336   : > { %v4448_v29 = vsel %vm4423_vm3, %v7434_v3, %v4280_v14  ;;  %v3836_v32 = vpop.f32.mrf.mxu1  ;;  %v4128_v28 = vpop.f32.mrf.mxu0 }
 0x337   : > { %4512 = vst [vmem:[%s8341_s26 + $0xc0] sm:$0xff] %v4448_v29  ;;  %4337 = vrot.lane.b32.xlu0 %v4124_v44, %s5844_s20 }
 0x338   : > { %v3839_v6 = vpop.f32.mrf.mxu1  ;;  %v4130_v47 = vpop.f32.mrf.mxu0 }
 0x339   : > { %v4129_v52 = vadd.f32 %v4128_v28, %v3839_v6  ;;  %v4282_v19 = vpop.permute.xlu0 %4281 }
 0x33a   : > { %v4449_v27 = vsel %vm4423_vm3, %v7460_v15, %v4282_v19  ;;  %v3841_v56 = vpop.f32.mrf.mxu1  ;;  %v4131_v9 = vpop.f32.mrf.mxu0 }
 0x33b   : > { %4513 = vst [vmem:[%s8341_s26 + $0xc8] sm:$0xff] %v4449_v27  ;;  %4339 = vrot.lane.b32.xlu1 %v4129_v52, %s5844_s20 }
 0x33c   : > { %v3842_v20 = vpop.f32.mrf.mxu1  ;;  %v4133_v3 = vpop.f32.mrf.mxu0 }
 0x33d   : > { %v4132_v35 = vadd.f32 %v4131_v9, %v3842_v20  ;;  %v4284_v0 = vpop.permute.xlu1 %4283 }
 0x33e   : > { %v4450_v59 = vsel %vm4423_vm3, %v7476_v22, %v4284_v0  ;;  %v3844_v30 = vpop.f32.mrf.mxu1  ;;  %v4136_v55 = vpop.f32.mrf.mxu0 }
 0x33f   : > { %4514 = vst [vmem:[%s8341_s26 + $0xd0] sm:$0xff] %v4450_v59  ;;  %4341 = vrot.lane.b32.xlu0 %v4132_v35, %s5844_s20 }
 0x340   : > { %v3847_v21 = vpop.f32.mrf.mxu1  ;;  %v4138_v15 = vpop.f32.mrf.mxu0 }
 0x341   : > { %v4137_v51 = vadd.f32 %v4136_v55, %v3847_v21  ;;  %v4286_v12 = vpop.permute.xlu0 %4285 }
 0x342   : > { %v4451_v48 = vsel %vm4423_vm3, %v7493_v34, %v4286_v12  ;;  %v3849_v45 = vpop.f32.mrf.mxu1  ;;  %v4139_v38 = vpop.f32.mrf.mxu0 }
 0x343   : > { %4515 = vst [vmem:[%s8341_s26 + $0xd8] sm:$0xff] %v4451_v48  ;;  %4343 = vrot.lane.b32.xlu1 %v4137_v51, %s5844_s20 }
 0x344   : > { %v3850_v23 = vpop.f32.mrf.mxu1  ;;  %v4141_v22 = vpop.f32.mrf.mxu0 }
 0x345   : > { %v4140_v4 = vadd.f32 %v4139_v38, %v3850_v23  ;;  %v4288_v40 = vpop.permute.xlu1 %4287 }
 0x346   : > { %v4452_v37 = vsel %vm4423_vm3, %v7509_v58, %v4288_v40  ;;  %v3852_v25 = vpop.f32.mrf.mxu1  ;;  %v4144_v13 = vpop.f32.mrf.mxu0 }
 0x347   : > { %4516 = vst [vmem:[%s8341_s26 + $0xe0] sm:$0xff] %v4452_v37  ;;  %4345 = vrot.lane.b32.xlu0 %v4140_v4, %s5844_s20  ;;  %v8709_v37 = vld [vmem:[#allocation6_spill] sm:$0xff] }
 0x348   : > { %v3855_v43 = vpop.f32.mrf.mxu1  ;;  %v4146_v34 = vpop.f32.mrf.mxu0 }
 0x349   : > { %v4145_v2 = vadd.f32 %v4144_v13, %v3855_v43  ;;  %v4290_v60 = vpop.permute.xlu0 %4289  ;;  %v8710_v13 = vld [vmem:[#allocation5_spill] sm:$0xff]  ;;  %v8711_v34 = vld [vmem:[#allocation8_spill] sm:$0xff] }
 0x34a   : > { %v4453_v18 = vsel %vm4423_vm3, %v7526_v16, %v4290_v60  ;;  %v3857_v36 = vpop.f32.mrf.mxu1  ;;  %v4147_v24 = vpop.f32.mrf.mxu0  ;;  %v8712_v60 = vld [vmem:[#allocation7_spill] sm:$0xff] }
 0x34b   : > { %4517 = vst [vmem:[%s8341_s26 + $0xe8] sm:$0xff] %v4453_v18  ;;  %4347 = vrot.lane.b32.xlu1 %v4145_v2, %s5844_s20 }
 0x34c   : > { %v3858_v46 = vpop.f32.mrf.mxu1  ;;  %v4149_v58 = vpop.f32.mrf.mxu0 }
 0x34d   : > { %v4148_v17 = vadd.f32 %v4147_v24, %v3858_v46  ;;  %v4292_v63 = vpop.permute.xlu1 %4291  ;;  %v8713_v24 = vld [vmem:[#allocation10_spill] sm:$0xff] }
 0x34e   : > { %v4454_v57 = vsel %vm4423_vm3, %v7542_v26, %v4292_v63  ;;  %v3860_v33 = vpop.f32.mrf.mxu1  ;;  %v4152_v41 = vpop.f32.mrf.mxu0 }
 0x34f   : > { %4518 = vst [vmem:[%s8341_s26 + $0xf0] sm:$0xff] %v4454_v57  ;;  %4349 = vrot.lane.b32.xlu0 %v4148_v17, %s5844_s20  ;;  %v8714_v17 = vld [vmem:[#allocation9_spill] sm:$0xff]  ;;  %v8715_v33 = vld [vmem:[#allocation12_spill] sm:$0xff] }
 0x350   : > { %v3863_v16 = vpop.f32.mrf.mxu1  ;;  %v4154_v49 = vpop.f32.mrf.mxu0 }
 0x351   : > { %v4153_v1 = vadd.f32 %v4152_v41, %v3863_v16  ;;  %v4294_v31 = vpop.permute.xlu0 %4293  ;;  %v8716_v49 = vld [vmem:[#allocation11_spill] sm:$0xff] }
 0x352   : > { %v4455_v44 = vsel %vm4423_vm3, %v7559_v54, %v4294_v31  ;;  %v3865_v14 = vpop.f32.mrf.mxu1  ;;  %v4155_v29 = vpop.f32.mrf.mxu0 }
 0x353   : > { %4519 = vst [vmem:[%s8341_s26 + $0xf8] sm:$0xff] %v4455_v44  ;;  %4351 = vrot.lane.b32.xlu1 %v4153_v1, %s5844_s20  ;;  %v8717_v44 = vld [vmem:[#allocation14_spill] sm:$0xff] }
 0x354   : > { %v3866_v26 = vpop.f32.mrf.mxu1  ;;  %v4157_v32 = vpop.f32.mrf.mxu0 }
 0x355   : > { %v4156_v28 = vadd.f32 %v4155_v29, %v3866_v26  ;;  %v4296_v6 = vpop.permute.xlu1 %4295  ;;  %v8718_v26 = vld [vmem:[#allocation13_spill] sm:$0xff] }
 0x356   : > { %v4456_v47 = vsel %vm4423_vm3, %v7575_v10, %v4296_v6  ;;  %v3868_v52 = vpop.f32.mrf.mxu1  ;;  %v8719_v6 = vld [vmem:[#allocation16_spill] sm:$0xff] }
 0x357   : > { %4520 = vst [vmem:[%s8341_s26 + $0x100] sm:$0xff] %v4456_v47  ;;  %4353 = vrot.lane.b32.xlu0 %v4156_v28, %s5844_s20 }
 0x358   : > { %v3871_v54 = vpop.f32.mrf.mxu1 }
 0x359   : > { %v4298_v19 = vpop.permute.xlu0 %4297 }
 0x35a   : > { %v4457_v27 = vsel %vm4423_vm3, %v7592_v8, %v4298_v19  ;;  %v3873_v56 = vpop.f32.mrf.mxu1 }
 0x35b   : > { %4521 = vst [vmem:[%s8341_s26 + $0x108] sm:$0xff] %v4457_v27  ;;  %v8721_v56 = vld [vmem:[#allocation18_spill] sm:$0xff] }
 0x35c   : > { %v3874_v9 = vpop.f32.mrf.mxu1 }
 0x35d   : > { %v4300_v20 = vpop.permute.xlu1 %4299 }
 0x35e   : > { %v4458_v3 = vsel %vm4423_vm3, %v7608_v11, %v4300_v20  ;;  %v3876_v35 = vpop.f32.mrf.mxu1 }
 0x35f   : > { %4522 = vst [vmem:[%s8341_s26 + $0x110] sm:$0xff] %v4458_v3  ;;  %v8722_v3 = vld [vmem:[#allocation17_spill] sm:$0xff] }
 0x360   : > { %v4160_v10 = vpop.f32.mrf.mxu1 }
 0x361   : > { %v4161_v0 = vadd.f32 %v4160_v10, %v3871_v54  ;;  %v4302_v59 = vpop.permute.xlu0 %4301  ;;  %v8720_v54 = vld [vmem:[#allocation15_spill] sm:$0xff] }
 0x362   : > { %v4459_v30 = vsel %vm4423_vm3, %v7625_v42, %v4302_v59  ;;  %v4162_v55 = vpop.f32.mrf.mxu1 }
 0x363   : > { %4523 = vst [vmem:[%s8341_s26 + $0x118] sm:$0xff] %v4459_v30  ;;  %4355 = vrot.lane.b32.xlu1 %v4161_v0, %s5844_s20  ;;  %v8723_v0 = vld [vmem:[#allocation20_spill] sm:$0xff]  ;;  %v8724_v55 = vld [vmem:[#allocation19_spill] sm:$0xff] }
 0x364   : > { %v4163_v8 = vpop.f32.mrf.mxu1 }
 0x365   : > { %v4164_v21 = vadd.f32 %v4163_v8, %v3874_v9  ;;  %v4304_v15 = vpop.permute.xlu1 %4303 }
 0x366   : > { %v4460_v11 = vsel %vm4423_vm3, %v7641_v53, %v4304_v15  ;;  %v4165_v51 = vpop.f32.mrf.mxu1  ;;  %v8725_v15 = vld [vmem:[#allocation22_spill] sm:$0xff] }
 0x367   : > { %4524 = vst [vmem:[%s8341_s26 + $0x120] sm:$0xff] %v4460_v11  ;;  %4357 = vrot.lane.b32.xlu0 %v4164_v21, %s5844_s20 }
 0x369   : > { %v4306_v12 = vpop.permute.xlu0 %4305 }
 0x36a   : > { %v4461_v42 = vsel %vm4423_vm3, %v7658_v50, %v4306_v12  ;;  %v8726_v12 = vld [vmem:[#allocation21_spill] sm:$0xff] }
 0x36b   : > { %4525 = vst [vmem:[%s8341_s26 + $0x128] sm:$0xff] %v4461_v42 }
 0x36d   : > { %v4308_v48 = vpop.permute.xlu1 %4307 }
 0x36e   : > { %v4462_v45 = vsel %vm4423_vm3, %v7674_v39, %v4308_v48 }
 0x36f   : > { %4526 = vst [vmem:[%s8341_s26 + $0x130] sm:$0xff] %v4462_v45  ;;  %v8727_v45 = vld [vmem:[#allocation23_spill] sm:$0xff] }
 0x371   : > { %v4310_v38 = vpop.permute.xlu0 %4309 }
 0x372   : > { %v4463_v53 = vsel %vm4423_vm3, %v7691_v62, %v4310_v38 }
 0x373   : > { %4527 = vst [vmem:[%s8341_s26 + $0x138] sm:$0xff] %v4463_v53 }
 0x375   : > { %v4312_v23 = vpop.permute.xlu1 %4311 }
 0x376   : > { %v4464_v22 = vsel %vm4423_vm3, %v7707_v7, %v4312_v23  ;;  %v8728_v23 = vld [vmem:[#allocation24_spill] sm:$0xff] }
 0x377   : > { %4528 = vst [vmem:[%s8341_s26 + $0x140] sm:$0xff] %v4464_v22 }
 0x379   : > { %v4314_v50 = vpop.permute.xlu0 %4313 }
 0x37a   : > { %v4465_v4 = vsel %vm4423_vm3, %v7724_v5, %v4314_v50 }
 0x37b   : > { %4529 = vst [vmem:[%s8341_s26 + $0x148] sm:$0xff] %v4465_v4  ;;  %v8729_v4 = vld [vmem:[#allocation25_spill] sm:$0xff] }
 0x37d   : > { %v4316_v39 = vpop.permute.xlu1 %4315 }
 0x37e   : > { %v4466_v40 = vsel %vm4423_vm3, %v7740_v61, %v4316_v39 }
 0x37f   : > { %4530 = vst [vmem:[%s8341_s26 + $0x150] sm:$0xff] %v4466_v40 }
 0x381   : > { %v4318_v62 = vpop.permute.xlu0 %4317 }
 0x382   : > { %v4467_v25 = vsel %vm4423_vm3, %v8709_v37, %v4318_v62 }
 0x383   : > { %4531 = vst [vmem:[%s8341_s26 + $0x158] sm:$0xff] %v4467_v25 }
 0x385   : > { %v4320_v7 = vpop.permute.xlu1 %4319 }
 0x386   : > { %v4468_v43 = vsel %vm4423_vm3, %v8710_v13, %v4320_v7 }
 0x387   : > { %4532 = vst [vmem:[%s8341_s26 + $0x160] sm:$0xff] %v4468_v43 }
 0x389   : > { %v4322_v5 = vpop.permute.xlu0 %4321 }
 0x38a   : > { %v4469_v2 = vsel %vm4423_vm3, %v8711_v34, %v4322_v5 }
 0x38b   : > { %4533 = vst [vmem:[%s8341_s26 + $0x168] sm:$0xff] %v4469_v2 }
 0x38d   : > { %v4324_v61 = vpop.permute.xlu1 %4323 }
 0x38e   : > { %v4470_v18 = vsel %vm4423_vm3, %v8712_v60, %v4324_v61 }
 0x38f   : > { %4534 = vst [vmem:[%s8341_s26 + $0x170] sm:$0xff] %v4470_v18 }
 0x391   : > { %v4326_v36 = vpop.permute.xlu0 %4325 }
 0x392   : > { %v4471_v46 = vsel %vm4423_vm3, %v8713_v24, %v4326_v36 }
 0x393   : > { %4535 = vst [vmem:[%s8341_s26 + $0x178] sm:$0xff] %v4471_v46 }
 0x395   : > { %v4328_v58 = vpop.permute.xlu1 %4327 }
 0x396   : > { %v4472_v63 = vsel %vm4423_vm3, %v8714_v17, %v4328_v58 }
 0x397   : > { %4536 = vst [vmem:[%s8341_s26 + $0x180] sm:$0xff] %v4472_v63 }
 0x399   : > { %v4330_v57 = vpop.permute.xlu0 %4329 }
 0x39a   : > { %v4473_v41 = vsel %vm4423_vm3, %v8715_v33, %v4330_v57 }
 0x39b   : > { %4537 = vst [vmem:[%s8341_s26 + $0x188] sm:$0xff] %v4473_v41 }
 0x39d   : > { %v4332_v16 = vpop.permute.xlu1 %4331 }
 0x39e   : > { %v4474_v1 = vsel %vm4423_vm3, %v8716_v49, %v4332_v16 }
 0x39f   : > { %4538 = vst [vmem:[%s8341_s26 + $0x190] sm:$0xff] %v4474_v1 }
 0x3a1   : > { %v4334_v31 = vpop.permute.xlu0 %4333 }
 0x3a2   : > { %v4475_v14 = vsel %vm4423_vm3, %v8717_v44, %v4334_v31 }
 0x3a3   : > { %4539 = vst [vmem:[%s8341_s26 + $0x198] sm:$0xff] %v4475_v14 }
 0x3a5   : > { %v4336_v29 = vpop.permute.xlu1 %4335 }
 0x3a6   : > { %v4476_v32 = vsel %vm4423_vm3, %v8718_v26, %v4336_v29 }
 0x3a7   : > { %4540 = vst [vmem:[%s8341_s26 + $0x1a0] sm:$0xff] %v4476_v32 }
 0x3a9   : > { %v4338_v28 = vpop.permute.xlu0 %4337 }
 0x3aa   : > { %v4477_v47 = vsel %vm4423_vm3, %v8719_v6, %v4338_v28 }
 0x3ab   : > { %4541 = vst [vmem:[%s8341_s26 + $0x1a8] sm:$0xff] %v4477_v47 }
 0x3ad   : > { %v4340_v52 = vpop.permute.xlu1 %4339 }
 0x3ae   : > { %v4478_v19 = vsel %vm4423_vm3, %v8720_v54, %v4340_v52 }
 0x3af   : > { %4542 = vst [vmem:[%s8341_s26 + $0x1b0] sm:$0xff] %v4478_v19 }
 0x3b1   : > { %v4342_v27 = vpop.permute.xlu0 %4341 }
 0x3b2   : > { %v4479_v9 = vsel %vm4423_vm3, %v8721_v56, %v4342_v27 }
 0x3b3   : > { %4543 = vst [vmem:[%s8341_s26 + $0x1b8] sm:$0xff] %v4479_v9 }
 0x3b5   : > { %v4344_v20 = vpop.permute.xlu1 %4343 }
 0x3b6   : > { %v4480_v35 = vsel %vm4423_vm3, %v8722_v3, %v4344_v20 }
 0x3b7   : > { %4544 = vst [vmem:[%s8341_s26 + $0x1c0] sm:$0xff] %v4480_v35 }
 0x3b9   : > { %v4346_v10 = vpop.permute.xlu0 %4345 }
 0x3ba   : > { %v4481_v59 = vsel %vm4423_vm3, %v8723_v0, %v4346_v10 }
 0x3bb   : > { %4545 = vst [vmem:[%s8341_s26 + $0x1c8] sm:$0xff] %v4481_v59 }
 0x3bd   : > { %v4348_v30 = vpop.permute.xlu1 %4347 }
 0x3be   : > { %v4482_v8 = vsel %vm4423_vm3, %v8724_v55, %v4348_v30 }
 0x3bf   : > { %4546 = vst [vmem:[%s8341_s26 + $0x1d0] sm:$0xff] %v4482_v8 }
 0x3c1   : > { %v4350_v21 = vpop.permute.xlu0 %4349 }
 0x3c2   : > { %v4483_v11 = vsel %vm4423_vm3, %v8725_v15, %v4350_v21 }
 0x3c3   : > { %4547 = vst [vmem:[%s8341_s26 + $0x1d8] sm:$0xff] %v4483_v11 }
 0x3c5   : > { %v4352_v51 = vpop.permute.xlu1 %4351 }
 0x3c6   : > { %v4484_v42 = vsel %vm4423_vm3, %v8726_v12, %v4352_v51 }
 0x3c7   : > { %4548 = vst [vmem:[%s8341_s26 + $0x1e0] sm:$0xff] %v4484_v42 }
 0x3c9   : > { %v4354_v48 = vpop.permute.xlu0 %4353 }
 0x3ca   : > { %v4485_v38 = vsel %vm4423_vm3, %v8727_v45, %v4354_v48 }
 0x3cb   : > { %4549 = vst [vmem:[%s8341_s26 + $0x1e8] sm:$0xff] %v4485_v38 }
 0x3d5   : > { %v4356_v53 = vpop.permute.xlu1 %4355 }
 0x3d6   : > { %v4486_v22 = vsel %vm4423_vm3, %v8728_v23, %v4356_v53 }
 0x3d7   : > { %4550 = vst [vmem:[%s8341_s26 + $0x1f0] sm:$0xff] %v4486_v22 }
 0x3d9   : > { %v4358_v50 = vpop.permute.xlu0 %4357 }
 0x3da   : > { %v4487_v39 = vsel %vm4423_vm3, %v8729_v4, %v4358_v50 }
 0x3db   : > { %4551 = vst [vmem:[%s8341_s26 + $0x1f8] sm:$0xff] %v4487_v39 }
 0x3dc   : > { %5791 = shalt.err (!%p5788_p3)
}
 0x3dd   : > { %s5792_s9 = scalar_lea.hbm %s8570_s30, 8192  ;;  %s5796_s17 = scalar_lea.hbm %s8622_s3, 16384 }
 0x3de   : > { %p5793_p4 = scmp.ne.s32.totalorder %s8570_s30, %s5792_s9  ;;  %p5797_p9 = scmp.lt.s32.totalorder %s8570_s30, %s8622_s3 }
 0x3df   : > { %p5798_p10 = scmp.lt.s32.totalorder %s5796_s17, %s5792_s9 }
 0x3e0   : > { %p5794_p7 = pnand %p5793_p4, %p5906_p5 }
 0x3e1   : > { %p5799_p11 = por %p5798_p10, %p5797_p9 }
 0x3e2   : > { %p5795_p8 = pneg %p5794_p7 }
 0x3e4   : > { %p5800_p12 = pnand %p5799_p11, %p5795_p8 }
 0x3e6   : > { %5803 = shalt.err (!%p5800_p12)
}
 0x3e7   : > { %s5846_s24 = smov 128   ;;  %s5847_s25 = smov 8  }
 0x3e8   : > { %5669 = dma.vmem_to_hbm [thread:$0]  (%p5906_p5), %s8572_s27, 8192, %s8570_s30, %s8579_s16, %s5846_s24, %s5846_s24, %s5847_s25  }
 0x3e9 PF: > { %p5675_p13 = scmp.ge.s32.totalorder %s5838_s15, 2  ;;  %s4581_s26 = sand.u32 1, %s5826_s12  }
 0x3ea   : > { %s4582_s5 = scalar_lea.sflag [#allocation3], %s4581_s26 }
 0x3eb   : > { %p5672_p0 = pnand %p5675_p13, %p5910_p6 }
 0x3ed   : > { %p5673_p1 = pneg %p5672_p0 }
 0x3ef   : > { %5821 = dma.done.wait (%p5673_p1), %s4582_s5, 8192  }
 0x3f0   : > { %5823 = vsyncadd (%p5673_p1), %s4582_s5, 4294959104  ;;  %p13_p2 = scmp.ge.s32.totalorder %s5893_s18, 4   ;;  %s8730_s12 = smov %s5830_s13 }
 0x3f1   : > { %s8731_s13 = smov %s5834_s14  ;;  %s8732_s14 = smov %s5904_s21 }
 0x3f2   : > { %s8733_s15 = smov %s5893_s18  ;;  %15 = sbr.rel (!%p13_p2) target bundleno = 3 (0x3), region = 67 }
 0x3f7   :  { %4587 = vsyncpa [#allocation3], 1 }
 0x3f8   :  { %4589 = vsyncpa [#allocation3 + $0x1], 1 }

</bundles_post_ra>
